<compile_context>
chip_gen: v6e
topology: v6e:2x2x1
jax: 0.10.0
libtpu: 0.0.40
codegen_flags: <defaults>
</compile_context>

<pallas_src>
import functools
import math

import jax
import jax.numpy as jnp
from jax.experimental import pallas as pl
from jax.experimental.pallas import tpu as pltpu

EPS = 1e-5        # nn.LayerNorm default eps
NEG_INF = -1e9    # same masking constant as the PyTorch reference


# ---------------------------------------------------------------------------
# In-kernel helpers (traced inside the Pallas kernels)
# ---------------------------------------------------------------------------
def _layernorm(x, gamma, beta):
    """LayerNorm over the last dim. x: [M, D] f32, gamma/beta: [1, D] f32."""
    mu = jnp.mean(x, axis=-1, keepdims=True)
    var = jnp.mean((x - mu) ** 2, axis=-1, keepdims=True)
    return (x - mu) * jax.lax.rsqrt(var + EPS) * gamma + beta


def _mha(q3, k3, v3, bias, wo, bo, *, num_heads):
    """Multi-head attention, heads batched into single MXU contractions.

    q3: [B, Lq, D] bf16 (1/sqrt(dk) already folded into the Q projection),
    k3/v3: [B, Lk, D] bf16, bias: [B, 1|Lq, Lk] f32 additive mask bias,
    wo: [D, D] bf16, bo: [1, D] f32.  Returns [B*Lq, D] f32.

    Heads are stacked on the leading (batch) axis so scores and P.V are each
    ONE dot_general over B*H batch elements, the mask bias is broadcast exactly
    once, and the output projection is a single full-D (K=D) matmul instead of
    H partial K=dk matmuls (keeps the 256-wide MXU on v6e/v7x fed).
    """
    B, Lq, D = q3.shape
    Lk = k3.shape[1]
    dk = D // num_heads
    # [B, L, D] -> [H*B, L, dk]  (head-major stacking along the batch axis)
    qh = jnp.concatenate([q3[:, :, h * dk:(h + 1) * dk] for h in range(num_heads)], 0)
    kh = jnp.concatenate([k3[:, :, h * dk:(h + 1) * dk] for h in range(num_heads)], 0)
    vh = jnp.concatenate([v3[:, :, h * dk:(h + 1) * dk] for h in range(num_heads)], 0)
    # scores: [H*B, Lq, Lk]
    s = jax.lax.dot_general(qh, kh, (((2,), (2,)), ((0,), (0,))),
                            preferred_element_type=jnp.float32)
    # additive mask bias added once for all heads (broadcast over head axis)
    s = (s.reshape(num_heads, B, Lq, Lk) + bias).reshape(num_heads * B, Lq, Lk)
    s = s - jnp.max(s, axis=-1, keepdims=True)
    p = jnp.exp(s)   # f32 exp; bf16 exp is a v6e/v7x-only EUP micro-opt
    p = p * pl.reciprocal(jnp.sum(p, axis=-1, keepdims=True), approx=True)
    # P.V: [H*B, Lq, dk]
    o = jax.lax.dot_general(p.astype(vh.dtype), vh, (((2,), (1,)), ((0,), (0,))),
                            preferred_element_type=jnp.float32)
    # one head re-interleave into lanes, then a single [M,D] x [D,D] projection
    o = jnp.concatenate([o[h * B:(h + 1) * B] for h in range(num_heads)], axis=-1)
    return jnp.dot(o.reshape(B * Lq, D).astype(wo.dtype), wo,
                   preferred_element_type=jnp.float32) + bo


# ---------------------------------------------------------------------------
# Fused encoder stack kernel (N layers + final LayerNorm in one pallas_call)
# ---------------------------------------------------------------------------
def encoder_kernel(sbias_ref, x_ref,
                   ln1g_ref, ln1b_ref, wqkv_ref, bqkv_ref, wo_ref, bo_ref,
                   ln2g_ref, ln2b_ref, w1_ref, b1_ref, w2_ref, b2_ref,
                   fg_ref, fb_ref,
                   out_ref, x_acc,
                   *, num_heads):
    layer = pl.program_id(1)          # grid = (batch tiles [parallel], layers)
    BT, S, D = x_acc.shape

    @pl.when(layer == 0)
    def _():
        x_acc[...] = x_ref[...].astype(jnp.float32)

    x2 = x_acc[...].reshape(BT * S, D)            # fold batch tile into matmul M

    # ---- sublayer 1: x + self_attn(norm1(x)) ----  (1/sqrt(dk) folded in Wq)
    xn = _layernorm(x2, ln1g_ref[0], ln1b_ref[0])
    qkv = jnp.dot(xn.astype(jnp.bfloat16), wqkv_ref[0],
                  preferred_element_type=jnp.float32) + bqkv_ref[0]
    q3 = qkv[:, :D].reshape(BT, S, D).astype(jnp.bfloat16)
    k3 = qkv[:, D:2 * D].reshape(BT, S, D).astype(jnp.bfloat16)
    v3 = qkv[:, 2 * D:].reshape(BT, S, D).astype(jnp.bfloat16)
    x2 = x2 + _mha(q3, k3, v3, sbias_ref[...], wo_ref[0], bo_ref[0],
                   num_heads=num_heads)

    # ---- sublayer 2: x + ffn(norm2(x)) ----
    xn2 = _layernorm(x2, ln2g_ref[0], ln2b_ref[0])
    h1 = jnp.maximum(jnp.dot(xn2.astype(jnp.bfloat16), w1_ref[0],
                             preferred_element_type=jnp.float32) + b1_ref[0], 0.0)
    x2 = x2 + jnp.dot(h1.astype(jnp.bfloat16), w2_ref[0],
                      preferred_element_type=jnp.float32) + b2_ref[0]

    x_acc[...] = x2.reshape(BT, S, D)

    @pl.when(layer == pl.num_programs(1) - 1)
    def _():
        out_ref[...] = _layernorm(x2, fg_ref[...], fb_ref[...]) \
            .reshape(BT, S, D).astype(out_ref.dtype)


# ---------------------------------------------------------------------------
# Fused decoder stack kernel (N layers + final LayerNorm in one pallas_call)
# ---------------------------------------------------------------------------
def decoder_kernel(tbias_ref, sbias_ref, x_ref, mem_ref,
                   ln1g_ref, ln1b_ref, wqkv1_ref, bqkv1_ref, wo1_ref, bo1_ref,
                   ln2g_ref, ln2b_ref, wq2_ref, bq2_ref, wkv2_ref, bkv2_ref,
                   wo2_ref, bo2_ref,
                   ln3g_ref, ln3b_ref, w1_ref, b1_ref, w2_ref, b2_ref,
                   fg_ref, fb_ref,
                   out_ref, x_acc,
                   *, num_heads):
    layer = pl.program_id(1)
    BT, T, D = x_acc.shape
    S = mem_ref.shape[1]

    @pl.when(layer == 0)
    def _():
        x_acc[...] = x_ref[...].astype(jnp.float32)

    x2 = x_acc[...].reshape(BT * T, D)
    mem2 = mem_ref[...].reshape(BT * S, D)        # bf16, fed straight to the MXU

    # ---- sublayer 1: x + self_attn(norm1(x), tgt_mask) ----
    xn = _layernorm(x2, ln1g_ref[0], ln1b_ref[0])
    qkv = jnp.dot(xn.astype(jnp.bfloat16), wqkv1_ref[0],
                  preferred_element_type=jnp.float32) + bqkv1_ref[0]
    q3 = qkv[:, :D].reshape(BT, T, D).astype(jnp.bfloat16)
    k3 = qkv[:, D:2 * D].reshape(BT, T, D).astype(jnp.bfloat16)
    v3 = qkv[:, 2 * D:].reshape(BT, T, D).astype(jnp.bfloat16)
    x2 = x2 + _mha(q3, k3, v3, tbias_ref[...], wo1_ref[0], bo1_ref[0],
                   num_heads=num_heads)

    # ---- sublayer 2: x + src_attn(norm2(x), memory, memory, src_mask) ----
    xn2 = _layernorm(x2, ln2g_ref[0], ln2b_ref[0])
    q = jnp.dot(xn2.astype(jnp.bfloat16), wq2_ref[0],
                preferred_element_type=jnp.float32) + bq2_ref[0]
    kv = jnp.dot(mem2, wkv2_ref[0],
                 preferred_element_type=jnp.float32) + bkv2_ref[0]
    q3c = q.reshape(BT, T, D).astype(jnp.bfloat16)
    k3c = kv[:, :D].reshape(BT, S, D).astype(jnp.bfloat16)
    v3c = kv[:, D:].reshape(BT, S, D).astype(jnp.bfloat16)
    x2 = x2 + _mha(q3c, k3c, v3c, sbias_ref[...], wo2_ref[0], bo2_ref[0],
                   num_heads=num_heads)

    # ---- sublayer 3: x + ffn(norm3(x)) ----
    xn3 = _layernorm(x2, ln3g_ref[0], ln3b_ref[0])
    h1 = jnp.maximum(jnp.dot(xn3.astype(jnp.bfloat16), w1_ref[0],
                             preferred_element_type=jnp.float32) + b1_ref[0], 0.0)
    x2 = x2 + jnp.dot(h1.astype(jnp.bfloat16), w2_ref[0],
                      preferred_element_type=jnp.float32) + b2_ref[0]

    x_acc[...] = x2.reshape(BT, T, D)

    @pl.when(layer == pl.num_programs(1) - 1)
    def _():
        out_ref[...] = _layernorm(x2, fg_ref[...], fb_ref[...]) \
            .reshape(BT, T, D).astype(out_ref.dtype)


# ---------------------------------------------------------------------------
# BlockSpec builders (grid = (batch_tiles [parallel], layers [arbitrary]))
# ---------------------------------------------------------------------------
def _stacked(shape):
    """Per-layer weight: leading [N, ...] axis, pipelined along the layer axis."""
    return pl.BlockSpec((1,) + tuple(shape),
                        lambda b, l: (l,) + (0,) * len(shape))


def _per_batch(shape, single_buffer):
    """Activation/mask indexed by the batch tile, constant across layers.
    Double-buffering it only doubles VMEM -> request a single buffer."""
    kw = dict(pipeline_mode=pl.Buffered(1)) if single_buffer else {}
    return pl.BlockSpec(tuple(shape),
                        lambda b, l: (b,) + (0,) * (len(shape) - 1), **kw)


def _const(shape, single_buffer):
    """Fetched once, same block every grid step (final-LayerNorm params)."""
    kw = dict(pipeline_mode=pl.Buffered(1)) if single_buffer else {}
    return pl.BlockSpec(tuple(shape), lambda b, l: (0,) * len(shape), **kw)


def _vmem_limit(per_layer_weight_bytes, resident_io_bytes, scratch_bytes):
    # 2x per-layer weights (double-buffered layer pipeline) + resident
    # activations / masks / output + residual scratch + slack for in-kernel
    # intermediates (scores, FFN hidden, relayouts).
    need = 2 * per_layer_weight_bytes + 2 * resident_io_bytes + scratch_bytes
    return int(min(max(need + (16 << 20), 32 << 20), 100 << 20))


def make_encoder_fn(B, S, D, d_ff, num_heads, n_layers, batch_tile, single_buffer):
    assert B % batch_tile == 0
    res = functools.partial(_per_batch, single_buffer=single_buffer)
    cst = functools.partial(_const, single_buffer=single_buffer)
    in_specs = [
        res((batch_tile, 1, S)),                       # additive src-mask bias (f32)
        res((batch_tile, S, D)),                       # embedded src (bf16)
        _stacked((1, D)), _stacked((1, D)),            # ln1 gamma / beta
        _stacked((D, 3 * D)), _stacked((1, 3 * D)),    # fused Wqkv, bqkv (Q pre-scaled)
        _stacked((D, D)), _stacked((1, D)),            # Wo, bo
        _stacked((1, D)), _stacked((1, D)),            # ln2 gamma / beta
        _stacked((D, d_ff)), _stacked((1, d_ff)),      # W1, b1
        _stacked((d_ff, D)), _stacked((1, D)),         # W2, b2
        cst((1, D)), cst((1, D)),                      # final LayerNorm
    ]
    w_bytes = 2 * (4 * D * D + 2 * D * d_ff) + 4 * (9 * D + d_ff)
    r_bytes = (4 * batch_tile * S + 2 * batch_tile * S * D
               + 8 * D + 2 * batch_tile * S * D)
    s_bytes = 4 * batch_tile * S * D
    return pl.pallas_call(
        functools.partial(encoder_kernel, num_heads=num_heads),
        out_shape=jax.ShapeDtypeStruct((B, S, D), jnp.bfloat16),   # memory in bf16
        grid=(B // batch_tile, n_layers),
        in_specs=in_specs,
        out_specs=pl.BlockSpec((batch_tile, S, D), lambda b, l: (b, 0, 0)),
        scratch_shapes=[pltpu.VMEM((batch_tile, S, D), jnp.float32)],
        compiler_params=pltpu.CompilerParams(
            dimension_semantics=("parallel", "arbitrary"),
            vmem_limit_bytes=_vmem_limit(w_bytes, r_bytes, s_bytes)),
    )


def make_decoder_fn(B, T, S, D, d_ff, num_heads, n_layers, batch_tile, single_buffer):
    assert B % batch_tile == 0
    res = functools.partial(_per_batch, single_buffer=single_buffer)
    cst = functools.partial(_const, single_buffer=single_buffer)
    in_specs = [
        res((batch_tile, T, T)),                       # additive tgt-mask bias (f32)
        res((batch_tile, 1, S)),                       # additive src-mask bias (f32)
        res((batch_tile, T, D)),                       # embedded tgt (bf16)
        res((batch_tile, S, D)),                       # encoder memory (bf16)
        _stacked((1, D)), _stacked((1, D)),            # ln1
        _stacked((D, 3 * D)), _stacked((1, 3 * D)),    # self-attn Wqkv, bqkv
        _stacked((D, D)), _stacked((1, D)),            # self-attn Wo, bo
        _stacked((1, D)), _stacked((1, D)),            # ln2
        _stacked((D, D)), _stacked((1, D)),            # cross-attn Wq, bq (pre-scaled)
        _stacked((D, 2 * D)), _stacked((1, 2 * D)),    # cross-attn Wkv, bkv
        _stacked((D, D)), _stacked((1, D)),            # cross-attn Wo, bo
        _stacked((1, D)), _stacked((1, D)),            # ln3
        _stacked((D, d_ff)), _stacked((1, d_ff)),      # W1, b1
        _stacked((d_ff, D)), _stacked((1, D)),         # W2, b2
        cst((1, D)), cst((1, D)),                      # final LayerNorm
    ]
    w_bytes = 2 * (8 * D * D + 2 * D * d_ff) + 4 * (15 * D + d_ff)
    r_bytes = (4 * batch_tile * T * T + 4 * batch_tile * S
               + 2 * batch_tile * T * D + 2 * batch_tile * S * D
               + 8 * D + 4 * batch_tile * T * D)
    s_bytes = 4 * batch_tile * T * D
    return pl.pallas_call(
        functools.partial(decoder_kernel, num_heads=num_heads),
        out_shape=jax.ShapeDtypeStruct((B, T, D), jnp.float32),
        grid=(B // batch_tile, n_layers),
        in_specs=in_specs,
        out_specs=pl.BlockSpec((batch_tile, T, D), lambda b, l: (b, 0, 0)),
        scratch_shapes=[pltpu.VMEM((batch_tile, T, D), jnp.float32)],
        compiler_params=pltpu.CompilerParams(
            dimension_semantics=("parallel", "arbitrary"),
            vmem_limit_bytes=_vmem_limit(w_bytes, r_bytes, s_bytes)),
    )


# ---------------------------------------------------------------------------
# Parameter init (stacked per-layer weights; matmul weights stored in bf16)
# ---------------------------------------------------------------------------
def _w(key, shape, fan_in):
    return (jax.random.normal(key, shape, jnp.float32)
            / math.sqrt(fan_in)).astype(jnp.bfloat16)


def init_encoder_params(key, n, D, d_ff):
    ks = jax.random.split(key, 4)
    z = lambda *s: jnp.zeros(s, jnp.float32)
    one = lambda *s: jnp.ones(s, jnp.float32)
    return dict(
        ln1_g=one(n, 1, D), ln1_b=z(n, 1, D),
        wqkv=_w(ks[0], (n, D, 3 * D), D), bqkv=z(n, 1, 3 * D),
        wo=_w(ks[1], (n, D, D), D), bo=z(n, 1, D),
        ln2_g=one(n, 1, D), ln2_b=z(n, 1, D),
        w1=_w(ks[2], (n, D, d_ff), D), b1=z(n, 1, d_ff),
        w2=_w(ks[3], (n, d_ff, D), d_ff), b2=z(n, 1, D),
    )


def init_decoder_params(key, n, D, d_ff):
    ks = jax.random.split(key, 7)
    z = lambda *s: jnp.zeros(s, jnp.float32)
    one = lambda *s: jnp.ones(s, jnp.float32)
    return dict(
        ln1_g=one(n, 1, D), ln1_b=z(n, 1, D),
        wqkv1=_w(ks[0], (n, D, 3 * D), D), bqkv1=z(n, 1, 3 * D),
        wo1=_w(ks[1], (n, D, D), D), bo1=z(n, 1, D),
        ln2_g=one(n, 1, D), ln2_b=z(n, 1, D),
        wq2=_w(ks[2], (n, D, D), D), bq2=z(n, 1, D),
        wkv2=_w(ks[3], (n, D, 2 * D), D), bkv2=z(n, 1, 2 * D),
        wo2=_w(ks[4], (n, D, D), D), bo2=z(n, 1, D),
        ln3_g=one(n, 1, D), ln3_b=z(n, 1, D),
        w1=_w(ks[5], (n, D, d_ff), D), b1=z(n, 1, d_ff),
        w2=_w(ks[6], (n, d_ff, D), d_ff), b2=z(n, 1, D),
    )


def fold_q_scale(ep, dp, D, num_heads):
    """One-time host-side fold of the 1/sqrt(dk) attention scale into the Q
    projection weights/biases (removes a per-layer [M, D] VPU multiply)."""
    s = 1.0 / math.sqrt(D // num_heads)
    ep = dict(ep)
    dp = dict(dp)
    ep["wqkv"] = ep["wqkv"].at[:, :, :D].multiply(s)
    ep["bqkv"] = ep["bqkv"].at[:, :, :D].multiply(s)
    dp["wqkv1"] = dp["wqkv1"].at[:, :, :D].multiply(s)
    dp["bqkv1"] = dp["bqkv1"].at[:, :, :D].multiply(s)
    dp["wq2"] = dp["wq2"] * s
    dp["bq2"] = dp["bq2"] * s
    return ep, dp


# ---------------------------------------------------------------------------
# Pure-JAX reference (f32, unscaled params) for a correctness check
# ---------------------------------------------------------------------------
def _ref_ln(x, g, b):
    mu = x.mean(-1, keepdims=True)
    var = ((x - mu) ** 2).mean(-1, keepdims=True)
    return (x - mu) / jnp.sqrt(var + EPS) * g + b


def _ref_attn(q, k, v, bias, num_heads):
    B, Lq, D = q.shape
    Lk = k.shape[1]
    dk = D // num_heads
    qh = q.reshape(B, Lq, num_heads, dk).transpose(0, 2, 1, 3)
    kh = k.reshape(B, Lk, num_heads, dk).transpose(0, 2, 1, 3)
    vh = v.reshape(B, Lk, num_heads, dk).transpose(0, 2, 1, 3)
    s = jnp.einsum("bhqd,bhkd->bhqk", qh, kh) / math.sqrt(dk) + bias[:, None]
    p = jax.nn.softmax(s, axis=-1)
    o = jnp.einsum("bhqk,bhkd->bhqd", p, vh)
    return o.transpose(0, 2, 1, 3).reshape(B, Lq, D)


def _f32(w):
    return w.astype(jnp.float32)


def _ref_encoder_layer(x, sbias, p, l, H):
    D = x.shape[-1]
    xn = _ref_ln(x, p["ln1_g"][l], p["ln1_b"][l])
    qkv = xn @ _f32(p["wqkv"][l]) + p["bqkv"][l]
    a = _ref_attn(qkv[..., :D], qkv[..., D:2 * D], qkv[..., 2 * D:], sbias, H)
    x = x + a @ _f32(p["wo"][l]) + p["bo"][l]
    xn2 = _ref_ln(x, p["ln2_g"][l], p["ln2_b"][l])
    h = jnp.maximum(xn2 @ _f32(p["w1"][l]) + p["b1"][l], 0.0)
    return x + h @ _f32(p["w2"][l]) + p["b2"][l]


def _ref_decoder_layer(x, mem, tbias, sbias, p, l, H):
    D = x.shape[-1]
    xn = _ref_ln(x, p["ln1_g"][l], p["ln1_b"][l])
    qkv = xn @ _f32(p["wqkv1"][l]) + p["bqkv1"][l]
    a = _ref_attn(qkv[..., :D], qkv[..., D:2 * D], qkv[..., 2 * D:], tbias, H)
    x = x + a @ _f32(p["wo1"][l]) + p["bo1"][l]
    xn2 = _ref_ln(x, p["ln2_g"][l], p["ln2_b"][l])
    q = xn2 @ _f32(p["wq2"][l]) + p["bq2"][l]
    kv = mem @ _f32(p["wkv2"][l]) + p["bkv2"][l]
    a = _ref_attn(q, kv[..., :D], kv[..., D:], sbias, H)
    x = x + a @ _f32(p["wo2"][l]) + p["bo2"][l]
    xn3 = _ref_ln(x, p["ln3_g"][l], p["ln3_b"][l])
    h = jnp.maximum(xn3 @ _f32(p["w1"][l]) + p["b1"][l], 0.0)
    return x + h @ _f32(p["w2"][l]) + p["b2"][l]


# ---------------------------------------------------------------------------
# Driver
# ---------------------------------------------------------------------------
if __name__ == "__main__":
    # Small shapes; D=128 keeps every lane dimension dense.  (Annotated default
    # is D=512, N=6 — reduced here for a quick deterministic test.  At these toy
    # sizes the kernel is launch/latency-bound; the MXU / VMEM levers only show
    # up at realistic B*S and D.)
    B, S, T, D, H, d_ff, N, V = 2, 16, 16, 128, 4, 256, 2, 32
    BATCH_TILE = 1   # batch-parallel grid axis -> both v7x TensorCores get work

    key = jax.random.PRNGKey(0)
    k_src, k_tgt, k_et1, k_et2, k_enc, k_dec = jax.random.split(key, 6)

    # Token ids (0 = pad).
    src = jax.random.randint(k_src, (B, S), 1, V)
    tgt = jax.random.randint(k_tgt, (B, T), 1, V)
    src = src.at[1, S - 4:].set(0)
    tgt = tgt.at[1, T - 2:].set(0)

    # Masks (1 = attend), converted ONCE to additive f32 biases.
    src_mask = (src != 0)[:, None, :].astype(jnp.float32)                 # [B,1,S]
    causal = jnp.tril(jnp.ones((T, T), jnp.float32))
    tgt_mask = (tgt != 0)[:, None, :].astype(jnp.float32) * causal[None]  # [B,T,T]
    src_bias = jnp.where(src_mask > 0, 0.0, NEG_INF).astype(jnp.float32)
    tgt_bias = jnp.where(tgt_mask > 0, 0.0, NEG_INF).astype(jnp.float32)

    # Embeddings + sinusoidal positional encoding.
    # TODO(synk): token-embedding gather + positional encoding kept in plain
    # JAX (trivial gather; not worth a Pallas kernel).
    src_table = jax.random.normal(k_et1, (V, D), jnp.float32)
    tgt_table = jax.random.normal(k_et2, (V, D), jnp.float32)
    pos = jnp.arange(max(S, T), dtype=jnp.float32)[:, None]
    div = jnp.exp(jnp.arange(0, D, 2, dtype=jnp.float32) * (-math.log(10000.0) / D))
    pe = jnp.zeros((max(S, T), D), jnp.float32)
    pe = pe.at[:, 0::2].set(jnp.sin(pos * div)).at[:, 1::2].set(jnp.cos(pos * div))

    def embed(ids, table):
        return jnp.take(table, ids, axis=0) * math.sqrt(D) + pe[None, :ids.shape[1], :]

    # Matmul-only activations travel in bf16 (halves DMA + resident VMEM).
    src_x_dev = embed(src, src_table).astype(jnp.bfloat16)
    tgt_x_dev = embed(tgt, tgt_table).astype(jnp.bfloat16)

    ep = init_encoder_params(k_enc, N, D, d_ff)
    dp = init_decoder_params(k_dec, N, D, d_ff)
    epd, dpd = fold_q_scale(ep, dp, D, H)     # kernel params: Q scale pre-folded
    enc_fg, enc_fb = jnp.ones((1, D), jnp.float32), jnp.zeros((1, D), jnp.float32)
    dec_fg, dec_fb = jnp.ones((1, D), jnp.float32), jnp.zeros((1, D), jnp.float32)

    def run_forward(single_buffer):
        enc_fn = make_encoder_fn(B, S, D, d_ff, H, N, BATCH_TILE, single_buffer)
        dec_fn = make_decoder_fn(B, T, S, D, d_ff, H, N, BATCH_TILE, single_buffer)
        # encode(src, src_mask)
        memory = enc_fn(src_bias, src_x_dev,
                        epd["ln1_g"], epd["ln1_b"], epd["wqkv"], epd["bqkv"],
                        epd["wo"], epd["bo"], epd["ln2_g"], epd["ln2_b"],
                        epd["w1"], epd["b1"], epd["w2"], epd["b2"],
                        enc_fg, enc_fb)
        # decode(memory, src_mask, tgt, tgt_mask)
        out = dec_fn(tgt_bias, src_bias, tgt_x_dev, memory,
                     dpd["ln1_g"], dpd["ln1_b"], dpd["wqkv1"], dpd["bqkv1"],
                     dpd["wo1"], dpd["bo1"], dpd["ln2_g"], dpd["ln2_b"],
                     dpd["wq2"], dpd["bq2"], dpd["wkv2"], dpd["bkv2"],
                     dpd["wo2"], dpd["bo2"], dpd["ln3_g"], dpd["ln3_b"],
                     dpd["w1"], dpd["b1"], dpd["w2"], dpd["b2"],
                     dec_fg, dec_fb)
        return jax.block_until_ready(out)

    try:
        out = run_forward(single_buffer=True)
    except Exception:
        # pipeline_mode=pl.Buffered(1) not supported by this jax version ->
        # fall back to default double-buffering (numerics identical).
        out = run_forward(single_buffer=False)

    # Pure-JAX f32 reference of the same forward pass (unscaled params).
    src_x_ref = src_x_dev.astype(jnp.float32)
    tgt_x_ref = tgt_x_dev.astype(jnp.float32)
    ref_mem = src_x_ref
    for l in range(N):
        ref_mem = _ref_encoder_layer(ref_mem, src_bias, ep, l, H)
    ref_mem = _ref_ln(ref_mem, enc_fg, enc_fb)
    ref_out = tgt_x_ref
    for l in range(N):
        ref_out = _ref_decoder_layer(ref_out, ref_mem, tgt_bias, src_bias, dp, l, H)
    ref_out = _ref_ln(ref_out, dec_fg, dec_fb)

    assert out.shape == (B, T, D)
    assert bool(jnp.all(jnp.isfinite(out)))
    rel_err = float(jnp.sqrt(jnp.sum((out - ref_out) ** 2))
                    / jnp.sqrt(jnp.sum(ref_out ** 2)))
    assert rel_err < 0.05, f"relative error too large: {rel_err}"
    print("KERNEL_OK")
</pallas_src>

<mosaic_0001>
module attributes {stable_mosaic.version = 11 : i64} {
  func.func @encoder_kernel(%arg0: i32, %arg1: i32, %arg2: memref<1x1x16xf32, #tpu.memory_space<vmem>>, %arg3: memref<1x16x128xbf16, #tpu.memory_space<vmem>>, %arg4: memref<1x1x128xf32, #tpu.memory_space<vmem>>, %arg5: memref<1x1x128xf32, #tpu.memory_space<vmem>>, %arg6: memref<1x128x384xbf16, #tpu.memory_space<vmem>>, %arg7: memref<1x1x384xf32, #tpu.memory_space<vmem>>, %arg8: memref<1x128x128xbf16, #tpu.memory_space<vmem>>, %arg9: memref<1x1x128xf32, #tpu.memory_space<vmem>>, %arg10: memref<1x1x128xf32, #tpu.memory_space<vmem>>, %arg11: memref<1x1x128xf32, #tpu.memory_space<vmem>>, %arg12: memref<1x128x256xbf16, #tpu.memory_space<vmem>>, %arg13: memref<1x1x256xf32, #tpu.memory_space<vmem>>, %arg14: memref<1x256x128xbf16, #tpu.memory_space<vmem>>, %arg15: memref<1x1x128xf32, #tpu.memory_space<vmem>>, %arg16: memref<1x128xf32, #tpu.memory_space<vmem>>, %arg17: memref<1x128xf32, #tpu.memory_space<vmem>>, %arg18: memref<1x16x128xbf16, #tpu.memory_space<vmem>>, %arg19: memref<1x16x128xf32, #tpu.memory_space<vmem>>) attributes {dimension_semantics = [#tpu.dimension_semantics<parallel>, #tpu.dimension_semantics<arbitrary>], iteration_bounds = array<i64: 2, 2>, scalar_prefetch = 0 : i64, scratch_operands = 1 : i64, tpu.core_type = #tpu.core_type<tc>, window_params = [{pipeline_mode = #tpu.pipeline_mode<synchronous>, transform_indices = @transform_0, window_bounds = array<i64: 1, 1, 16>}, {pipeline_mode = #tpu.pipeline_mode<synchronous>, transform_indices = @transform_1, window_bounds = array<i64: 1, 16, 128>}, {transform_indices = @transform_2, window_bounds = array<i64: 1, 1, 128>}, {transform_indices = @transform_3, window_bounds = array<i64: 1, 1, 128>}, {transform_indices = @transform_4, window_bounds = array<i64: 1, 128, 384>}, {transform_indices = @transform_5, window_bounds = array<i64: 1, 1, 384>}, {transform_indices = @transform_6, window_bounds = array<i64: 1, 128, 128>}, {transform_indices = @transform_7, window_bounds = array<i64: 1, 1, 128>}, {transform_indices = @transform_8, window_bounds = array<i64: 1, 1, 128>}, {transform_indices = @transform_9, window_bounds = array<i64: 1, 1, 128>}, {transform_indices = @transform_10, window_bounds = array<i64: 1, 128, 256>}, {transform_indices = @transform_11, window_bounds = array<i64: 1, 1, 256>}, {transform_indices = @transform_12, window_bounds = array<i64: 1, 256, 128>}, {transform_indices = @transform_13, window_bounds = array<i64: 1, 1, 128>}, {pipeline_mode = #tpu.pipeline_mode<synchronous>, transform_indices = @transform_14, window_bounds = array<i64: 1, 128>}, {pipeline_mode = #tpu.pipeline_mode<synchronous>, transform_indices = @transform_15, window_bounds = array<i64: 1, 128>}, {transform_indices = @transform_16, window_bounds = array<i64: 1, 16, 128>}]} {
    %c0_i32 = arith.constant 0 : i32
    %0 = arith.cmpi eq, %arg1, %c0_i32 : i32
    %1 = arith.extui %0 : i1 to i32
    %c0_i32_0 = arith.constant 0 : i32
    %2 = arith.cmpi ne, %1, %c0_i32_0 : i32
    scf.if %2 {
      %c0_64 = arith.constant 0 : index
      %c0_65 = arith.constant 0 : index
      %c0_66 = arith.constant 0 : index
      %147 = vector.load %arg3[%c0_64, %c0_65, %c0_66] : memref<1x16x128xbf16, #tpu.memory_space<vmem>>, vector<1x16x128xbf16>
      %148 = arith.extf %147 : vector<1x16x128xbf16> to vector<1x16x128xf32>
      %c0_67 = arith.constant 0 : index
      %c0_68 = arith.constant 0 : index
      %c0_69 = arith.constant 0 : index
      %149 = vector.load %arg19[%c0_67, %c0_68, %c0_69] : memref<1x16x128xf32, #tpu.memory_space<vmem>>, vector<1x16x128xf32>
      tpu.vector_store %arg19[%c0_67, %c0_68, %c0_69], %148 {strides = array<i32>} : memref<1x16x128xf32, #tpu.memory_space<vmem>>, vector<1x16x128xf32>,
    } else {
    }
    %c0 = arith.constant 0 : index
    %c0_1 = arith.constant 0 : index
    %c0_2 = arith.constant 0 : index
    %3 = vector.load %arg19[%c0, %c0_1, %c0_2] : memref<1x16x128xf32, #tpu.memory_space<vmem>>, vector<1x16x128xf32>
    %4 = vector.shape_cast %3 : vector<1x16x128xf32> to vector<16x128xf32>
    %c0_3 = arith.constant 0 : index
    %c0_4 = arith.constant 0 : index
    %c0_5 = arith.constant 0 : index
    %5 = vector.load %arg4[%c0_3, %c0_4, %c0_5] : memref<1x1x128xf32, #tpu.memory_space<vmem>>, vector<1x1x128xf32>
    %6 = vector.shape_cast %5 : vector<1x1x128xf32> to vector<1x128xf32>
    %c0_6 = arith.constant 0 : index
    %c0_7 = arith.constant 0 : index
    %c0_8 = arith.constant 0 : index
    %7 = vector.load %arg5[%c0_6, %c0_7, %c0_8] : memref<1x1x128xf32, #tpu.memory_space<vmem>>, vector<1x1x128xf32>
    %8 = vector.shape_cast %7 : vector<1x1x128xf32> to vector<1x128xf32>
    %cst = arith.constant dense<0.000000e+00> : vector<16xf32>
    %9 = vector.multi_reduction <add>, %4, %cst [1] : vector<16x128xf32> to vector<16xf32>
    %10 = vector.shape_cast %9 : vector<16xf32> to vector<16x1xf32>
    %cst_9 = arith.constant 1.280000e+02 : f32
    %11 = vector.broadcast %cst_9 : f32 to vector<16x1xf32>
    %12 = arith.divf %10, %11 : vector<16x1xf32>
    %13 = vector.broadcast %12 : vector<16x1xf32> to vector<16x128xf32>
    %14 = arith.subf %4, %13 : vector<16x128xf32>
    %15 = arith.mulf %14, %14 : vector<16x128xf32>
    %cst_10 = arith.constant dense<0.000000e+00> : vector<16xf32>
    %16 = vector.multi_reduction <add>, %15, %cst_10 [1] : vector<16x128xf32> to vector<16xf32>
    %17 = vector.shape_cast %16 : vector<16xf32> to vector<16x1xf32>
    %cst_11 = arith.constant 1.280000e+02 : f32
    %18 = vector.broadcast %cst_11 : f32 to vector<16x1xf32>
    %19 = arith.divf %17, %18 : vector<16x1xf32>
    %20 = vector.broadcast %12 : vector<16x1xf32> to vector<16x128xf32>
    %21 = arith.subf %4, %20 : vector<16x128xf32>
    %cst_12 = arith.constant 9.99999974E-6 : f32
    %22 = vector.broadcast %cst_12 : f32 to vector<16x1xf32>
    %23 = arith.addf %19, %22 : vector<16x1xf32>
    %24 = math.rsqrt %23 : vector<16x1xf32>
    %25 = vector.broadcast %24 : vector<16x1xf32> to vector<16x128xf32>
    %26 = arith.mulf %21, %25 : vector<16x128xf32>
    %27 = vector.broadcast %6 : vector<1x128xf32> to vector<16x128xf32>
    %28 = arith.mulf %26, %27 : vector<16x128xf32>
    %29 = vector.broadcast %8 : vector<1x128xf32> to vector<16x128xf32>
    %30 = arith.addf %28, %29 : vector<16x128xf32>
    %31 = arith.truncf %30 : vector<16x128xf32> to vector<16x128xbf16>
    %c0_13 = arith.constant 0 : index
    %c0_14 = arith.constant 0 : index
    %c0_15 = arith.constant 0 : index
    %32 = vector.load %arg6[%c0_13, %c0_14, %c0_15] : memref<1x128x384xbf16, #tpu.memory_space<vmem>>, vector<1x128x384xbf16>
    %33 = vector.shape_cast %32 : vector<1x128x384xbf16> to vector<128x384xbf16>
    %cst_16 = arith.constant dense<0.000000e+00> : vector<16x384xf32>
    %34 = tpu.matmul %31, %33, %cst_16 {dimension_numbers = #tpu.dot_dimension_numbers<[1], [0], [0], [1], [0, 0, 1, 1], [], []>} : vector<16x128xbf16>, vector<128x384xbf16>, vector<16x384xf32> -> vector<16x384xf32>
    %c0_17 = arith.constant 0 : index
    %c0_18 = arith.constant 0 : index
    %c0_19 = arith.constant 0 : index
    %35 = vector.load %arg7[%c0_17, %c0_18, %c0_19] : memref<1x1x384xf32, #tpu.memory_space<vmem>>, vector<1x1x384xf32>
    %36 = vector.shape_cast %35 : vector<1x1x384xf32> to vector<1x384xf32>
    %37 = vector.broadcast %36 : vector<1x384xf32> to vector<16x384xf32>
    %38 = arith.addf %34, %37 : vector<16x384xf32>
    %39 = vector.extract_strided_slice %38 {offsets = [0, 0], sizes = [16, 128], strides = [1, 1]} : vector<16x384xf32> to vector<16x128xf32>
    %40 = vector.shape_cast %39 : vector<16x128xf32> to vector<1x16x128xf32>
    %41 = arith.truncf %40 : vector<1x16x128xf32> to vector<1x16x128xbf16>
    %42 = vector.extract_strided_slice %38 {offsets = [0, 128], sizes = [16, 128], strides = [1, 1]} : vector<16x384xf32> to vector<16x128xf32>
    %43 = vector.shape_cast %42 : vector<16x128xf32> to vector<1x16x128xf32>
    %44 = arith.truncf %43 : vector<1x16x128xf32> to vector<1x16x128xbf16>
    %45 = vector.extract_strided_slice %38 {offsets = [0, 256], sizes = [16, 128], strides = [1, 1]} : vector<16x384xf32> to vector<16x128xf32>
    %46 = vector.shape_cast %45 : vector<16x128xf32> to vector<1x16x128xf32>
    %47 = arith.truncf %46 : vector<1x16x128xf32> to vector<1x16x128xbf16>
    %c0_20 = arith.constant 0 : index
    %c0_21 = arith.constant 0 : index
    %c0_22 = arith.constant 0 : index
    %48 = vector.load %arg2[%c0_20, %c0_21, %c0_22] : memref<1x1x16xf32, #tpu.memory_space<vmem>>, vector<1x1x16xf32>
    %c0_23 = arith.constant 0 : index
    %c0_24 = arith.constant 0 : index
    %c0_25 = arith.constant 0 : index
    %49 = vector.load %arg8[%c0_23, %c0_24, %c0_25] : memref<1x128x128xbf16, #tpu.memory_space<vmem>>, vector<1x128x128xbf16>
    %50 = vector.shape_cast %49 : vector<1x128x128xbf16> to vector<128x128xbf16>
    %c0_26 = arith.constant 0 : index
    %c0_27 = arith.constant 0 : index
    %c0_28 = arith.constant 0 : index
    %51 = vector.load %arg9[%c0_26, %c0_27, %c0_28] : memref<1x1x128xf32, #tpu.memory_space<vmem>>, vector<1x1x128xf32>
    %52 = vector.shape_cast %51 : vector<1x1x128xf32> to vector<1x128xf32>
    %53 = vector.extract_strided_slice %41 {offsets = [0, 0, 0], sizes = [1, 16, 32], strides = [1, 1, 1]} : vector<1x16x128xbf16> to vector<1x16x32xbf16>
    %54 = vector.extract_strided_slice %41 {offsets = [0, 0, 32], sizes = [1, 16, 32], strides = [1, 1, 1]} : vector<1x16x128xbf16> to vector<1x16x32xbf16>
    %55 = vector.extract_strided_slice %41 {offsets = [0, 0, 64], sizes = [1, 16, 32], strides = [1, 1, 1]} : vector<1x16x128xbf16> to vector<1x16x32xbf16>
    %56 = vector.extract_strided_slice %41 {offsets = [0, 0, 96], sizes = [1, 16, 32], strides = [1, 1, 1]} : vector<1x16x128xbf16> to vector<1x16x32xbf16>
    %57 = tpu.concatenate %53, %54, %55, %56 in 0 : vector<1x16x32xbf16>, vector<1x16x32xbf16>, vector<1x16x32xbf16>, vector<1x16x32xbf16> -> vector<4x16x32xbf16>
    %58 = vector.extract_strided_slice %44 {offsets = [0, 0, 0], sizes = [1, 16, 32], strides = [1, 1, 1]} : vector<1x16x128xbf16> to vector<1x16x32xbf16>
    %59 = vector.extract_strided_slice %44 {offsets = [0, 0, 32], sizes = [1, 16, 32], strides = [1, 1, 1]} : vector<1x16x128xbf16> to vector<1x16x32xbf16>
    %60 = vector.extract_strided_slice %44 {offsets = [0, 0, 64], sizes = [1, 16, 32], strides = [1, 1, 1]} : vector<1x16x128xbf16> to vector<1x16x32xbf16>
    %61 = vector.extract_strided_slice %44 {offsets = [0, 0, 96], sizes = [1, 16, 32], strides = [1, 1, 1]} : vector<1x16x128xbf16> to vector<1x16x32xbf16>
    %62 = tpu.concatenate %58, %59, %60, %61 in 0 : vector<1x16x32xbf16>, vector<1x16x32xbf16>, vector<1x16x32xbf16>, vector<1x16x32xbf16> -> vector<4x16x32xbf16>
    %63 = vector.extract_strided_slice %47 {offsets = [0, 0, 0], sizes = [1, 16, 32], strides = [1, 1, 1]} : vector<1x16x128xbf16> to vector<1x16x32xbf16>
    %64 = vector.extract_strided_slice %47 {offsets = [0, 0, 32], sizes = [1, 16, 32], strides = [1, 1, 1]} : vector<1x16x128xbf16> to vector<1x16x32xbf16>
    %65 = vector.extract_strided_slice %47 {offsets = [0, 0, 64], sizes = [1, 16, 32], strides = [1, 1, 1]} : vector<1x16x128xbf16> to vector<1x16x32xbf16>
    %66 = vector.extract_strided_slice %47 {offsets = [0, 0, 96], sizes = [1, 16, 32], strides = [1, 1, 1]} : vector<1x16x128xbf16> to vector<1x16x32xbf16>
    %67 = tpu.concatenate %63, %64, %65, %66 in 0 : vector<1x16x32xbf16>, vector<1x16x32xbf16>, vector<1x16x32xbf16>, vector<1x16x32xbf16> -> vector<4x16x32xbf16>
    %cst_29 = arith.constant dense<0.000000e+00> : vector<4x16x16xf32>
    %68 = tpu.matmul %57, %62, %cst_29 {dimension_numbers = #tpu.dot_dimension_numbers<[2], [2], [1], [1], [0, 0, 0, 1, 1, 1], [0], [0]>} : vector<4x16x32xbf16>, vector<4x16x32xbf16>, vector<4x16x16xf32> -> vector<4x16x16xf32>
    %69 = vector.shape_cast %68 : vector<4x16x16xf32> to vector<4x1x16x16xf32>
    %70 = vector.shape_cast %48 : vector<1x1x16xf32> to vector<1x1x1x16xf32>
    %71 = vector.broadcast %70 : vector<1x1x1x16xf32> to vector<4x1x16x16xf32>
    %72 = arith.addf %69, %71 : vector<4x1x16x16xf32>
    %73 = vector.shape_cast %72 : vector<4x1x16x16xf32> to vector<4x16x16xf32>
    %cst_30 = arith.constant dense<0xFF800000> : vector<4x16xf32>
    %74 = vector.multi_reduction <maximumf>, %73, %cst_30 [2] : vector<4x16x16xf32> to vector<4x16xf32>
    %75 = vector.shape_cast %74 : vector<4x16xf32> to vector<4x16x1xf32>
    %76 = vector.broadcast %75 : vector<4x16x1xf32> to vector<4x16x16xf32>
    %77 = arith.subf %73, %76 : vector<4x16x16xf32>
    %78 = math.exp %77 : vector<4x16x16xf32>
    %cst_31 = arith.constant dense<0.000000e+00> : vector<4x16xf32>
    %79 = vector.multi_reduction <add>, %78, %cst_31 [2] : vector<4x16x16xf32> to vector<4x16xf32>
    %80 = vector.shape_cast %79 : vector<4x16xf32> to vector<4x16x1xf32>
    %81 = tpu.reciprocal %80 {approx = true} : vector<4x16x1xf32> -> vector<4x16x1xf32>
    %82 = vector.broadcast %81 : vector<4x16x1xf32> to vector<4x16x16xf32>
    %83 = arith.mulf %78, %82 : vector<4x16x16xf32>
    %84 = arith.truncf %83 : vector<4x16x16xf32> to vector<4x16x16xbf16>
    %cst_32 = arith.constant dense<0.000000e+00> : vector<4x16x32xf32>
    %85 = tpu.matmul %84, %67, %cst_32 {dimension_numbers = #tpu.dot_dimension_numbers<[2], [1], [1], [2], [0, 0, 0, 1, 1, 2], [0], [0]>} : vector<4x16x16xbf16>, vector<4x16x32xbf16>, vector<4x16x32xf32> -> vector<4x16x32xf32>
    %86 = vector.extract_strided_slice %85 {offsets = [0, 0, 0], sizes = [1, 16, 32], strides = [1, 1, 1]} : vector<4x16x32xf32> to vector<1x16x32xf32>
    %87 = vector.extract_strided_slice %85 {offsets = [1, 0, 0], sizes = [1, 16, 32], strides = [1, 1, 1]} : vector<4x16x32xf32> to vector<1x16x32xf32>
    %88 = vector.extract_strided_slice %85 {offsets = [2, 0, 0], sizes = [1, 16, 32], strides = [1, 1, 1]} : vector<4x16x32xf32> to vector<1x16x32xf32>
    %89 = vector.extract_strided_slice %85 {offsets = [3, 0, 0], sizes = [1, 16, 32], strides = [1, 1, 1]} : vector<4x16x32xf32> to vector<1x16x32xf32>
    %90 = tpu.concatenate %86, %87, %88, %89 in 2 : vector<1x16x32xf32>, vector<1x16x32xf32>, vector<1x16x32xf32>, vector<1x16x32xf32> -> vector<1x16x128xf32>
    %91 = vector.shape_cast %90 : vector<1x16x128xf32> to vector<16x128xf32>
    %92 = arith.truncf %91 : vector<16x128xf32> to vector<16x128xbf16>
    %cst_33 = arith.constant dense<0.000000e+00> : vector<16x128xf32>
    %93 = tpu.matmul %92, %50, %cst_33 {dimension_numbers = #tpu.dot_dimension_numbers<[1], [0], [0], [1], [0, 0, 1, 1], [], []>} : vector<16x128xbf16>, vector<128x128xbf16>, vector<16x128xf32> -> vector<16x128xf32>
    %94 = vector.broadcast %52 : vector<1x128xf32> to vector<16x128xf32>
    %95 = arith.addf %93, %94 : vector<16x128xf32>
    %96 = arith.addf %4, %95 : vector<16x128xf32>
    %c0_34 = arith.constant 0 : index
    %c0_35 = arith.constant 0 : index
    %c0_36 = arith.constant 0 : index
    %97 = vector.load %arg10[%c0_34, %c0_35, %c0_36] : memref<1x1x128xf32, #tpu.memory_space<vmem>>, vector<1x1x128xf32>
    %98 = vector.shape_cast %97 : vector<1x1x128xf32> to vector<1x128xf32>
    %c0_37 = arith.constant 0 : index
    %c0_38 = arith.constant 0 : index
    %c0_39 = arith.constant 0 : index
    %99 = vector.load %arg11[%c0_37, %c0_38, %c0_39] : memref<1x1x128xf32, #tpu.memory_space<vmem>>, vector<1x1x128xf32>
    %100 = vector.shape_cast %99 : vector<1x1x128xf32> to vector<1x128xf32>
    %cst_40 = arith.constant dense<0.000000e+00> : vector<16xf32>
    %101 = vector.multi_reduction <add>, %96, %cst_40 [1] : vector<16x128xf32> to vector<16xf32>
    %102 = vector.shape_cast %101 : vector<16xf32> to vector<16x1xf32>
    %cst_41 = arith.constant 1.280000e+02 : f32
    %103 = vector.broadcast %cst_41 : f32 to vector<16x1xf32>
    %104 = arith.divf %102, %103 : vector<16x1xf32>
    %105 = vector.broadcast %104 : vector<16x1xf32> to vector<16x128xf32>
    %106 = arith.subf %96, %105 : vector<16x128xf32>
    %107 = arith.mulf %106, %106 : vector<16x128xf32>
    %cst_42 = arith.constant dense<0.000000e+00> : vector<16xf32>
    %108 = vector.multi_reduction <add>, %107, %cst_42 [1] : vector<16x128xf32> to vector<16xf32>
    %109 = vector.shape_cast %108 : vector<16xf32> to vector<16x1xf32>
    %cst_43 = arith.constant 1.280000e+02 : f32
    %110 = vector.broadcast %cst_43 : f32 to vector<16x1xf32>
    %111 = arith.divf %109, %110 : vector<16x1xf32>
    %112 = vector.broadcast %104 : vector<16x1xf32> to vector<16x128xf32>
    %113 = arith.subf %96, %112 : vector<16x128xf32>
    %cst_44 = arith.constant 9.99999974E-6 : f32
    %114 = vector.broadcast %cst_44 : f32 to vector<16x1xf32>
    %115 = arith.addf %111, %114 : vector<16x1xf32>
    %116 = math.rsqrt %115 : vector<16x1xf32>
    %117 = vector.broadcast %116 : vector<16x1xf32> to vector<16x128xf32>
    %118 = arith.mulf %113, %117 : vector<16x128xf32>
    %119 = vector.broadcast %98 : vector<1x128xf32> to vector<16x128xf32>
    %120 = arith.mulf %118, %119 : vector<16x128xf32>
    %121 = vector.broadcast %100 : vector<1x128xf32> to vector<16x128xf32>
    %122 = arith.addf %120, %121 : vector<16x128xf32>
    %123 = arith.truncf %122 : vector<16x128xf32> to vector<16x128xbf16>
    %c0_45 = arith.constant 0 : index
    %c0_46 = arith.constant 0 : index
    %c0_47 = arith.constant 0 : index
    %124 = vector.load %arg12[%c0_45, %c0_46, %c0_47] : memref<1x128x256xbf16, #tpu.memory_space<vmem>>, vector<1x128x256xbf16>
    %125 = vector.shape_cast %124 : vector<1x128x256xbf16> to vector<128x256xbf16>
    %cst_48 = arith.constant dense<0.000000e+00> : vector<16x256xf32>
    %126 = tpu.matmul %123, %125, %cst_48 {dimension_numbers = #tpu.dot_dimension_numbers<[1], [0], [0], [1], [0, 0, 1, 1], [], []>} : vector<16x128xbf16>, vector<128x256xbf16>, vector<16x256xf32> -> vector<16x256xf32>
    %c0_49 = arith.constant 0 : index
    %c0_50 = arith.constant 0 : index
    %c0_51 = arith.constant 0 : index
    %127 = vector.load %arg13[%c0_49, %c0_50, %c0_51] : memref<1x1x256xf32, #tpu.memory_space<vmem>>, vector<1x1x256xf32>
    %128 = vector.shape_cast %127 : vector<1x1x256xf32> to vector<1x256xf32>
    %129 = vector.broadcast %128 : vector<1x256xf32> to vector<16x256xf32>
    %130 = arith.addf %126, %129 : vector<16x256xf32>
    %cst_52 = arith.constant 0.000000e+00 : f32
    %131 = vector.broadcast %cst_52 : f32 to vector<16x256xf32>
    %132 = arith.maximumf %130, %131 : vector<16x256xf32>
    %133 = arith.truncf %132 : vector<16x256xf32> to vector<16x256xbf16>
    %c0_53 = arith.constant 0 : index
    %c0_54 = arith.constant 0 : index
    %c0_55 = arith.constant 0 : index
    %134 = vector.load %arg14[%c0_53, %c0_54, %c0_55] : memref<1x256x128xbf16, #tpu.memory_space<vmem>>, vector<1x256x128xbf16>
    %135 = vector.shape_cast %134 : vector<1x256x128xbf16> to vector<256x128xbf16>
    %cst_56 = arith.constant dense<0.000000e+00> : vector<16x128xf32>
    %136 = tpu.matmul %133, %135, %cst_56 {dimension_numbers = #tpu.dot_dimension_numbers<[1], [0], [0], [1], [0, 0, 1, 1], [], []>} : vector<16x256xbf16>, vector<256x128xbf16>, vector<16x128xf32> -> vector<16x128xf32>
    %137 = arith.addf %96, %136 : vector<16x128xf32>
    %c0_57 = arith.constant 0 : index
    %c0_58 = arith.constant 0 : index
    %c0_59 = arith.constant 0 : index
    %138 = vector.load %arg15[%c0_57, %c0_58, %c0_59] : memref<1x1x128xf32, #tpu.memory_space<vmem>>, vector<1x1x128xf32>
    %139 = vector.shape_cast %138 : vector<1x1x128xf32> to vector<1x128xf32>
    %140 = vector.broadcast %139 : vector<1x128xf32> to vector<16x128xf32>
    %141 = arith.addf %137, %140 : vector<16x128xf32>
    %142 = vector.shape_cast %141 : vector<16x128xf32> to vector<1x16x128xf32>
    %c0_60 = arith.constant 0 : index
    %c0_61 = arith.constant 0 : index
    %c0_62 = arith.constant 0 : index
    %143 = vector.load %arg19[%c0_60, %c0_61, %c0_62] : memref<1x16x128xf32, #tpu.memory_space<vmem>>, vector<1x16x128xf32>
    tpu.vector_store %arg19[%c0_60, %c0_61, %c0_62], %142 {strides = array<i32>} : memref<1x16x128xf32, #tpu.memory_space<vmem>>, vector<1x16x128xf32>,
    %c1_i32 = arith.constant 1 : i32
    %144 = arith.cmpi eq, %arg1, %c1_i32 : i32
    %145 = arith.extui %144 : i1 to i32
    %c0_i32_63 = arith.constant 0 : i32
    %146 = arith.cmpi ne, %145, %c0_i32_63 : i32
    scf.if %146 {
      %c0_64 = arith.constant 0 : index
      %c0_65 = arith.constant 0 : index
      %147 = vector.load %arg16[%c0_64, %c0_65] : memref<1x128xf32, #tpu.memory_space<vmem>>, vector<1x128xf32>
      %c0_66 = arith.constant 0 : index
      %c0_67 = arith.constant 0 : index
      %148 = vector.load %arg17[%c0_66, %c0_67] : memref<1x128xf32, #tpu.memory_space<vmem>>, vector<1x128xf32>
      %cst_68 = arith.constant dense<0.000000e+00> : vector<16xf32>
      %149 = vector.multi_reduction <add>, %141, %cst_68 [1] : vector<16x128xf32> to vector<16xf32>
      %150 = vector.shape_cast %149 : vector<16xf32> to vector<16x1xf32>
      %cst_69 = arith.constant 1.280000e+02 : f32
      %151 = vector.broadcast %cst_69 : f32 to vector<16x1xf32>
      %152 = arith.divf %150, %151 : vector<16x1xf32>
      %153 = vector.broadcast %152 : vector<16x1xf32> to vector<16x128xf32>
      %154 = arith.subf %141, %153 : vector<16x128xf32>
      %155 = arith.mulf %154, %154 : vector<16x128xf32>
      %cst_70 = arith.constant dense<0.000000e+00> : vector<16xf32>
      %156 = vector.multi_reduction <add>, %155, %cst_70 [1] : vector<16x128xf32> to vector<16xf32>
      %157 = vector.shape_cast %156 : vector<16xf32> to vector<16x1xf32>
      %cst_71 = arith.constant 1.280000e+02 : f32
      %158 = vector.broadcast %cst_71 : f32 to vector<16x1xf32>
      %159 = arith.divf %157, %158 : vector<16x1xf32>
      %160 = vector.broadcast %152 : vector<16x1xf32> to vector<16x128xf32>
      %161 = arith.subf %141, %160 : vector<16x128xf32>
      %cst_72 = arith.constant 9.99999974E-6 : f32
      %162 = vector.broadcast %cst_72 : f32 to vector<16x1xf32>
      %163 = arith.addf %159, %162 : vector<16x1xf32>
      %164 = math.rsqrt %163 : vector<16x1xf32>
      %165 = vector.broadcast %164 : vector<16x1xf32> to vector<16x128xf32>
      %166 = arith.mulf %161, %165 : vector<16x128xf32>
      %167 = vector.broadcast %147 : vector<1x128xf32> to vector<16x128xf32>
      %168 = arith.mulf %166, %167 : vector<16x128xf32>
      %169 = vector.broadcast %148 : vector<1x128xf32> to vector<16x128xf32>
      %170 = arith.addf %168, %169 : vector<16x128xf32>
      %171 = vector.shape_cast %170 : vector<16x128xf32> to vector<1x16x128xf32>
      %172 = arith.truncf %171 : vector<1x16x128xf32> to vector<1x16x128xbf16>
      %c0_73 = arith.constant 0 : index
      %c0_74 = arith.constant 0 : index
      %c0_75 = arith.constant 0 : index
      %173 = vector.load %arg18[%c0_73, %c0_74, %c0_75] : memref<1x16x128xbf16, #tpu.memory_space<vmem>>, vector<1x16x128xbf16>
      tpu.vector_store %arg18[%c0_73, %c0_74, %c0_75], %172 {strides = array<i32>} : memref<1x16x128xbf16, #tpu.memory_space<vmem>>, vector<1x16x128xbf16>,
    } else {
    }
    return
  }
  func.func @transform_0(%arg0: i32, %arg1: i32) -> (i32, i32, i32) {
    %c0_i32 = arith.constant 0 : i32
    %c0_i32_0 = arith.constant 0 : i32
    %c0_i32_1 = arith.constant 0 : i32
    return %arg0, %c0_i32, %c0_i32_0 : i32, i32, i32
  }
  func.func @transform_1(%arg0: i32, %arg1: i32) -> (i32, i32, i32) {
    %c0_i32 = arith.constant 0 : i32
    %c0_i32_0 = arith.constant 0 : i32
    %c0_i32_1 = arith.constant 0 : i32
    return %arg0, %c0_i32, %c0_i32_0 : i32, i32, i32
  }
  func.func @transform_2(%arg0: i32, %arg1: i32) -> (i32, i32, i32) {
    %c0_i32 = arith.constant 0 : i32
    %c0_i32_0 = arith.constant 0 : i32
    %c0_i32_1 = arith.constant 0 : i32
    return %arg1, %c0_i32, %c0_i32_0 : i32, i32, i32
  }
  func.func @transform_3(%arg0: i32, %arg1: i32) -> (i32, i32, i32) {
    %c0_i32 = arith.constant 0 : i32
    %c0_i32_0 = arith.constant 0 : i32
    %c0_i32_1 = arith.constant 0 : i32
    return %arg1, %c0_i32, %c0_i32_0 : i32, i32, i32
  }
  func.func @transform_4(%arg0: i32, %arg1: i32) -> (i32, i32, i32) {
    %c0_i32 = arith.constant 0 : i32
    %c0_i32_0 = arith.constant 0 : i32
    %c0_i32_1 = arith.constant 0 : i32
    return %arg1, %c0_i32, %c0_i32_0 : i32, i32, i32
  }
  func.func @transform_5(%arg0: i32, %arg1: i32) -> (i32, i32, i32) {
    %c0_i32 = arith.constant 0 : i32
    %c0_i32_0 = arith.constant 0 : i32
    %c0_i32_1 = arith.constant 0 : i32
    return %arg1, %c0_i32, %c0_i32_0 : i32, i32, i32
  }
  func.func @transform_6(%arg0: i32, %arg1: i32) -> (i32, i32, i32) {
    %c0_i32 = arith.constant 0 : i32
    %c0_i32_0 = arith.constant 0 : i32
    %c0_i32_1 = arith.constant 0 : i32
    return %arg1, %c0_i32, %c0_i32_0 : i32, i32, i32
  }
  func.func @transform_7(%arg0: i32, %arg1: i32) -> (i32, i32, i32) {
    %c0_i32 = arith.constant 0 : i32
    %c0_i32_0 = arith.constant 0 : i32
    %c0_i32_1 = arith.constant 0 : i32
    return %arg1, %c0_i32, %c0_i32_0 : i32, i32, i32
  }
  func.func @transform_8(%arg0: i32, %arg1: i32) -> (i32, i32, i32) {
    %c0_i32 = arith.constant 0 : i32
    %c0_i32_0 = arith.constant 0 : i32
    %c0_i32_1 = arith.constant 0 : i32
    return %arg1, %c0_i32, %c0_i32_0 : i32, i32, i32
  }
  func.func @transform_9(%arg0: i32, %arg1: i32) -> (i32, i32, i32) {
    %c0_i32 = arith.constant 0 : i32
    %c0_i32_0 = arith.constant 0 : i32
    %c0_i32_1 = arith.constant 0 : i32
    return %arg1, %c0_i32, %c0_i32_0 : i32, i32, i32
  }
  func.func @transform_10(%arg0: i32, %arg1: i32) -> (i32, i32, i32) {
    %c0_i32 = arith.constant 0 : i32
    %c0_i32_0 = arith.constant 0 : i32
    %c0_i32_1 = arith.constant 0 : i32
    return %arg1, %c0_i32, %c0_i32_0 : i32, i32, i32
  }
  func.func @transform_11(%arg0: i32, %arg1: i32) -> (i32, i32, i32) {
    %c0_i32 = arith.constant 0 : i32
    %c0_i32_0 = arith.constant 0 : i32
    %c0_i32_1 = arith.constant 0 : i32
    return %arg1, %c0_i32, %c0_i32_0 : i32, i32, i32
  }
  func.func @transform_12(%arg0: i32, %arg1: i32) -> (i32, i32, i32) {
    %c0_i32 = arith.constant 0 : i32
    %c0_i32_0 = arith.constant 0 : i32
    %c0_i32_1 = arith.constant 0 : i32
    return %arg1, %c0_i32, %c0_i32_0 : i32, i32, i32
  }
  func.func @transform_13(%arg0: i32, %arg1: i32) -> (i32, i32, i32) {
    %c0_i32 = arith.constant 0 : i32
    %c0_i32_0 = arith.constant 0 : i32
    %c0_i32_1 = arith.constant 0 : i32
    return %arg1, %c0_i32, %c0_i32_0 : i32, i32, i32
  }
  func.func @transform_14(%arg0: i32, %arg1: i32) -> (i32, i32) {
    %c0_i32 = arith.constant 0 : i32
    %c0_i32_0 = arith.constant 0 : i32
    %c0_i32_1 = arith.constant 0 : i32
    return %c0_i32, %c0_i32_0 : i32, i32
  }
  func.func @transform_15(%arg0: i32, %arg1: i32) -> (i32, i32) {
    %c0_i32 = arith.constant 0 : i32
    %c0_i32_0 = arith.constant 0 : i32
    %c0_i32_1 = arith.constant 0 : i32
    return %c0_i32, %c0_i32_0 : i32, i32
  }
  func.func @transform_16(%arg0: i32, %arg1: i32) -> (i32, i32, i32) {
    %c0_i32 = arith.constant 0 : i32
    %c0_i32_0 = arith.constant 0 : i32
    %c0_i32_1 = arith.constant 0 : i32
    return %arg0, %c0_i32, %c0_i32_0 : i32, i32, i32
  }
}

module attributes {stable_mosaic.version = 11 : i64} {
  func.func @encoder_kernel(%arg0: i32, %arg1: i32, %arg2: memref<1x1x16xf32, #tpu.memory_space<vmem>>, %arg3: memref<1x16x128xbf16, #tpu.memory_space<vmem>>, %arg4: memref<1x1x128xf32, #tpu.memory_space<vmem>>, %arg5: memref<1x1x128xf32, #tpu.memory_space<vmem>>, %arg6: memref<1x128x384xbf16, #tpu.memory_space<vmem>>, %arg7: memref<1x1x384xf32, #tpu.memory_space<vmem>>, %arg8: memref<1x128x128xbf16, #tpu.memory_space<vmem>>, %arg9: memref<1x1x128xf32, #tpu.memory_space<vmem>>, %arg10: memref<1x1x128xf32, #tpu.memory_space<vmem>>, %arg11: memref<1x1x128xf32, #tpu.memory_space<vmem>>, %arg12: memref<1x128x256xbf16, #tpu.memory_space<vmem>>, %arg13: memref<1x1x256xf32, #tpu.memory_space<vmem>>, %arg14: memref<1x256x128xbf16, #tpu.memory_space<vmem>>, %arg15: memref<1x1x128xf32, #tpu.memory_space<vmem>>, %arg16: memref<1x128xf32, #tpu.memory_space<vmem>>, %arg17: memref<1x128xf32, #tpu.memory_space<vmem>>, %arg18: memref<1x16x128xbf16, #tpu.memory_space<vmem>>, %arg19: memref<1x16x128xf32, #tpu.memory_space<vmem>>) attributes {dimension_semantics = [#tpu.dimension_semantics<parallel>, #tpu.dimension_semantics<arbitrary>], iteration_bounds = array<i64: 2, 2>, scalar_prefetch = 0 : i64, scratch_operands = 1 : i64, tpu.core_type = #tpu.core_type<tc>, window_params = [{transform_indices = @transform_0, window_bounds = array<i64: 1, 1, 16>}, {transform_indices = @transform_1, window_bounds = array<i64: 1, 16, 128>}, {transform_indices = @transform_2, window_bounds = array<i64: 1, 1, 128>}, {transform_indices = @transform_3, window_bounds = array<i64: 1, 1, 128>}, {transform_indices = @transform_4, window_bounds = array<i64: 1, 128, 384>}, {transform_indices = @transform_5, window_bounds = array<i64: 1, 1, 384>}, {transform_indices = @transform_6, window_bounds = array<i64: 1, 128, 128>}, {transform_indices = @transform_7, window_bounds = array<i64: 1, 1, 128>}, {transform_indices = @transform_8, window_bounds = array<i64: 1, 1, 128>}, {transform_indices = @transform_9, window_bounds = array<i64: 1, 1, 128>}, {transform_indices = @transform_10, window_bounds = array<i64: 1, 128, 256>}, {transform_indices = @transform_11, window_bounds = array<i64: 1, 1, 256>}, {transform_indices = @transform_12, window_bounds = array<i64: 1, 256, 128>}, {transform_indices = @transform_13, window_bounds = array<i64: 1, 1, 128>}, {pipeline_mode = #tpu.pipeline_mode<synchronous>, transform_indices = @transform_14, window_bounds = array<i64: 1, 128>}, {pipeline_mode = #tpu.pipeline_mode<synchronous>, transform_indices = @transform_15, window_bounds = array<i64: 1, 128>}, {transform_indices = @transform_16, window_bounds = array<i64: 1, 16, 128>}]} {
    %c0_i32 = arith.constant 0 : i32
    %0 = arith.cmpi eq, %arg1, %c0_i32 : i32
    %1 = arith.extui %0 : i1 to i32
    %c0_i32_0 = arith.constant 0 : i32
    %2 = arith.cmpi ne, %1, %c0_i32_0 : i32
    scf.if %2 {
      %c0_64 = arith.constant 0 : index
      %c0_65 = arith.constant 0 : index
      %c0_66 = arith.constant 0 : index
      %147 = vector.load %arg3[%c0_64, %c0_65, %c0_66] : memref<1x16x128xbf16, #tpu.memory_space<vmem>>, vector<1x16x128xbf16>
      %148 = arith.extf %147 : vector<1x16x128xbf16> to vector<1x16x128xf32>
      %c0_67 = arith.constant 0 : index
      %c0_68 = arith.constant 0 : index
      %c0_69 = arith.constant 0 : index
      %149 = vector.load %arg19[%c0_67, %c0_68, %c0_69] : memref<1x16x128xf32, #tpu.memory_space<vmem>>, vector<1x16x128xf32>
      tpu.vector_store %arg19[%c0_67, %c0_68, %c0_69], %148 {strides = array<i32>} : memref<1x16x128xf32, #tpu.memory_space<vmem>>, vector<1x16x128xf32>,
    } else {
    }
    %c0 = arith.constant 0 : index
    %c0_1 = arith.constant 0 : index
    %c0_2 = arith.constant 0 : index
    %3 = vector.load %arg19[%c0, %c0_1, %c0_2] : memref<1x16x128xf32, #tpu.memory_space<vmem>>, vector<1x16x128xf32>
    %4 = vector.shape_cast %3 : vector<1x16x128xf32> to vector<16x128xf32>
    %c0_3 = arith.constant 0 : index
    %c0_4 = arith.constant 0 : index
    %c0_5 = arith.constant 0 : index
    %5 = vector.load %arg4[%c0_3, %c0_4, %c0_5] : memref<1x1x128xf32, #tpu.memory_space<vmem>>, vector<1x1x128xf32>
    %6 = vector.shape_cast %5 : vector<1x1x128xf32> to vector<1x128xf32>
    %c0_6 = arith.constant 0 : index
    %c0_7 = arith.constant 0 : index
    %c0_8 = arith.constant 0 : index
    %7 = vector.load %arg5[%c0_6, %c0_7, %c0_8] : memref<1x1x128xf32, #tpu.memory_space<vmem>>, vector<1x1x128xf32>
    %8 = vector.shape_cast %7 : vector<1x1x128xf32> to vector<1x128xf32>
    %cst = arith.constant dense<0.000000e+00> : vector<16xf32>
    %9 = vector.multi_reduction <add>, %4, %cst [1] : vector<16x128xf32> to vector<16xf32>
    %10 = vector.shape_cast %9 : vector<16xf32> to vector<16x1xf32>
    %cst_9 = arith.constant 1.280000e+02 : f32
    %11 = vector.broadcast %cst_9 : f32 to vector<16x1xf32>
    %12 = arith.divf %10, %11 : vector<16x1xf32>
    %13 = vector.broadcast %12 : vector<16x1xf32> to vector<16x128xf32>
    %14 = arith.subf %4, %13 : vector<16x128xf32>
    %15 = arith.mulf %14, %14 : vector<16x128xf32>
    %cst_10 = arith.constant dense<0.000000e+00> : vector<16xf32>
    %16 = vector.multi_reduction <add>, %15, %cst_10 [1] : vector<16x128xf32> to vector<16xf32>
    %17 = vector.shape_cast %16 : vector<16xf32> to vector<16x1xf32>
    %cst_11 = arith.constant 1.280000e+02 : f32
    %18 = vector.broadcast %cst_11 : f32 to vector<16x1xf32>
    %19 = arith.divf %17, %18 : vector<16x1xf32>
    %20 = vector.broadcast %12 : vector<16x1xf32> to vector<16x128xf32>
    %21 = arith.subf %4, %20 : vector<16x128xf32>
    %cst_12 = arith.constant 9.99999974E-6 : f32
    %22 = vector.broadcast %cst_12 : f32 to vector<16x1xf32>
    %23 = arith.addf %19, %22 : vector<16x1xf32>
    %24 = math.rsqrt %23 : vector<16x1xf32>
    %25 = vector.broadcast %24 : vector<16x1xf32> to vector<16x128xf32>
    %26 = arith.mulf %21, %25 : vector<16x128xf32>
    %27 = vector.broadcast %6 : vector<1x128xf32> to vector<16x128xf32>
    %28 = arith.mulf %26, %27 : vector<16x128xf32>
    %29 = vector.broadcast %8 : vector<1x128xf32> to vector<16x128xf32>
    %30 = arith.addf %28, %29 : vector<16x128xf32>
    %31 = arith.truncf %30 : vector<16x128xf32> to vector<16x128xbf16>
    %c0_13 = arith.constant 0 : index
    %c0_14 = arith.constant 0 : index
    %c0_15 = arith.constant 0 : index
    %32 = vector.load %arg6[%c0_13, %c0_14, %c0_15] : memref<1x128x384xbf16, #tpu.memory_space<vmem>>, vector<1x128x384xbf16>
    %33 = vector.shape_cast %32 : vector<1x128x384xbf16> to vector<128x384xbf16>
    %cst_16 = arith.constant dense<0.000000e+00> : vector<16x384xf32>
    %34 = tpu.matmul %31, %33, %cst_16 {dimension_numbers = #tpu.dot_dimension_numbers<[1], [0], [0], [1], [0, 0, 1, 1], [], []>} : vector<16x128xbf16>, vector<128x384xbf16>, vector<16x384xf32> -> vector<16x384xf32>
    %c0_17 = arith.constant 0 : index
    %c0_18 = arith.constant 0 : index
    %c0_19 = arith.constant 0 : index
    %35 = vector.load %arg7[%c0_17, %c0_18, %c0_19] : memref<1x1x384xf32, #tpu.memory_space<vmem>>, vector<1x1x384xf32>
    %36 = vector.shape_cast %35 : vector<1x1x384xf32> to vector<1x384xf32>
    %37 = vector.broadcast %36 : vector<1x384xf32> to vector<16x384xf32>
    %38 = arith.addf %34, %37 : vector<16x384xf32>
    %39 = vector.extract_strided_slice %38 {offsets = [0, 0], sizes = [16, 128], strides = [1, 1]} : vector<16x384xf32> to vector<16x128xf32>
    %40 = vector.shape_cast %39 : vector<16x128xf32> to vector<1x16x128xf32>
    %41 = arith.truncf %40 : vector<1x16x128xf32> to vector<1x16x128xbf16>
    %42 = vector.extract_strided_slice %38 {offsets = [0, 128], sizes = [16, 128], strides = [1, 1]} : vector<16x384xf32> to vector<16x128xf32>
    %43 = vector.shape_cast %42 : vector<16x128xf32> to vector<1x16x128xf32>
    %44 = arith.truncf %43 : vector<1x16x128xf32> to vector<1x16x128xbf16>
    %45 = vector.extract_strided_slice %38 {offsets = [0, 256], sizes = [16, 128], strides = [1, 1]} : vector<16x384xf32> to vector<16x128xf32>
    %46 = vector.shape_cast %45 : vector<16x128xf32> to vector<1x16x128xf32>
    %47 = arith.truncf %46 : vector<1x16x128xf32> to vector<1x16x128xbf16>
    %c0_20 = arith.constant 0 : index
    %c0_21 = arith.constant 0 : index
    %c0_22 = arith.constant 0 : index
    %48 = vector.load %arg2[%c0_20, %c0_21, %c0_22] : memref<1x1x16xf32, #tpu.memory_space<vmem>>, vector<1x1x16xf32>
    %c0_23 = arith.constant 0 : index
    %c0_24 = arith.constant 0 : index
    %c0_25 = arith.constant 0 : index
    %49 = vector.load %arg8[%c0_23, %c0_24, %c0_25] : memref<1x128x128xbf16, #tpu.memory_space<vmem>>, vector<1x128x128xbf16>
    %50 = vector.shape_cast %49 : vector<1x128x128xbf16> to vector<128x128xbf16>
    %c0_26 = arith.constant 0 : index
    %c0_27 = arith.constant 0 : index
    %c0_28 = arith.constant 0 : index
    %51 = vector.load %arg9[%c0_26, %c0_27, %c0_28] : memref<1x1x128xf32, #tpu.memory_space<vmem>>, vector<1x1x128xf32>
    %52 = vector.shape_cast %51 : vector<1x1x128xf32> to vector<1x128xf32>
    %53 = vector.extract_strided_slice %41 {offsets = [0, 0, 0], sizes = [1, 16, 32], strides = [1, 1, 1]} : vector<1x16x128xbf16> to vector<1x16x32xbf16>
    %54 = vector.extract_strided_slice %41 {offsets = [0, 0, 32], sizes = [1, 16, 32], strides = [1, 1, 1]} : vector<1x16x128xbf16> to vector<1x16x32xbf16>
    %55 = vector.extract_strided_slice %41 {offsets = [0, 0, 64], sizes = [1, 16, 32], strides = [1, 1, 1]} : vector<1x16x128xbf16> to vector<1x16x32xbf16>
    %56 = vector.extract_strided_slice %41 {offsets = [0, 0, 96], sizes = [1, 16, 32], strides = [1, 1, 1]} : vector<1x16x128xbf16> to vector<1x16x32xbf16>
    %57 = tpu.concatenate %53, %54, %55, %56 in 0 : vector<1x16x32xbf16>, vector<1x16x32xbf16>, vector<1x16x32xbf16>, vector<1x16x32xbf16> -> vector<4x16x32xbf16>
    %58 = vector.extract_strided_slice %44 {offsets = [0, 0, 0], sizes = [1, 16, 32], strides = [1, 1, 1]} : vector<1x16x128xbf16> to vector<1x16x32xbf16>
    %59 = vector.extract_strided_slice %44 {offsets = [0, 0, 32], sizes = [1, 16, 32], strides = [1, 1, 1]} : vector<1x16x128xbf16> to vector<1x16x32xbf16>
    %60 = vector.extract_strided_slice %44 {offsets = [0, 0, 64], sizes = [1, 16, 32], strides = [1, 1, 1]} : vector<1x16x128xbf16> to vector<1x16x32xbf16>
    %61 = vector.extract_strided_slice %44 {offsets = [0, 0, 96], sizes = [1, 16, 32], strides = [1, 1, 1]} : vector<1x16x128xbf16> to vector<1x16x32xbf16>
    %62 = tpu.concatenate %58, %59, %60, %61 in 0 : vector<1x16x32xbf16>, vector<1x16x32xbf16>, vector<1x16x32xbf16>, vector<1x16x32xbf16> -> vector<4x16x32xbf16>
    %63 = vector.extract_strided_slice %47 {offsets = [0, 0, 0], sizes = [1, 16, 32], strides = [1, 1, 1]} : vector<1x16x128xbf16> to vector<1x16x32xbf16>
    %64 = vector.extract_strided_slice %47 {offsets = [0, 0, 32], sizes = [1, 16, 32], strides = [1, 1, 1]} : vector<1x16x128xbf16> to vector<1x16x32xbf16>
    %65 = vector.extract_strided_slice %47 {offsets = [0, 0, 64], sizes = [1, 16, 32], strides = [1, 1, 1]} : vector<1x16x128xbf16> to vector<1x16x32xbf16>
    %66 = vector.extract_strided_slice %47 {offsets = [0, 0, 96], sizes = [1, 16, 32], strides = [1, 1, 1]} : vector<1x16x128xbf16> to vector<1x16x32xbf16>
    %67 = tpu.concatenate %63, %64, %65, %66 in 0 : vector<1x16x32xbf16>, vector<1x16x32xbf16>, vector<1x16x32xbf16>, vector<1x16x32xbf16> -> vector<4x16x32xbf16>
    %cst_29 = arith.constant dense<0.000000e+00> : vector<4x16x16xf32>
    %68 = tpu.matmul %57, %62, %cst_29 {dimension_numbers = #tpu.dot_dimension_numbers<[2], [2], [1], [1], [0, 0, 0, 1, 1, 1], [0], [0]>} : vector<4x16x32xbf16>, vector<4x16x32xbf16>, vector<4x16x16xf32> -> vector<4x16x16xf32>
    %69 = vector.shape_cast %68 : vector<4x16x16xf32> to vector<4x1x16x16xf32>
    %70 = vector.shape_cast %48 : vector<1x1x16xf32> to vector<1x1x1x16xf32>
    %71 = vector.broadcast %70 : vector<1x1x1x16xf32> to vector<4x1x16x16xf32>
    %72 = arith.addf %69, %71 : vector<4x1x16x16xf32>
    %73 = vector.shape_cast %72 : vector<4x1x16x16xf32> to vector<4x16x16xf32>
    %cst_30 = arith.constant dense<0xFF800000> : vector<4x16xf32>
    %74 = vector.multi_reduction <maximumf>, %73, %cst_30 [2] : vector<4x16x16xf32> to vector<4x16xf32>
    %75 = vector.shape_cast %74 : vector<4x16xf32> to vector<4x16x1xf32>
    %76 = vector.broadcast %75 : vector<4x16x1xf32> to vector<4x16x16xf32>
    %77 = arith.subf %73, %76 : vector<4x16x16xf32>
    %78 = math.exp %77 : vector<4x16x16xf32>
    %cst_31 = arith.constant dense<0.000000e+00> : vector<4x16xf32>
    %79 = vector.multi_reduction <add>, %78, %cst_31 [2] : vector<4x16x16xf32> to vector<4x16xf32>
    %80 = vector.shape_cast %79 : vector<4x16xf32> to vector<4x16x1xf32>
    %81 = tpu.reciprocal %80 {approx = true} : vector<4x16x1xf32> -> vector<4x16x1xf32>
    %82 = vector.broadcast %81 : vector<4x16x1xf32> to vector<4x16x16xf32>
    %83 = arith.mulf %78, %82 : vector<4x16x16xf32>
    %84 = arith.truncf %83 : vector<4x16x16xf32> to vector<4x16x16xbf16>
    %cst_32 = arith.constant dense<0.000000e+00> : vector<4x16x32xf32>
    %85 = tpu.matmul %84, %67, %cst_32 {dimension_numbers = #tpu.dot_dimension_numbers<[2], [1], [1], [2], [0, 0, 0, 1, 1, 2], [0], [0]>} : vector<4x16x16xbf16>, vector<4x16x32xbf16>, vector<4x16x32xf32> -> vector<4x16x32xf32>
    %86 = vector.extract_strided_slice %85 {offsets = [0, 0, 0], sizes = [1, 16, 32], strides = [1, 1, 1]} : vector<4x16x32xf32> to vector<1x16x32xf32>
    %87 = vector.extract_strided_slice %85 {offsets = [1, 0, 0], sizes = [1, 16, 32], strides = [1, 1, 1]} : vector<4x16x32xf32> to vector<1x16x32xf32>
    %88 = vector.extract_strided_slice %85 {offsets = [2, 0, 0], sizes = [1, 16, 32], strides = [1, 1, 1]} : vector<4x16x32xf32> to vector<1x16x32xf32>
    %89 = vector.extract_strided_slice %85 {offsets = [3, 0, 0], sizes = [1, 16, 32], strides = [1, 1, 1]} : vector<4x16x32xf32> to vector<1x16x32xf32>
    %90 = tpu.concatenate %86, %87, %88, %89 in 2 : vector<1x16x32xf32>, vector<1x16x32xf32>, vector<1x16x32xf32>, vector<1x16x32xf32> -> vector<1x16x128xf32>
    %91 = vector.shape_cast %90 : vector<1x16x128xf32> to vector<16x128xf32>
    %92 = arith.truncf %91 : vector<16x128xf32> to vector<16x128xbf16>
    %cst_33 = arith.constant dense<0.000000e+00> : vector<16x128xf32>
    %93 = tpu.matmul %92, %50, %cst_33 {dimension_numbers = #tpu.dot_dimension_numbers<[1], [0], [0], [1], [0, 0, 1, 1], [], []>} : vector<16x128xbf16>, vector<128x128xbf16>, vector<16x128xf32> -> vector<16x128xf32>
    %94 = vector.broadcast %52 : vector<1x128xf32> to vector<16x128xf32>
    %95 = arith.addf %93, %94 : vector<16x128xf32>
    %96 = arith.addf %4, %95 : vector<16x128xf32>
    %c0_34 = arith.constant 0 : index
    %c0_35 = arith.constant 0 : index
    %c0_36 = arith.constant 0 : index
    %97 = vector.load %arg10[%c0_34, %c0_35, %c0_36] : memref<1x1x128xf32, #tpu.memory_space<vmem>>, vector<1x1x128xf32>
    %98 = vector.shape_cast %97 : vector<1x1x128xf32> to vector<1x128xf32>
    %c0_37 = arith.constant 0 : index
    %c0_38 = arith.constant 0 : index
    %c0_39 = arith.constant 0 : index
    %99 = vector.load %arg11[%c0_37, %c0_38, %c0_39] : memref<1x1x128xf32, #tpu.memory_space<vmem>>, vector<1x1x128xf32>
    %100 = vector.shape_cast %99 : vector<1x1x128xf32> to vector<1x128xf32>
    %cst_40 = arith.constant dense<0.000000e+00> : vector<16xf32>
    %101 = vector.multi_reduction <add>, %96, %cst_40 [1] : vector<16x128xf32> to vector<16xf32>
    %102 = vector.shape_cast %101 : vector<16xf32> to vector<16x1xf32>
    %cst_41 = arith.constant 1.280000e+02 : f32
    %103 = vector.broadcast %cst_41 : f32 to vector<16x1xf32>
    %104 = arith.divf %102, %103 : vector<16x1xf32>
    %105 = vector.broadcast %104 : vector<16x1xf32> to vector<16x128xf32>
    %106 = arith.subf %96, %105 : vector<16x128xf32>
    %107 = arith.mulf %106, %106 : vector<16x128xf32>
    %cst_42 = arith.constant dense<0.000000e+00> : vector<16xf32>
    %108 = vector.multi_reduction <add>, %107, %cst_42 [1] : vector<16x128xf32> to vector<16xf32>
    %109 = vector.shape_cast %108 : vector<16xf32> to vector<16x1xf32>
    %cst_43 = arith.constant 1.280000e+02 : f32
    %110 = vector.broadcast %cst_43 : f32 to vector<16x1xf32>
    %111 = arith.divf %109, %110 : vector<16x1xf32>
    %112 = vector.broadcast %104 : vector<16x1xf32> to vector<16x128xf32>
    %113 = arith.subf %96, %112 : vector<16x128xf32>
    %cst_44 = arith.constant 9.99999974E-6 : f32
    %114 = vector.broadcast %cst_44 : f32 to vector<16x1xf32>
    %115 = arith.addf %111, %114 : vector<16x1xf32>
    %116 = math.rsqrt %115 : vector<16x1xf32>
    %117 = vector.broadcast %116 : vector<16x1xf32> to vector<16x128xf32>
    %118 = arith.mulf %113, %117 : vector<16x128xf32>
    %119 = vector.broadcast %98 : vector<1x128xf32> to vector<16x128xf32>
    %120 = arith.mulf %118, %119 : vector<16x128xf32>
    %121 = vector.broadcast %100 : vector<1x128xf32> to vector<16x128xf32>
    %122 = arith.addf %120, %121 : vector<16x128xf32>
    %123 = arith.truncf %122 : vector<16x128xf32> to vector<16x128xbf16>
    %c0_45 = arith.constant 0 : index
    %c0_46 = arith.constant 0 : index
    %c0_47 = arith.constant 0 : index
    %124 = vector.load %arg12[%c0_45, %c0_46, %c0_47] : memref<1x128x256xbf16, #tpu.memory_space<vmem>>, vector<1x128x256xbf16>
    %125 = vector.shape_cast %124 : vector<1x128x256xbf16> to vector<128x256xbf16>
    %cst_48 = arith.constant dense<0.000000e+00> : vector<16x256xf32>
    %126 = tpu.matmul %123, %125, %cst_48 {dimension_numbers = #tpu.dot_dimension_numbers<[1], [0], [0], [1], [0, 0, 1, 1], [], []>} : vector<16x128xbf16>, vector<128x256xbf16>, vector<16x256xf32> -> vector<16x256xf32>
    %c0_49 = arith.constant 0 : index
    %c0_50 = arith.constant 0 : index
    %c0_51 = arith.constant 0 : index
    %127 = vector.load %arg13[%c0_49, %c0_50, %c0_51] : memref<1x1x256xf32, #tpu.memory_space<vmem>>, vector<1x1x256xf32>
    %128 = vector.shape_cast %127 : vector<1x1x256xf32> to vector<1x256xf32>
    %129 = vector.broadcast %128 : vector<1x256xf32> to vector<16x256xf32>
    %130 = arith.addf %126, %129 : vector<16x256xf32>
    %cst_52 = arith.constant 0.000000e+00 : f32
    %131 = vector.broadcast %cst_52 : f32 to vector<16x256xf32>
    %132 = arith.maximumf %130, %131 : vector<16x256xf32>
    %133 = arith.truncf %132 : vector<16x256xf32> to vector<16x256xbf16>
    %c0_53 = arith.constant 0 : index
    %c0_54 = arith.constant 0 : index
    %c0_55 = arith.constant 0 : index
    %134 = vector.load %arg14[%c0_53, %c0_54, %c0_55] : memref<1x256x128xbf16, #tpu.memory_space<vmem>>, vector<1x256x128xbf16>
    %135 = vector.shape_cast %134 : vector<1x256x128xbf16> to vector<256x128xbf16>
    %cst_56 = arith.constant dense<0.000000e+00> : vector<16x128xf32>
    %136 = tpu.matmul %133, %135, %cst_56 {dimension_numbers = #tpu.dot_dimension_numbers<[1], [0], [0], [1], [0, 0, 1, 1], [], []>} : vector<16x256xbf16>, vector<256x128xbf16>, vector<16x128xf32> -> vector<16x128xf32>
    %137 = arith.addf %96, %136 : vector<16x128xf32>
    %c0_57 = arith.constant 0 : index
    %c0_58 = arith.constant 0 : index
    %c0_59 = arith.constant 0 : index
    %138 = vector.load %arg15[%c0_57, %c0_58, %c0_59] : memref<1x1x128xf32, #tpu.memory_space<vmem>>, vector<1x1x128xf32>
    %139 = vector.shape_cast %138 : vector<1x1x128xf32> to vector<1x128xf32>
    %140 = vector.broadcast %139 : vector<1x128xf32> to vector<16x128xf32>
    %141 = arith.addf %137, %140 : vector<16x128xf32>
    %142 = vector.shape_cast %141 : vector<16x128xf32> to vector<1x16x128xf32>
    %c0_60 = arith.constant 0 : index
    %c0_61 = arith.constant 0 : index
    %c0_62 = arith.constant 0 : index
    %143 = vector.load %arg19[%c0_60, %c0_61, %c0_62] : memref<1x16x128xf32, #tpu.memory_space<vmem>>, vector<1x16x128xf32>
    tpu.vector_store %arg19[%c0_60, %c0_61, %c0_62], %142 {strides = array<i32>} : memref<1x16x128xf32, #tpu.memory_space<vmem>>, vector<1x16x128xf32>,
    %c1_i32 = arith.constant 1 : i32
    %144 = arith.cmpi eq, %arg1, %c1_i32 : i32
    %145 = arith.extui %144 : i1 to i32
    %c0_i32_63 = arith.constant 0 : i32
    %146 = arith.cmpi ne, %145, %c0_i32_63 : i32
    scf.if %146 {
      %c0_64 = arith.constant 0 : index
      %c0_65 = arith.constant 0 : index
      %147 = vector.load %arg16[%c0_64, %c0_65] : memref<1x128xf32, #tpu.memory_space<vmem>>, vector<1x128xf32>
      %c0_66 = arith.constant 0 : index
      %c0_67 = arith.constant 0 : index
      %148 = vector.load %arg17[%c0_66, %c0_67] : memref<1x128xf32, #tpu.memory_space<vmem>>, vector<1x128xf32>
      %cst_68 = arith.constant dense<0.000000e+00> : vector<16xf32>
      %149 = vector.multi_reduction <add>, %141, %cst_68 [1] : vector<16x128xf32> to vector<16xf32>
      %150 = vector.shape_cast %149 : vector<16xf32> to vector<16x1xf32>
      %cst_69 = arith.constant 1.280000e+02 : f32
      %151 = vector.broadcast %cst_69 : f32 to vector<16x1xf32>
      %152 = arith.divf %150, %151 : vector<16x1xf32>
      %153 = vector.broadcast %152 : vector<16x1xf32> to vector<16x128xf32>
      %154 = arith.subf %141, %153 : vector<16x128xf32>
      %155 = arith.mulf %154, %154 : vector<16x128xf32>
      %cst_70 = arith.constant dense<0.000000e+00> : vector<16xf32>
      %156 = vector.multi_reduction <add>, %155, %cst_70 [1] : vector<16x128xf32> to vector<16xf32>
      %157 = vector.shape_cast %156 : vector<16xf32> to vector<16x1xf32>
      %cst_71 = arith.constant 1.280000e+02 : f32
      %158 = vector.broadcast %cst_71 : f32 to vector<16x1xf32>
      %159 = arith.divf %157, %158 : vector<16x1xf32>
      %160 = vector.broadcast %152 : vector<16x1xf32> to vector<16x128xf32>
      %161 = arith.subf %141, %160 : vector<16x128xf32>
      %cst_72 = arith.constant 9.99999974E-6 : f32
      %162 = vector.broadcast %cst_72 : f32 to vector<16x1xf32>
      %163 = arith.addf %159, %162 : vector<16x1xf32>
      %164 = math.rsqrt %163 : vector<16x1xf32>
      %165 = vector.broadcast %164 : vector<16x1xf32> to vector<16x128xf32>
      %166 = arith.mulf %161, %165 : vector<16x128xf32>
      %167 = vector.broadcast %147 : vector<1x128xf32> to vector<16x128xf32>
      %168 = arith.mulf %166, %167 : vector<16x128xf32>
      %169 = vector.broadcast %148 : vector<1x128xf32> to vector<16x128xf32>
      %170 = arith.addf %168, %169 : vector<16x128xf32>
      %171 = vector.shape_cast %170 : vector<16x128xf32> to vector<1x16x128xf32>
      %172 = arith.truncf %171 : vector<1x16x128xf32> to vector<1x16x128xbf16>
      %c0_73 = arith.constant 0 : index
      %c0_74 = arith.constant 0 : index
      %c0_75 = arith.constant 0 : index
      %173 = vector.load %arg18[%c0_73, %c0_74, %c0_75] : memref<1x16x128xbf16, #tpu.memory_space<vmem>>, vector<1x16x128xbf16>
      tpu.vector_store %arg18[%c0_73, %c0_74, %c0_75], %172 {strides = array<i32>} : memref<1x16x128xbf16, #tpu.memory_space<vmem>>, vector<1x16x128xbf16>,
    } else {
    }
    return
  }
  func.func @transform_0(%arg0: i32, %arg1: i32) -> (i32, i32, i32) {
    %c0_i32 = arith.constant 0 : i32
    %c0_i32_0 = arith.constant 0 : i32
    %c0_i32_1 = arith.constant 0 : i32
    return %arg0, %c0_i32, %c0_i32_0 : i32, i32, i32
  }
  func.func @transform_1(%arg0: i32, %arg1: i32) -> (i32, i32, i32) {
    %c0_i32 = arith.constant 0 : i32
    %c0_i32_0 = arith.constant 0 : i32
    %c0_i32_1 = arith.constant 0 : i32
    return %arg0, %c0_i32, %c0_i32_0 : i32, i32, i32
  }
  func.func @transform_2(%arg0: i32, %arg1: i32) -> (i32, i32, i32) {
    %c0_i32 = arith.constant 0 : i32
    %c0_i32_0 = arith.constant 0 : i32
    %c0_i32_1 = arith.constant 0 : i32
    return %arg1, %c0_i32, %c0_i32_0 : i32, i32, i32
  }
  func.func @transform_3(%arg0: i32, %arg1: i32) -> (i32, i32, i32) {
    %c0_i32 = arith.constant 0 : i32
    %c0_i32_0 = arith.constant 0 : i32
    %c0_i32_1 = arith.constant 0 : i32
    return %arg1, %c0_i32, %c0_i32_0 : i32, i32, i32
  }
  func.func @transform_4(%arg0: i32, %arg1: i32) -> (i32, i32, i32) {
    %c0_i32 = arith.constant 0 : i32
    %c0_i32_0 = arith.constant 0 : i32
    %c0_i32_1 = arith.constant 0 : i32
    return %arg1, %c0_i32, %c0_i32_0 : i32, i32, i32
  }
  func.func @transform_5(%arg0: i32, %arg1: i32) -> (i32, i32, i32) {
    %c0_i32 = arith.constant 0 : i32
    %c0_i32_0 = arith.constant 0 : i32
    %c0_i32_1 = arith.constant 0 : i32
    return %arg1, %c0_i32, %c0_i32_0 : i32, i32, i32
  }
  func.func @transform_6(%arg0: i32, %arg1: i32) -> (i32, i32, i32) {
    %c0_i32 = arith.constant 0 : i32
    %c0_i32_0 = arith.constant 0 : i32
    %c0_i32_1 = arith.constant 0 : i32
    return %arg1, %c0_i32, %c0_i32_0 : i32, i32, i32
  }
  func.func @transform_7(%arg0: i32, %arg1: i32) -> (i32, i32, i32) {
    %c0_i32 = arith.constant 0 : i32
    %c0_i32_0 = arith.constant 0 : i32
    %c0_i32_1 = arith.constant 0 : i32
    return %arg1, %c0_i32, %c0_i32_0 : i32, i32, i32
  }
  func.func @transform_8(%arg0: i32, %arg1: i32) -> (i32, i32, i32) {
    %c0_i32 = arith.constant 0 : i32
    %c0_i32_0 = arith.constant 0 : i32
    %c0_i32_1 = arith.constant 0 : i32
    return %arg1, %c0_i32, %c0_i32_0 : i32, i32, i32
  }
  func.func @transform_9(%arg0: i32, %arg1: i32) -> (i32, i32, i32) {
    %c0_i32 = arith.constant 0 : i32
    %c0_i32_0 = arith.constant 0 : i32
    %c0_i32_1 = arith.constant 0 : i32
    return %arg1, %c0_i32, %c0_i32_0 : i32, i32, i32
  }
  func.func @transform_10(%arg0: i32, %arg1: i32) -> (i32, i32, i32) {
    %c0_i32 = arith.constant 0 : i32
    %c0_i32_0 = arith.constant 0 : i32
    %c0_i32_1 = arith.constant 0 : i32
    return %arg1, %c0_i32, %c0_i32_0 : i32, i32, i32
  }
  func.func @transform_11(%arg0: i32, %arg1: i32) -> (i32, i32, i32) {
    %c0_i32 = arith.constant 0 : i32
    %c0_i32_0 = arith.constant 0 : i32
    %c0_i32_1 = arith.constant 0 : i32
    return %arg1, %c0_i32, %c0_i32_0 : i32, i32, i32
  }
  func.func @transform_12(%arg0: i32, %arg1: i32) -> (i32, i32, i32) {
    %c0_i32 = arith.constant 0 : i32
    %c0_i32_0 = arith.constant 0 : i32
    %c0_i32_1 = arith.constant 0 : i32
    return %arg1, %c0_i32, %c0_i32_0 : i32, i32, i32
  }
  func.func @transform_13(%arg0: i32, %arg1: i32) -> (i32, i32, i32) {
    %c0_i32 = arith.constant 0 : i32
    %c0_i32_0 = arith.constant 0 : i32
    %c0_i32_1 = arith.constant 0 : i32
    return %arg1, %c0_i32, %c0_i32_0 : i32, i32, i32
  }
  func.func @transform_14(%arg0: i32, %arg1: i32) -> (i32, i32) {
    %c0_i32 = arith.constant 0 : i32
    %c0_i32_0 = arith.constant 0 : i32
    %c0_i32_1 = arith.constant 0 : i32
    return %c0_i32, %c0_i32_0 : i32, i32
  }
  func.func @transform_15(%arg0: i32, %arg1: i32) -> (i32, i32) {
    %c0_i32 = arith.constant 0 : i32
    %c0_i32_0 = arith.constant 0 : i32
    %c0_i32_1 = arith.constant 0 : i32
    return %c0_i32, %c0_i32_0 : i32, i32
  }
  func.func @transform_16(%arg0: i32, %arg1: i32) -> (i32, i32, i32) {
    %c0_i32 = arith.constant 0 : i32
    %c0_i32_0 = arith.constant 0 : i32
    %c0_i32_1 = arith.constant 0 : i32
    return %arg0, %c0_i32, %c0_i32_0 : i32, i32, i32
  }
}

</mosaic_0001>

<bundles_post_ra>
// kernel: tpu_custom_call.1
= control target key start
LH: loop header
LB: loop body
LE: loop exit
PB: predicated region body
PF: predicated region fallthrough
CT: control target
= control target key end

     0   :  { %s4238_s0 = inlined_call_operand.hbm [shape: f32[2,1,16], index: 0, kind: input, shape index: {}]   ;;  %s4239_s1 = inlined_call_operand.hbm [shape: bf16[2,16,128], index: 1, kind: input, shape index: {}]   ;;  %s4240_s2 = inlined_call_operand.hbm [shape: f32[2,1,128], index: 2, kind: input, shape index: {}]   ;;  %s4241_s3 = inlined_call_operand.hbm [shape: f32[2,1,128], index: 3, kind: input, shape index: {}]   ;;  %s4242_s4 = inlined_call_operand.hbm [shape: bf16[2,128,384], index: 4, kind: input, shape index: {}]   ;;  %s4243_s5 = inlined_call_operand.vmem [shape: f32[2,1,384], index: 5, kind: input, shape index: {}]   ;;  %s4244_s6 = inlined_call_operand.hbm [shape: bf16[2,128,128], index: 6, kind: input, shape index: {}]   ;;  %s4245_s7 = inlined_call_operand.vmem [shape: f32[2,1,128], index: 7, kind: input, shape index: {}]   ;;  %s4246_s8 = inlined_call_operand.vmem [shape: f32[2,1,128], index: 8, kind: input, shape index: {}]   ;;  %s4247_s9 = inlined_call_operand.vmem [shape: f32[2,1,128], index: 9, kind: input, shape index: {}]   ;;  %s4248_s10 = inlined_call_operand.hbm [shape: bf16[2,128,256], index: 10, kind: input, shape index: {}]   ;;  %s4249_s11 = inlined_call_operand.vmem [shape: f32[2,1,256], index: 11, kind: input, shape index: {}]   ;;  %s4250_s12 = inlined_call_operand.hbm [shape: bf16[2,256,128], index: 12, kind: input, shape index: {}]   ;;  %s4251_s13 = inlined_call_operand.vmem [shape: f32[2,1,128], index: 13, kind: input, shape index: {}]   ;;  %s4252_s14 = inlined_call_operand.vmem [shape: f32[1,128], index: 14, kind: input, shape index: {}]   ;;  %s4253_s15 = inlined_call_operand.vmem [shape: f32[1,128], index: 15, kind: input, shape index: {}]   ;;  %s4254_s16 = inlined_call_operand.hbm [shape: bf16[2,16,128], index: 16, kind: output, shape index: {}]  }
   0x1   :  { %4288 = sst [smem:[#allocation34_spill]] %s4238_s0 }
   0x2   :  { %4289 = sst [smem:[#allocation35_spill]] %s4239_s1 }
   0x3   :  { %4290 = sst [smem:[#allocation36_spill]] %s4240_s2 }
   0x4   :  { %4291 = sst [smem:[#allocation37_spill]] %s4241_s3 }
   0x5   :  { %4292 = sst [smem:[#allocation38_spill]] %s4242_s4 }
   0x6   :  { %4293 = sst [smem:[#allocation39_spill]] %s4243_s5 }
   0x7   :  { %4294 = sst [smem:[#allocation40_spill]] %s4244_s6 }
   0x8   :  { %4295 = sst [smem:[#allocation41_spill]] %s4245_s7 }
   0x9   :  { %4296 = sst [smem:[#allocation42_spill]] %s4246_s8 }
   0xa   :  { %4297 = sst [smem:[#allocation43_spill]] %s4247_s9 }
   0xb   :  { %4298 = sst [smem:[#allocation44_spill]] %s4248_s10 }
   0xc   :  { %4299 = sst [smem:[#allocation45_spill]] %s4249_s11 }
   0xd   :  { %4300 = sst [smem:[#allocation46_spill]] %s4250_s12 }
   0xe   :  { %4301 = sst [smem:[#allocation47_spill]] %s4251_s13 }
   0xf   :  { %4302 = sst [smem:[#allocation48_spill]] %s4252_s14 }
  0x10   :  { %4303 = sst [smem:[#allocation49_spill]] %s4253_s15 }
  0x11   :  { %4304 = sst [smem:[#allocation50_spill]] %s4254_s16 }
  0x12   :  { %21 = vsyncpa [#allocation4], 0 }
  0x13   :  { %22 = vsyncpa [#allocation7], 0 }
  0x14   :  { %23 = vsyncpa [#allocation5], 0 }
  0x15   :  { %25 = vsyncpa [#allocation5 + $0x1], 0  ;;  %s3559_s21 = smov 0   ;;  %s3561_s22 = smov 0  }
  0x16   :  { %s3563_s23 = smov 0   ;;  %s3565_s24 = smov 0  }
  0x17   :  { %s3567_s25 = smov 0   ;;  %s3569_s26 = smov 0  }
  0x18   :  { %s3571_s27 = smov 0   ;;  %s3573_s28 = smov 0  }
  0x19   :  { %s3575_s29 = smov 0   ;;  %s3577_s30 = smov 0  }
  0x1a   :  { %s3579_s0 = smov 0  }
  0x1b LB: > { %4305 = sst [smem:[#allocation19_spill]] %s3418_s23  ;;  %s3615_s17 = sadd.s32 4294967295, %s3450_s0   ;;  %s3450_s0 = sphi %s3579_s0, %s31_s0   ;;  %s3446_s30 = sphi %s3577_s30, %s4382_s30   ;;  %s3442_s29 = sphi %s3575_s29, %s4386_s29   ;;  %s3438_s28 = sphi %s3573_s28, %s4380_s28   ;;  %s3434_s27 = sphi %s3571_s27, %s4385_s27   ;;  %s3430_s26 = sphi %s3569_s26, %s4379_s26   ;;  %s3426_s25 = sphi %s3567_s25, %s4378_s25   ;;  %s3422_s24 = sphi %s3565_s24, %s4377_s24   ;;  %s3418_s23 = sphi %s3563_s23, %s4376_s23   ;;  %s3414_s22 = sphi %s3561_s22, %s4384_s22   ;;  %s3410_s21 = sphi %s3559_s21, %s4383_s21  }
  0x1c   : > { %4306 = sst [smem:[#allocation20_spill]] %s3422_s24  ;;  %s2528_s18 = sadd.s32 4294967294, %s3450_s0  }
  0x1d   : > { %4307 = sst [smem:[#allocation21_spill]] %s3426_s25  ;;  %s40_s19 = sadd.s32 1, %s3442_s29 }
  0x1e   : > { %4308 = sst [smem:[#allocation22_spill]] %s3430_s26  ;;  %s43_s20 = sadd.s32 1, %s3446_s30 }
  0x1f   : > { %4309 = sst [smem:[#allocation23_spill]] %s3434_s27  ;;  %p41_p0 = scmp.ge.s32.totalorder %s40_s19, 2 }
  0x20   : > { %4310 = sst [smem:[#allocation24_spill]] %s3438_s28  ;;  %s50_s16 = sadd.s32 1, %s3430_s26 }
  0x21   : > { %4311 = sst [smem:[#allocation25_spill]] %s3446_s30  ;;  %p63_p1 = scmp.ne.s32.totalorder %s3426_s25, %s3422_s24 }
  0x22   : > { %4312 = sst [smem:[#allocation26_spill]] %s3450_s0  ;;  %p64_p2 = scmp.eq.s32.totalorder %s3615_s17, 0 }
  0x23   : > { %s4388_s19 = smov (%p41_p0, %s40_s19), 0  ;;  %s4390_s20 = smov (!%p41_p0, %s43_s20), %s3446_s30 }
  0x24   : > { %4313 = sst [smem:[#allocation27_spill]] %s4388_s19  ;;  %p3632_p3 = por %p64_p2, %p63_p1 }
  0x25   : > { %s99_s14 = ssub.s32 %s3442_s29, %s4388_s19  ;;  %p45_p4 = scmp.ge.s32.totalorder %s4390_s20, 2 }
  0x26   : > { %s4314_s15 = scalar_select %p3632_p3, 1, 0 }
  0x27   : > { %p100_p5 = scmp.eq.s32.totalorder %s99_s14, 0  ;;  %s102_s13 = sadd.s32 1, %s3418_s23 }
  0x28   : > { %p109_p6 = scmp.ne.s32.totalorder %s3418_s23, %s3414_s22  ;;  %s4392_s20 = smov (%p45_p4, %s4390_s20), 0 }
  0x29   : > { %4315 = sst [smem:[#allocation28_spill]] %s4392_s20  ;;  %s47_s5 = ssub.s32 %s3446_s30, %s4392_s20 }
  0x2a   : > { %s3644_s11 = scalar_select %p100_p5, %s3418_s23, %s102_s13  }
  0x2b   : > { %p110_p7 = scmp.eq.s32.totalorder %s3450_s0, 0  ;;  %p48_p8 = scmp.eq.s32.totalorder %s47_s5, 0 }
  0x2c   : > { %4316 = sst [smem:[#allocation29_spill]] %s3644_s11  ;;  %p115_p9 = scmp.ne.s32.totalorder %s3414_s22, %s3410_s21 }
  0x2d   : > { %p3651_p10 = por %p110_p7, %p109_p6  ;;  %p466_p11 = scmp.ne.s32.totalorder %s3430_s26, %s3426_s25 }
  0x2e   : > { %s3658_s14 = scalar_select %p48_p8, %s3430_s26, %s50_s16  }
  0x2f   : > { %s4317_s19 = scalar_select %p3651_p10, 1, 0 }
  0x30   : > { %4318 = sst [smem:[#allocation30_spill]] %s3658_s14  ;;  %p3662_p12 = por %p115_p9, %p64_p2 }
  0x31   : > { %p467_p13 = scmp.eq.s32.totalorder %s3615_s17, 3  ;;  %p473_p0 = scmp.eq.s32.totalorder %s2528_s18, 3 }
  0x32   : > { %s4319_s9 = scalar_select %p3662_p12, 1, 0 }
  0x33   : > { %p2529_p4 = scmp.ge.s32.totalorder %s3450_s0, 1  ;;  %p3668_p5 = por %p467_p13, %p466_p11 }
  0x34   : > { %4320 = sst [smem:[#allocation31_spill]] %s4319_s9  ;;  %p480_p6 = scmp.lt.s32.totalorder %s3450_s0, 5 }
  0x35   : > { %s4321_s5 = scalar_select %p3668_p5, 1, 0 }
  0x36   : > { %p3676_p7 = por %p473_p0, %p63_p1  ;;  %s2530_s16 = sshll.u32 %s3438_s28, 4 }
  0x37   : > { %4322 = sst [smem:[#allocation32_spill]] %s4321_s5  ;;  %p3681_p2 = pnand %p2529_p4, %p480_p6 }
  0x38   : > { %s4323_s13 = scalar_select %p3676_p7, 1, 0 }
  0x39   : > { %s4325_s21 = scalar_select %p3681_p2, 1, 0 }
  0x3a   : > { %4324 = sst [smem:[#allocation33_spill]] %s4323_s13  ;;  %s4265_s26 = sshll.u32 %s3438_s28, 7 }
  0x3b   : > { %s4326_s18 = sld [smem:[#allocation34_spill]]  ;;  %p2824_p1 = pneg %p3681_p2 }
  0x3c   : > { %s3452_s11 = smov [#allocation3]   ;;  %s4327_s1 = sld [smem:[#allocation35_spill]] }
  0x3d   : > { %s495_s24 = sshll.u32 %s3452_s11, 4  ;;  %p3702_p8 = pnand %p2824_p1, %p3632_p3  ;;  %s496_s24 = int_to_ptr.vmem [resolvable:$true] %s495_s24 }
  0x3f   : > { %p3100_p13 = pneg %p3702_p8 }
  0x41   : > { %s3688_s14 = scalar_lea.hbm %s4326_s18, %s2530_s16  ;;  %s3103_s13 = scalar_lea.hbm %s4326_s18, 32 }
  0x42   : > { %s3698_s8 = scalar_lea.hbm %s4327_s1, %s4265_s26  ;;  %s3098_s16 = scalar_lea.hbm %s3688_s14, 16 }
  0x43   : > { %p3099_p11 = scmp.ne.s32.totalorder %s3688_s14, %s3098_s16  ;;  %p3104_p6 = scmp.lt.s32.totalorder %s3688_s14, %s4326_s18 }
  0x44   : > { %p3105_p1 = scmp.lt.s32.totalorder %s3103_s13, %s3098_s16 }
  0x45   : > { %p3101_p0 = pnand %p3100_p13, %p3099_p11 }
  0x46   : > { %p3106_p7 = por %p3105_p1, %p3104_p6 }
  0x47   : > { %p3102_p4 = pneg %p3101_p0 }
  0x49   : > { %p3107_p9 = pnand %p3106_p7, %p3102_p4 }
  0x4b   : > { %3110 = shalt.err (!%p3107_p9)
}
  0x4c   : > { %s3111_s20 = scalar_lea.vmem %s496_s24, 16  ;;  %s3118_s7 = scalar_lea.vmem %s496_s24, 32 }
  0x4d   : > { %p3112_p5 = scmp.ne.s32.totalorder %s496_s24, %s3111_s20  ;;  %p3119_p0 = scmp.lt.s32.totalorder %s496_s24, %s496_s24 }
  0x4e   : > { %p3120_p3 = scmp.lt.s32.totalorder %s3118_s7, %s3111_s20 }
  0x4f   : > { %p3114_p12 = pnand %p3112_p5, %p3100_p13 }
  0x50   : > { %p3121_p2 = por %p3120_p3, %p3119_p0 }
  0x51   : > { %p3115_p11 = pneg %p3114_p12 }
  0x53   : > { %p3122_p10 = pnand %p3121_p2, %p3115_p11 }
  0x55   : > { %3125 = shalt.err (!%p3122_p10)
}
  0x56   : > { %2827 = dma.hbm_to_vmem [thread:$0]  (!%p3702_p8), %s3688_s14, 16, %s496_s24, [#allocation4]  }
  0x57   : > { %p4329_p7 = scmp.ne.s32.totalorder %s4317_s19, 0  ;;  %p4330_p9 = scmp.lt.s32.totalorder %s3450_s0, 4 }
  0x58   : > { %s3737_s7 = sand.u32 1, %s3418_s23   ;;  %s2534_s28 = sshll.u32 %s3442_s29, 4 }
  0x59   : > { %p3732_p4 = pnand %p4330_p9, %p4329_p7  ;;  %s4332_s2 = sld [smem:[#allocation36_spill]] }
  0x5a   : > { %s531_s5 = scalar_lea.vmem [#allocation8], %s3737_s7  ;;  %s4333_s3 = sld [smem:[#allocation37_spill]] }
  0x5b   : > { %s4331_s26 = scalar_select %p3732_p4, 1, 0 }
  0x5c   : > { %s538_s13 = sshll.u32 %s531_s5, 4  ;;  %s4334_s14 = sand.u32 1, %s3450_s0   ;;  %s539_s13 = int_to_ptr.vmem [resolvable:$true] %s538_s13 }
  0x5d   : > { %s3751_s27 = scalar_lea.sflag [#allocation4], %s4334_s14  ;;  %p3755_p3 = pneg %p3732_p4 }
  0x5e   : > { %s3139_s25 = scalar_lea.vmem %s539_s13, 16  ;;  %s3453_s20 = smov [#allocation8]  }
  0x5f   : > { %s536_s11 = scalar_lea.hbm %s4332_s2, %s2534_s28  ;;  %p3140_p10 = scmp.ne.s32.totalorder %s539_s13, %s3139_s25 }
  0x60   : > { %s3747_s19 = scalar_lea.hbm %s4333_s3, %s2534_s28  ;;  %s3144_s16 = sshll.u32 %s3453_s20, 4  ;;  %s3145_s16 = int_to_ptr.vmem [resolvable:$false] %s3144_s16 }
  0x61   : > { %s4335_s23 = scalar_select %p3755_p3, 1, 0 }
  0x62   : > { %p3142_p12 = pnand %p3140_p10, %p3755_p3  ;;  %s3146_s18 = scalar_lea.vmem %s3145_s16, 32 }
  0x63   : > { %p3147_p2 = scmp.lt.s32.totalorder %s539_s13, %s3145_s16  ;;  %p3148_p6 = scmp.lt.s32.totalorder %s3146_s18, %s3139_s25 }
  0x64   : > { %p3143_p5 = pneg %p3142_p12 }
  0x65   : > { %p3149_p1 = por %p3148_p6, %p3147_p2 }
  0x67   : > { %p3150_p11 = pnand %p3149_p1, %p3143_p5 }
  0x69   : > { %3153 = shalt.err (!%p3150_p11)
}
  0x6a   : > { %2834 = dma.hbm_to_vmem [thread:$0]  (!%p3732_p4), %s536_s11, 16, %s539_s13, %s3751_s27  }
  0x6b   : > { %s548_s28 = scalar_lea.vmem [#allocation9], %s3737_s7  ;;  %s2802_s24 = smul.u32 192, %s3737_s7 }
  0x6c   : > { %s555_s5 = sshll.u32 %s548_s28, 4  ;;  %s2803_s14 = smul.u32 3072, %s3442_s29  ;;  %s556_s5 = int_to_ptr.vmem [resolvable:$true] %s555_s5 }
  0x6d   : > { %s3167_s20 = scalar_lea.vmem %s556_s5, 16  ;;  %s3454_s25 = smov [#allocation9]  }
  0x6e   : > { %p3168_p0 = scmp.ne.s32.totalorder %s556_s5, %s3167_s20  ;;  %s3172_s16 = sshll.u32 %s3454_s25, 4  ;;  %s3173_s16 = int_to_ptr.vmem [resolvable:$false] %s3172_s16 }
  0x6f   : > { %s3174_s18 = scalar_lea.vmem %s3173_s16, 32  ;;  %p3175_p10 = scmp.lt.s32.totalorder %s556_s5, %s3173_s16 }
  0x70   : > { %p3170_p7 = pnand %p3168_p0, %p3755_p3  ;;  %p3176_p12 = scmp.lt.s32.totalorder %s3174_s18, %s3167_s20 }
  0x72   : > { %p3171_p9 = pneg %p3170_p7  ;;  %p3177_p5 = por %p3176_p12, %p3175_p10 }
  0x74   : > { %p3178_p2 = pnand %p3177_p5, %p3171_p9 }
  0x76   : > { %3181 = shalt.err (!%p3178_p2)
}
  0x77   : > { %2837 = dma.hbm_to_vmem [thread:$0]  (!%p3732_p4), %s3747_s19, 16, %s556_s5, %s3751_s27  }
  0x78   : > { %s4336_s4 = sld [smem:[#allocation38_spill]]  ;;  %s566_s2 = scalar_lea.vmem [#allocation10], %s2802_s24 }
  0x79   : > { %s573_s3 = sshll.u32 %s566_s2, 4  ;;  %s3455_s20 = smov [#allocation10]   ;;  %s574_s3 = int_to_ptr.vmem [resolvable:$true] %s573_s3 }
  0x7a   : > { %s3195_s25 = scalar_lea.vmem %s574_s3, 3072  ;;  %s3200_s16 = sshll.u32 %s3455_s20, 4  ;;  %s3201_s16 = int_to_ptr.vmem [resolvable:$false] %s3200_s16 }
  0x7b   : > { %p3196_p6 = scmp.ne.s32.totalorder %s574_s3, %s3195_s25  ;;  %s3202_s18 = scalar_lea.vmem %s3201_s16, 6144 }
  0x7c   : > { %p3203_p0 = scmp.lt.s32.totalorder %s574_s3, %s3201_s16  ;;  %p3204_p7 = scmp.lt.s32.totalorder %s3202_s18, %s3195_s25 }
  0x7d   : > { %p3198_p1 = pnand %p3196_p6, %p3755_p3 }
  0x7e   : > { %s572_s28 = scalar_lea.hbm %s4336_s4, %s2803_s14  ;;  %p3205_p9 = por %p3204_p7, %p3203_p0 }
  0x7f   : > { %p3199_p11 = pneg %p3198_p1 }
  0x81   : > { %p3206_p10 = pnand %p3205_p9, %p3199_p11 }
  0x83   : > { %3209 = shalt.err (!%p3206_p10)
}
  0x84   : > { %s3456_s19 = smov 192   ;;  %s3457_s2 = smov 12  }
  0x85   : > { %2840 = dma.hbm_to_vmem [thread:$0]  (!%p3732_p4), %s572_s28, 3072, %s574_s3, %s3751_s27, %s3456_s19, %s3456_s19, %s3457_s2  }
  0x86   : > { %s2537_s5 = sshll.u32 %s3737_s7, 6  ;;  %s2643_s24 = sshll.u32 %s3442_s29, 10 }
  0x87   : > { %s4337_s6 = sld [smem:[#allocation40_spill]]  ;;  %s594_s25 = scalar_lea.vmem [#allocation11], %s2537_s5 }
  0x88   : > { %s601_s20 = sshll.u32 %s594_s25, 4  ;;  %s2540_s16 = sshll.u32 %s3737_s7, 7  ;;  %s602_s20 = int_to_ptr.vmem [resolvable:$true] %s601_s20 }
  0x89   : > { %s3223_s18 = scalar_lea.vmem %s602_s20, 1024  ;;  %s3458_s4 = smov [#allocation11]  }
  0x8a   : > { %p3224_p12 = scmp.ne.s32.totalorder %s602_s20, %s3223_s18  ;;  %s3228_s0 = sshll.u32 %s3458_s4, 4  ;;  %s3229_s0 = int_to_ptr.vmem [resolvable:$false] %s3228_s0 }
  0x8b   : > { %s3230_s9 = scalar_lea.vmem %s3229_s0, 2048  ;;  %p3231_p6 = scmp.lt.s32.totalorder %s602_s20, %s3229_s0 }
  0x8c   : > { %p3226_p5 = pnand %p3224_p12, %p3755_p3  ;;  %p3232_p1 = scmp.lt.s32.totalorder %s3230_s9, %s3223_s18 }
  0x8d   : > { %s600_s13 = scalar_lea.hbm %s4337_s6, %s2643_s24 }
  0x8e   : > { %p3227_p2 = pneg %p3226_p5  ;;  %p3233_p11 = por %p3232_p1, %p3231_p6 }
  0x90   : > { %p3234_p0 = pnand %p3233_p11, %p3227_p2 }
  0x92   : > { %3237 = shalt.err (!%p3234_p0)
}
  0x93   : > { %s4281_s3 = smov 64   ;;  %s4283_s28 = smov 4  }
  0x94   : > { %2843 = dma.hbm_to_vmem [thread:$0]  (!%p3732_p4), %s600_s13, 1024, %s602_s20, %s3751_s27, %s4281_s3, %s4281_s3, %s4283_s28  }
  0x95   : > { %s2644_s4 = sshll.u32 %s3442_s29, 11  ;;  %s633_s19 = scalar_lea.vmem [#allocation12], %s2540_s16 }
  0x96   : > { %s640_s0 = sshll.u32 %s633_s19, 4  ;;  %s4338_s10 = sld [smem:[#allocation44_spill]]  ;;  %s641_s0 = int_to_ptr.vmem [resolvable:$true] %s640_s0 }
  0x97   : > { %s3251_s24 = scalar_lea.vmem %s641_s0, 2048  ;;  %s3461_s14 = smov [#allocation12]  }
  0x98   : > { %p3252_p7 = scmp.ne.s32.totalorder %s641_s0, %s3251_s24  ;;  %s3256_s11 = sshll.u32 %s3461_s14, 4  ;;  %s3257_s11 = int_to_ptr.vmem [resolvable:$false] %s3256_s11 }
  0x99   : > { %s3258_s25 = scalar_lea.vmem %s3257_s11, 4096  ;;  %p3259_p12 = scmp.lt.s32.totalorder %s641_s0, %s3257_s11 }
  0x9a   : > { %p3254_p9 = pnand %p3252_p7, %p3755_p3  ;;  %p3260_p5 = scmp.lt.s32.totalorder %s3258_s25, %s3251_s24 }
  0x9c   : > { %s639_s5 = scalar_lea.hbm %s4338_s10, %s2644_s4  ;;  %p3255_p10 = pneg %p3254_p9 }
  0x9d   : > { %p3261_p2 = por %p3260_p5, %p3259_p12 }
  0x9f   : > { %p3262_p6 = pnand %p3261_p2, %p3255_p10 }
  0xa1   : > { %3265 = shalt.err (!%p3262_p6)
}
  0xa2   : > { %s3462_s13 = smov 128   ;;  %s3463_s20 = smov 8  }
  0xa3   : > { %2846 = dma.hbm_to_vmem [thread:$0]  (!%p3732_p4), %s639_s5, 2048, %s641_s0, %s3751_s27, %s3462_s13, %s3462_s13, %s3463_s20  }
  0xa4   : > { %s3464_s18 = smov [#allocation6]   ;;  %s4339_s12 = sld [smem:[#allocation46_spill]] }
  0xa5   : > { %s508_s19 = sshll.u32 %s3464_s18, 4  ;;  %s661_s14 = scalar_lea.vmem [#allocation13], %s2540_s16  ;;  %s509_s19 = int_to_ptr.vmem [resolvable:$true] %s508_s19 }
  0xa6   : > { %s668_s11 = sshll.u32 %s661_s14, 4  ;;  %s3266_s25 = scalar_lea.hbm %s3698_s8, 128  ;;  %s669_s11 = int_to_ptr.vmem [resolvable:$true] %s668_s11 }
  0xa7   : > { %p3267_p1 = scmp.ne.s32.totalorder %s3698_s8, %s3266_s25  ;;  %s3271_s0 = scalar_lea.hbm %s4327_s1, 256 }
  0xa8   : > { %p3272_p7 = scmp.lt.s32.totalorder %s3698_s8, %s4327_s1  ;;  %p3273_p9 = scmp.lt.s32.totalorder %s3271_s0, %s3266_s25 }
  0xa9   : > { %p3269_p11 = pnand %p3267_p1, %p3100_p13 }
  0xaa   : > { %s3809_s24 = scalar_lea.hbm %s4339_s12, %s2644_s4  ;;  %p3274_p10 = por %p3273_p9, %p3272_p7 }
  0xab   : > { %p3270_p0 = pneg %p3269_p11 }
  0xad   : > { %p3275_p12 = pnand %p3274_p10, %p3270_p0 }
  0xaf   : > { %3278 = shalt.err (!%p3275_p12)
}
  0xb0   : > { %s3279_s7 = scalar_lea.vmem %s509_s19, 128  ;;  %p3287_p1 = scmp.lt.s32.totalorder %s509_s19, %s509_s19 }
  0xb1   : > { %p3280_p5 = scmp.ne.s32.totalorder %s509_s19, %s3279_s7  ;;  %p3288_p11 = scmp.lt.s32.totalorder %s3279_s7, %s3279_s7 }
  0xb3   : > { %p3282_p2 = pnand %p3280_p5, %p3100_p13  ;;  %p3289_p4 = por %p3288_p11, %p3287_p1 }
  0xb5   : > { %p3283_p6 = pneg %p3282_p2 }
  0xb7   : > { %p3290_p3 = pnand %p3289_p4, %p3283_p6 }
  0xb9   : > { %3293 = shalt.err (!%p3290_p3)
}
  0xba   : > { %s4340_s16 = smov 4   ;;  %s4341_s3 = smov 64  }
  0xbb   : > { %2830 = dma.hbm_to_vmem [thread:$0]  (!%p3702_p8), %s3698_s8, 128, %s509_s19, [#allocation7], %s4341_s3, %s4341_s3, %s4340_s16  }
  0xbc   : > { %s3307_s28 = scalar_lea.vmem %s669_s11, 2048  ;;  %p4342_p7 = scmp.ne.s32.totalorder %s4335_s23, 0 }
  0xbd   : > { %p3308_p0 = scmp.ne.s32.totalorder %s669_s11, %s3307_s28  ;;  %s3465_s4 = smov [#allocation13]  }
  0xbe   : > { %s3312_s20 = sshll.u32 %s3465_s4, 4  ;;  %s3313_s20 = int_to_ptr.vmem [resolvable:$false] %s3312_s20 }
  0xbf   : > { %p3310_p9 = pnand %p3308_p0, %p4342_p7  ;;  %s3314_s18 = scalar_lea.vmem %s3313_s20, 4096 }
  0xc0   : > { %p3315_p4 = scmp.lt.s32.totalorder %s669_s11, %s3313_s20  ;;  %p3316_p3 = scmp.lt.s32.totalorder %s3314_s18, %s3307_s28 }
  0xc1   : > { %p3311_p13 = pneg %p3310_p9 }
  0xc2   : > { %p3317_p10 = por %p3316_p3, %p3315_p4 }
  0xc4   : > { %p3318_p12 = pnand %p3317_p10, %p3311_p13 }
  0xc6   : > { %3321 = shalt.err (!%p3318_p12)
}
  0xc7   : > { %p4343_p5 = scmp.ne.s32.totalorder %s4331_s26, 0  ;;  %p4344_p8 = scmp.ne.s32.totalorder %s4325_s21, 0 }
  0xc8   : > { %p4345_p2 = scmp.ne.s32.totalorder (!%p4344_p8), %s4314_s15, 0 }
  0xc9   : > { %2849 = dma.hbm_to_vmem [thread:$0]  (!%p4343_p5), %s3809_s24, 2048, %s669_s11, %s3751_s27, %s4341_s3, %s4341_s3, %s4340_s16  }
  0xca   : > { %686 = sbr.rel (%p4344_p8) target bundleno = 3046 (0xbe6), region = 84 }
  0xcf   : > { %3393 = dma.done.wait (%p4345_p2), [#allocation4], 16  }
  0xd0   : > { %3395 = vsyncadd (%p4345_p2), [#allocation4], 4294967280 }
  0xd1   : > { %3397 = dma.done.wait (%p4345_p2), [#allocation7], 128  }
  0xd2   : > { %3399 = vsyncadd (%p4345_p2), [#allocation7], 4294967168  ;;  %s4346_s8 = sld [smem:[#allocation31_spill]]  ;;  %s696_s23 = sand.u32 1, %s3615_s17  }
  0xd3   : > { %s3855_s27 = sand.u32 1, %s3414_s22   ;;  %s697_s21 = scalar_lea.sflag [#allocation4], %s696_s23 }
  0xd8   : > { %p4347_p6 = scmp.ne.s32.totalorder %s4346_s8, 0 }
  0xda   : > { %3401 = dma.done.wait (%p4347_p6), %s697_s21, 8224  }
  0xdb   : > { %3403 = vsyncadd (%p4347_p6), %s697_s21, 4294959072  ;;  %s4348_s26 = sld [smem:[#allocation21_spill]]  ;;  %s2804_s19 = smul.u32 192, %s3855_s27 }
  0xdc   : > { %s4349_s15 = sld [smem:[#allocation23_spill]]  ;;  %s2547_s17 = sshll.u32 %s3855_s27, 6 }
  0xdd   : > { %s2548_s9 = sshll.u32 %s3855_s27, 7  ;;  %s4350_s5 = sld [smem:[#allocation41_spill]] }
  0xde   : > { %s4351_s3 = sld [smem:[#allocation42_spill]]  ;;  %s707_s16 = scalar_lea.vmem [#allocation9], %s3855_s27 }
  0xdf   : > { %s4352_s18 = sld [smem:[#allocation43_spill]]  ;;  %s3905_s4 = scalar_lea.vmem [#allocation11], %s2547_s17 }
  0xe0   : > { %s4354_s10 = sld [smem:[#allocation45_spill]]  ;;  %s3907_s20 = scalar_lea.vmem [#allocation12], %s2548_s9 }
  0xe1   : > { %s4287_s2 = sand.u32 1, %s4348_s26   ;;  %s4353_s26 = sld [smem:[#allocation39_spill]] }
  0xe2   : > { %p835_p1 = scmp.lt.s32.totalorder %s4349_s15, 1  ;;  %s3869_s24 = sshll.u32 %s4287_s2, 3 }
  0xe3   : > { %p2552_p11 = scmp.ne.s32.totalorder %s4349_s15, 0 }
  0xe4   : > { %s3872_s14 = scalar_select %p835_p1, %s4349_s15, 1 }
  0xe6   : > { %s2805_s11 = smul.u32 3, %s3872_s14  ;;  %s841_s13 = scalar_lea.vmem %s4350_s5, %s3872_s14 }
  0xe7   : > { %s844_s28 = scalar_lea.vmem %s4351_s3, %s3872_s14  ;;  %s847_s8 = scalar_lea.vmem %s4352_s18, %s3872_s14 }
  0xe8   : > { %s3890_s2 = scalar_lea.vmem %s4353_s26, %s2805_s11  ;;  %s2551_s30 = sshll.u32 %s3872_s14, 1 }
  0xe9   : > { %s3896_s12 = scalar_lea.vmem %s4354_s10, %s2551_s30  ;;  %s4355_s5 = sld [smem:[#allocation47_spill]] }
  0xea   : > { %s3903_s3 = scalar_lea.vmem [#allocation10], %s2804_s19  ;;  %s3909_s18 = scalar_lea.vmem [#allocation13], %s2548_s9 }
  0xeb   : > { %s834_s11 = scalar_lea.vmem [#allocation14], %s3869_s24  ;;  %859 = sbr.rel (%p2552_p11) target bundleno = 244 (0xf4), region = 120 }
  0xef   : > { %s854_s7 = scalar_lea.vmem %s4355_s5, %s3872_s14 }
  0xf0   : > { %v2650_v0 = vld [vmem:[#allocation6] sm:$0xff]  }
  0xf1   : > { %v2651_v1 = vunpack.c.l.bf16 %v2650_v0  ;;  %v2652_v2 = vunpack.c.h.bf16 %v2650_v0 }
  0xf3   : > { %864 = vst [vmem:[#allocation2] sm:$0xff] %v2651_v1  ;;  %865 = vst [vmem:[#allocation2 + $0x8] sm:$0xff] %v2652_v2 }
  0xf4 PF: > { %v2974_v5 = vld [vmem:[%s3903_s3 + $0xac] ss:$12 sps:$4 sm:$0xff]   ;;  %v2976_v6 = vld [vmem:[%s3903_s3 + $0xa8] ss:$12 sps:$4 sm:$0xff]   ;;  %v3466_v7 = vmov 0.0   ;;  %v3467_v30 = vmov 0   ;;  %v944_v56 = vlaneseq }
  0xf5   : > { %2714 = vmatprep.subr.bf16.mxu1 %v3466_v7  ;;  %v2977_v8 = vld [vmem:[%s3903_s3 + $0xb0] ss:$12 sps:$4 sm:$0xff]   ;;  %1087 = vmatprep.subr.bf16.mxu0 %v2974_v5  ;;  %v2978_v17 = vld [vmem:[%s3903_s3 + $0x94] ss:$12 sps:$4 sm:$0xff]   ;;  %v2981_v19 = vld [vmem:[%s3903_s3 + $0x98] ss:$12 sps:$4 sm:$0xff]  }
  0xf6   : > { %1088 = vmatpush1.bf16.msra.mxu0 %v2976_v6  ;;  %2715 = vmatpush3.bf16.msra.mxu1 %v2977_v8  ;;  %v2980_v18 = vld [vmem:[%s3903_s3 + $0x90] ss:$12 sps:$4 sm:$0xff]   ;;  %v2984_v21 = vld [vmem:[%s3903_s3 + $0x78] ss:$12 sps:$4 sm:$0xff]   ;;  %v2985_v22 = vld [vmem:[%s3903_s3 + $0x80] ss:$12 sps:$4 sm:$0xff]  }
  0xf7   : > { %2716 = vmatprep.subr.bf16.mxu1 %v3466_v7  ;;  %1089 = vmatprep.subr.bf16.mxu0 %v2978_v17  ;;  %v2982_v20 = vld [vmem:[%s3903_s3 + $0x7c] ss:$12 sps:$4 sm:$0xff]   ;;  %v2986_v23 = vld [vmem:[%s3903_s3 + $0x64] ss:$12 sps:$4 sm:$0xff]   ;;  %v2988_v24 = vld [vmem:[%s3903_s3 + $0x60] ss:$12 sps:$4 sm:$0xff]  }
  0xf8   : > { %v2989_v25 = vld [vmem:[%s3903_s3 + $0x68] ss:$12 sps:$4 sm:$0xff]   ;;  %v2990_v26 = vld [vmem:[%s3903_s3 + $0x4c] ss:$12 sps:$4 sm:$0xff]   ;;  %v2993_v28 = vld [vmem:[%s3903_s3 + $0x50] ss:$12 sps:$4 sm:$0xff]   ;;  %1119 = vmatprep.mubr.bf16.mxu0 %v3467_v30 }
  0xf9   : > { %v2992_v27 = vld [vmem:[%s3903_s3 + $0x48] ss:$12 sps:$4 sm:$0xff]   ;;  %vm3468_vm0 = vmmov 0   ;;  %v2996_v31 = vld [vmem:[%s3903_s3 + $0x30] ss:$12 sps:$4 sm:$0xff]   ;;  %s4356_s1 = scalar_lea.vmem [#allocation8], %s3855_s27 }
  0xfa   : > { %v3913_v3 = vld [vmem:[#allocation2] sm:$0xff]  ;;  %v3915_v4 = vld [vmem:[#allocation2 + $0x8] sm:$0xff]  ;;  %1090 = vmatpush1.bf16.msra.mxu0 %v2980_v18  ;;  %2717 = vmatpush3.bf16.msra.mxu1 %v2981_v19  ;;  %v3976_v57 = vshrl.u32 %v944_v56, 7  ;;  %vm1216_vm1 = vcmask 261120   ;;  %s3469_s6 = smov 96   ;;  %s3470_s10 = smov 64  }
  0xfb   : > { %870 = vadd.xlane.f32.xlu0 %v3913_v3  ;;  %2718 = vmatprep.subr.bf16.mxu1 %v3466_v7  ;;  %v2994_v29 = vld [vmem:[%s3903_s3 + $0x34] ss:$12 sps:$4 sm:$0xff]   ;;  %v2997_v32 = vld [vmem:[%s3903_s3 + $0x38] ss:$12 sps:$4 sm:$0xff]   ;;  %v2998_v33 = vld [vmem:[%s3903_s3 + $0x1c] ss:$12 sps:$4 sm:$0xff]  }
  0xfc   : > { %1091 = vmatprep.subr.bf16.mxu0 %v2982_v20  ;;  %2730 = vmatprep.mubr.msk.bf16.mxu1 %vm3468_vm0, %v3466_v7  ;;  %v3000_v34 = vld [vmem:[%s3903_s3 + $0x18] ss:$12 sps:$4 sm:$0xff]   ;;  %v3001_v35 = vld [vmem:[%s3903_s3 + $0x20] ss:$12 sps:$4 sm:$0xff]   ;;  %v3005_v38 = vld [vmem:[%s3903_s3 + $0x8] ss:$12 sps:$4 sm:$0xff]  }
  0xfd   : > { %v3002_v36 = vld [vmem:[%s3903_s3 + $0x4] ss:$12 sps:$4 sm:$0xff]   ;;  %v3004_v37 = vld [vmem:[%s3903_s3] ss:$12 sps:$4 sm:$0xff]   ;;  %v946_v58 = vsub.s32 0, %v3976_v57  ;;  %v954_v59 = vsub.s32 2, %v3976_v57 }
  0xfe   : > { %1092 = vmatpush1.bf16.msra.mxu0 %v2984_v21  ;;  %2719 = vmatpush3.bf16.msra.mxu1 %v2985_v22  ;;  %v2553_v47 = vld [vmem:[%s4356_s1] ss:$0 sm:$0xff]  ;;  %v950_v61 = vsub.s32 1, %v3976_v57  ;;  %s3471_s27 = smov 32   ;;  %vm1419_vm2 = vcmask 130048   ;;  %vm1714_vm3 = vcmask 523264  }
  0xff   : > { %872 = vadd.xlane.f32.xlu0 %v3915_v4  ;;  %2720 = vmatprep.subr.bf16.mxu1 %v3466_v7  ;;  %v2554_v51 = vld [vmem:[%s707_s16] ss:$0 sm:$0xff]  ;;  %vm1717_vm4 = vcmask 785408   ;;  %s4361_s26 = sld [smem:[#allocation23_spill]] }
 0x100   : > { %1093 = vmatprep.subr.bf16.mxu0 %v2986_v23  ;;  %v942_v60 = vld [vmem:[%s3890_s2] sm:$0x7] }
 0x101   : > { %v947_v0 = vrot.slane %v942_v60, %v946_v58  ;;  %v955_v1 = vrot.slane %v942_v60, %v954_v59  ;;  %v951_v6 = vrot.slane %v942_v60, %v950_v61 }
 0x102   : > { %1094 = vmatpush1.bf16.msra.mxu0 %v2988_v24  ;;  %2721 = vmatpush3.bf16.msra.mxu1 %v2989_v25 }
 0x103   : > { %1095 = vmatprep.subr.bf16.mxu0 %v2990_v26  ;;  %2722 = vmatprep.subr.bf16.mxu1 %v3466_v7 }
 0x105   : > { %p2632_p0 = scmp.ne.s32.totalorder %s4361_s26, 1 }
 0x106   : > { %1096 = vmatpush1.bf16.msra.mxu0 %v2992_v27  ;;  %2723 = vmatpush3.bf16.msra.mxu1 %v2993_v28  ;;  %s4362_s0 = sld [smem:[#allocation48_spill]] (!%p2632_p0) }
 0x107   : > { %1097 = vmatprep.subr.bf16.mxu0 %v2994_v29  ;;  %2724 = vmatprep.subr.bf16.mxu1 %v3466_v7  ;;  %s4363_s16 = sld [smem:[#allocation49_spill]] (!%p2632_p0) }
 0x10a   : > { %1098 = vmatpush1.bf16.msra.mxu0 %v2996_v31  ;;  %2725 = vmatpush3.bf16.msra.mxu1 %v2997_v32  ;;  %v2583_v32 = vld [vmem:[#allocation3] ss:$0 sm:$0xff] }
 0x10b   : > { %1099 = vmatprep.subr.bf16.mxu0 %v2998_v33  ;;  %2726 = vmatprep.subr.bf16.mxu1 %v3466_v7 }
 0x10e   : > { %1100 = vmatpush1.bf16.msra.mxu0 %v3000_v34  ;;  %2727 = vmatpush3.bf16.msra.mxu1 %v3001_v35 }
 0x10f   : > { %1101 = vmatprep.subr.bf16.mxu0 %v3002_v36  ;;  %2728 = vmatprep.subr.bf16.mxu1 %v3466_v7 }
 0x112   : > { %1102 = vmatpush1.bf16.msra.mxu0 %v3004_v37  ;;  %2729 = vmatpush3.bf16.msra.mxu1 %v3005_v38 }
 0x113   : > { %2758 = vmatprep.subr.bf16.mxu0 %v3466_v7  ;;  %2734 = vmatprep.subr.bf16.mxu1 %v3466_v7 }
 0x184   : > { %v871_v9 = vpop.xlane.xlu0 %870 }
 0x185   : > { %v875_v10 = vmul.f32 0.0078125, %v871_v9 }
 0x187   : > { %v3925_v11 = vsub.f32 %v3913_v3, %v875_v10 }
 0x188   : > { %v873_v12 = vpop.xlane.xlu0 %872 }
 0x189   : > { %v876_v13 = vmul.f32 0.0078125, %v873_v12  ;;  %v879_v14 = vmul.f32 %v3925_v11, %v3925_v11 }
 0x18b   : > { %v3930_v15 = vsub.f32 %v3915_v4, %v876_v13  ;;  %881 = vadd.xlane.f32.xlu1 %v879_v14 }
 0x18d   : > { %v880_v16 = vmul.f32 %v3930_v15, %v3930_v15 }
 0x18f   : > { %883 = vadd.xlane.f32.xlu1 %v880_v16 }
 0x214   : > { %v882_v39 = vpop.xlane.xlu1 %881 }
 0x215   : > { %v885_v40 = vmul.f32 0.0078125, %v882_v39 }
 0x217   : > { %v887_v41 = vadd.f32 1e-05, %v885_v40 }
 0x218   : > { %v884_v42 = vpop.xlane.xlu1 %883 }
 0x219   : > { %3054 = vrsqrt.f32 %v887_v41  ;;  %v886_v43 = vmul.f32 0.0078125, %v884_v42 }
 0x21b   : > { %v888_v44 = vadd.f32 1e-05, %v886_v43 }
 0x21d   : > { %3056 = vrsqrt.f32 %v888_v44 }
 0x226   : > { %v3055_v45 = vpop.eup %3054 }
 0x227   : > { %v891_v46 = vmul.f32 %v3055_v45, %v3925_v11 }
 0x229   : > { %v899_v50 = vmul.f32 %v2553_v47, %v891_v46 }
 0x22a   : > { %v3057_v48 = vpop.eup %3056 }
 0x22b   : > { %v892_v49 = vmul.f32 %v3057_v48, %v3930_v15  ;;  %v907_v53 = vadd.f32 %v2554_v51, %v899_v50 }
 0x22d   : > { %v900_v52 = vmul.f32 %v2553_v47, %v892_v49 }
 0x22f   : > { %v908_v54 = vadd.f32 %v2554_v51, %v900_v52 }
 0x231   : > { %v909_v55 = vpack.c.bf16 %v908_v54, %v907_v53 }
 0x233   : > { %1120 = vmatmul.mubr.bf16.vlgmr.msra.gmra.mxu0 %v909_v55  ;;  %2731 = vmatmul.mubr.bf16.vlgmr.msra.gmra.mxu1 %v909_v55 }
 0x234   : > { %2736 = vmatprep.mubr.msk.bf16.mxu1 %vm3468_vm0, %v3466_v7  ;;  %2760 = vmatprep.mubr.msk.bf16.mxu0 %vm3468_vm0, %v3466_v7 }
 0x2f3   : > { %v1121_v62 = vpop.f32.mrf.mxu0  ;;  %v1164_v63 = vpop.f32.mrf.mxu1 }
 0x2f4   : > { %v1122_v10 = vadd.f32 %v1121_v62, %v947_v0  ;;  %v1165_v11 = vadd.f32 %v1164_v63, %v955_v1 }
 0x2f5   : > { %v1123_v2 = vpop.f32.mrf.mxu0  ;;  %v2732_v5 = vpop.f32.mrf.mxu1 }
 0x2f6   : > { %v1124_v16 = vadd.f32 %v1123_v2, %v951_v6 }
 0x2f7   : > { %v1125_v8 = vpop.f32.mrf.mxu0  ;;  %v1167_v9 = vpop.f32.mrf.mxu1 }
 0x2f8   : > { %v1126_v12 = vadd.f32 %v1125_v8, %v947_v0  ;;  %v1168_v13 = vadd.f32 %v1167_v9, %v955_v1 }
 0x2f9   : > { %v1127_v14 = vpop.f32.mrf.mxu0  ;;  %v2733_v15 = vpop.f32.mrf.mxu1 }
 0x2fa   : > { %v1171_v17 = vpack.c.bf16 %v1126_v12, %v1122_v10  ;;  %v3986_v18 = vpack.c.bf16 %v1168_v13, %v1165_v11  ;;  %v1128_v19 = vadd.f32 %v1127_v14, %v951_v6 }
 0x2fc   : > { %v1172_v20 = vpack.c.bf16 %v1128_v19, %v1124_v16  ;;  %2759 = vmatpush3.bf16.msra.mxu0 %v3986_v18  ;;  %1193 = vrot.lane.b32.xlu1 %v1171_v17, %s3469_s6 }
 0x2fd   : > { %2770 = vmatprep.subr.bf16.mxu0 %v3466_v7 }
 0x2fe   : > { %1200 = vrot.lane.b32.xlu0 %v1172_v20, %s3469_s6  ;;  %v1221_v21 = vsel %vm1216_vm1, %v1172_v20, 0 }
 0x2ff   : > { %2735 = vmatpush3.bf16.xpose.msra.mxu1 %v1221_v21 }
 0x300   : > { %1202 = vrot.lane.b32.xlu1 %v1172_v20, %s3470_s10  ;;  %2740 = vmatprep.subr.bf16.mxu1 %v3466_v7 }
 0x302   : > { %1204 = vrot.lane.b32.xlu0 %v1172_v20, %s3471_s27 }
 0x304   : > { %1195 = vrot.lane.b32.xlu1 %v1171_v17, %s3470_s10 }
 0x306   : > { %2737 = vmatmul.mubr.msk.bf16.vlgmr.msra.gmra.mxu1 %vm1216_vm1, %v1171_v17 }
 0x307   : > { %2742 = vmatprep.mubr.msk.bf16.mxu1 %vm3468_vm0, %v3466_v7 }
 0x308   : > { %1197 = vrot.lane.b32.xlu1 %v1171_v17, %s3471_s27 }
 0x36e   : > { %v1194_v22 = vpop.permute.xlu1 %1193 }
 0x370   : > { %v1201_v23 = vpop.permute.xlu0 %1200 }
 0x371   : > { %v1268_v24 = vsel %vm1216_vm1, %v1201_v23, 0 }
 0x372   : > { %2741 = vmatpush3.bf16.xpose.msra.mxu1 %v1268_v24  ;;  %v1203_v25 = vpop.permute.xlu1 %1202 }
 0x373   : > { %2746 = vmatprep.subr.bf16.mxu1 %v3466_v7  ;;  %v1315_v26 = vsel %vm1216_vm1, %v1203_v25, 0 }
 0x374   : > { %v1205_v27 = vpop.permute.xlu0 %1204 }
 0x375   : > { %v1362_v29 = vsel %vm1216_vm1, %v1205_v27, 0 }
 0x376   : > { %v1196_v28 = vpop.permute.xlu1 %1195 }
 0x379   : > { %2743 = vmatmul.mubr.msk.bf16.vlgmr.msra.gmra.mxu1 %vm1216_vm1, %v1194_v22 }
 0x37a   : > { %2747 = vmatpush3.bf16.xpose.msra.mxu1 %v1315_v26  ;;  %2748 = vmatprep.mubr.msk.bf16.mxu1 %vm3468_vm0, %v3466_v7  ;;  %v1198_v31 = vpop.permute.xlu1 %1197 }
 0x37b   : > { %2752 = vmatprep.subr.bf16.mxu1 %v3466_v7 }
 0x381   : > { %2749 = vmatmul.mubr.msk.bf16.vlgmr.msra.gmra.mxu1 %vm1216_vm1, %v1196_v28 }
 0x382   : > { %2753 = vmatpush3.bf16.xpose.msra.mxu1 %v1362_v29  ;;  %2754 = vmatprep.mubr.msk.bf16.mxu1 %vm3468_vm0, %v3466_v7 }
 0x383   : > { %2764 = vmatprep.subr.bf16.mxu1 %v3466_v7 }
 0x389   : > { %2755 = vmatmul.mubr.msk.bf16.vlgmr.msra.gmra.mxu1 %vm1216_vm1, %v1198_v31 }
 0x38a   : > { %2766 = vmatprep.mubr.msk.bf16.mxu1 %vm3468_vm0, %v3466_v7 }
 0x3c6   : > { %v1257_v33 = vpop.f32.mrf.mxu1 }
 0x3c7   : > { %v1411_v34 = vadd.f32 %v2583_v32, %v1257_v33 }
 0x3c8   : > { %v2738_v35 = vpop.f32.mrf.mxu1 }
 0x3c9   : > { %v1420_v36 = vsel %vm1419_vm2, %v1411_v34, -inf }
 0x3ca   : > { %1421 = vmax.xlane.f32.xlu0 %v1420_v36  ;;  %v1260_v37 = vpop.f32.mrf.mxu1 }
 0x3cb   : > { %v1412_v38 = vadd.f32 %v2583_v32, %v1260_v37 }
 0x3cc   : > { %v2739_v39 = vpop.f32.mrf.mxu1 }
 0x3cd   : > { %v1423_v40 = vsel %vm1419_vm2, %v1412_v38, -inf }
 0x3ce   : > { %1424 = vmax.xlane.f32.xlu1 %v1423_v40 }
 0x439   : > { %v1304_v41 = vpop.f32.mrf.mxu1 }
 0x43a   : > { %v1413_v42 = vadd.f32 %v2583_v32, %v1304_v41 }
 0x43b   : > { %v2744_v43 = vpop.f32.mrf.mxu1 }
 0x43c   : > { %v1426_v44 = vsel %vm1419_vm2, %v1413_v42, -inf }
 0x43d   : > { %1427 = vmax.xlane.f32.xlu0 %v1426_v44  ;;  %v1307_v45 = vpop.f32.mrf.mxu1 }
 0x43e   : > { %v1414_v46 = vadd.f32 %v2583_v32, %v1307_v45 }
 0x43f   : > { %v2745_v47 = vpop.f32.mrf.mxu1 }
 0x440   : > { %v1429_v48 = vsel %vm1419_vm2, %v1414_v46, -inf }
 0x441   : > { %1430 = vmax.xlane.f32.xlu0 %v1429_v48  ;;  %v1351_v49 = vpop.f32.mrf.mxu1 }
 0x442   : > { %v1415_v50 = vadd.f32 %v2583_v32, %v1351_v49 }
 0x443   : > { %v2750_v51 = vpop.f32.mrf.mxu1 }
 0x444   : > { %v1432_v52 = vsel %vm1419_vm2, %v1415_v50, -inf }
 0x445   : > { %1433 = vmax.xlane.f32.xlu0 %v1432_v52  ;;  %v1354_v53 = vpop.f32.mrf.mxu1 }
 0x446   : > { %v1416_v54 = vadd.f32 %v2583_v32, %v1354_v53 }
 0x447   : > { %v2751_v55 = vpop.f32.mrf.mxu1 }
 0x448   : > { %v1435_v56 = vsel %vm1419_vm2, %v1416_v54, -inf }
 0x449   : > { %1436 = vmax.xlane.f32.xlu1 %v1435_v56  ;;  %v1398_v59 = vpop.f32.mrf.mxu1 }
 0x44a   : > { %v1417_v60 = vadd.f32 %v2583_v32, %v1398_v59 }
 0x44b   : > { %v2756_v62 = vpop.f32.mrf.mxu1 }
 0x44c   : > { %v1438_v63 = vsel %vm1419_vm2, %v1417_v60, -inf }
 0x44d   : > { %1439 = vmax.xlane.f32.xlu0 %v1438_v63  ;;  %v1401_v0 = vpop.f32.mrf.mxu1 }
 0x44e   : > { %v4023_v1 = vadd.f32 %v2583_v32, %v1401_v0 }
 0x44f   : > { %v2757_v2 = vpop.f32.mrf.mxu1 }
 0x450   : > { %v1441_v5 = vsel %vm1419_vm2, %v4023_v1, -inf }
 0x451   : > { %1442 = vmax.xlane.f32.xlu1 %v1441_v5 }
 0x453   : > { %v1422_v6 = vpop.xlane.xlu0 %1421 }
 0x454   : > { %v1444_v8 = vsub.f32 %v1411_v34, %v1422_v6 }
 0x456   : > { %v1452_v9 = vmul.f32 1.442695, %v1444_v8 }
 0x457   : > { %v1425_v10 = vpop.xlane.xlu1 %1424 }
 0x458   : > { %3058 = vpow2.f32 %v1452_v9  ;;  %v1445_v11 = vsub.f32 %v1412_v38, %v1425_v10 }
 0x45a   : > { %v1454_v12 = vmul.f32 1.442695, %v1445_v11 }
 0x45c   : > { %3060 = vpow2.f32 %v1454_v12 }
 0x465   : > { %v3059_v13 = vpop.eup %3058 }
 0x466   : > { %v1468_v14 = vsel %vm1419_vm2, %v3059_v13, 0.0 }
 0x467   : > { %1469 = vadd.xlane.f32.xlu0 %v1468_v14 }
 0x469   : > { %v3061_v15 = vpop.eup %3060 }
 0x46a   : > { %v1471_v16 = vsel %vm1419_vm2, %v3061_v15, 0.0 }
 0x46b   : > { %1472 = vadd.xlane.f32.xlu1 %v1471_v16 }
 0x4c6   : > { %v1428_v17 = vpop.xlane.xlu0 %1427 }
 0x4c7   : > { %v1446_v19 = vsub.f32 %v1413_v42, %v1428_v17 }
 0x4c9   : > { %v1456_v20 = vmul.f32 1.442695, %v1446_v19 }
 0x4ca   : > { %v1431_v21 = vpop.xlane.xlu0 %1430 }
 0x4cb   : > { %3062 = vpow2.f32 %v1456_v20  ;;  %v1447_v22 = vsub.f32 %v1414_v46, %v1431_v21 }
 0x4cd   : > { %v1458_v23 = vmul.f32 1.442695, %v1447_v22 }
 0x4ce   : > { %v1434_v24 = vpop.xlane.xlu0 %1433 }
 0x4cf   : > { %3064 = vpow2.f32 %v1458_v23  ;;  %v1448_v25 = vsub.f32 %v1415_v50, %v1434_v24 }
 0x4d1   : > { %v1460_v26 = vmul.f32 1.442695, %v1448_v25 }
 0x4d2   : > { %v1437_v27 = vpop.xlane.xlu1 %1436 }
 0x4d3   : > { %3066 = vpow2.f32 %v1460_v26  ;;  %v1449_v28 = vsub.f32 %v1416_v54, %v1437_v27 }
 0x4d5   : > { %v1462_v29 = vmul.f32 1.442695, %v1449_v28  ;;  %v3006_v28 = vld [vmem:[%s3905_s4 + $0x38] sm:$0xff]  }
 0x4d6   : > { %v1440_v31 = vpop.xlane.xlu0 %1439 }
 0x4d7   : > { %3068 = vpow2.f32 %v1462_v29  ;;  %v1450_v32 = vsub.f32 %v1417_v60, %v1440_v31 }
 0x4d8   : > { %v3063_v33 = vpop.eup %3062 }
 0x4d9   : > { %v1464_v34 = vmul.f32 1.442695, %v1450_v32  ;;  %v1474_v35 = vsel %vm1419_vm2, %v3063_v33, 0.0  ;;  %v3007_v32 = vld [vmem:[%s3905_s4 + $0x30] sm:$0xff]  }
 0x4da   : > { %1475 = vadd.xlane.f32.xlu0 %v1474_v35  ;;  %v1443_v44 = vpop.xlane.xlu1 %1442  ;;  %v3008_v35 = vld [vmem:[%s3905_s4 + $0x28] sm:$0xff]  }
 0x4db   : > { %3070 = vpow2.f32 %v1464_v34  ;;  %v1451_v49 = vsub.f32 %v4023_v1, %v1443_v44 }
 0x4dc   : > { %v3065_v36 = vpop.eup %3064 }
 0x4dd   : > { %v1477_v37 = vsel %vm1419_vm2, %v3065_v36, 0.0  ;;  %v1466_v53 = vmul.f32 1.442695, %v1451_v49 }
 0x4de   : > { %1478 = vadd.xlane.f32.xlu1 %v1477_v37 }
 0x4e0   : > { %v3067_v38 = vpop.eup %3066 }
 0x4e1   : > { %v1480_v39 = vsel %vm1419_vm2, %v3067_v38, 0.0 }
 0x4e2   : > { %1481 = vadd.xlane.f32.xlu0 %v1480_v39  ;;  %v3009_v39 = vld [vmem:[%s3905_s4 + $0x20] sm:$0xff]  }
 0x4e4   : > { %v3069_v40 = vpop.eup %3068 }
 0x4e5   : > { %v1483_v41 = vsel %vm1419_vm2, %v3069_v40, 0.0 }
 0x4e6   : > { %1484 = vadd.xlane.f32.xlu1 %v1483_v41  ;;  %v3011_v41 = vld [vmem:[%s3905_s4 + $0x10] sm:$0xff]  }
 0x4e8   : > { %v3071_v42 = vpop.eup %3070 }
 0x4e9   : > { %v1486_v43 = vsel %vm1419_vm2, %v3071_v42, 0.0 }
 0x4ea   : > { %1487 = vadd.xlane.f32.xlu0 %v1486_v43  ;;  %v3013_v43 = vld [vmem:[%s3905_s4] sm:$0xff]  }
 0x4f0   : > { %v1470_v45 = vpop.xlane.xlu0 %1469 }
 0x4f1   : > { %3072 = vrcp.f32 %v1470_v45 }
 0x4f4   : > { %v1473_v46 = vpop.xlane.xlu1 %1472 }
 0x4f5   : > { %3074 = vrcp.f32 %v1473_v46 }
 0x4f6   : > { %3076 = vpow2.f32 %v1466_v53 }
 0x4f7   : > { %1210 = vrot.lane.b32.xlu1 %v3986_v18, %s3470_s10 }
 0x4fe   : > { %v3073_v47 = vpop.eup %3072 }
 0x4ff   : > { %v1500_v50 = vmul.f32 %v3073_v47, %v3059_v13 }
 0x500   : > { %1207 = vrot.lane.b32.xlu0 %v3986_v18, %s3469_s6 }
 0x502   : > { %v3075_v48 = vpop.eup %3074 }
 0x503   : > { %v1501_v51 = vmul.f32 %v3075_v48, %v3061_v15  ;;  %v3077_v54 = vpop.eup %3076 }
 0x504   : > { %v1489_v55 = vsel %vm1419_vm2, %v3077_v54, 0.0 }
 0x505   : > { %v1508_v52 = vpack.c.bf16 %v1501_v51, %v1500_v50 }
 0x507   : > { %2761 = vmatmul.mubr.msk.bf16.vlgmr.msra.gmra.mxu0 %vm1419_vm2, %v1508_v52 }
 0x508   : > { %2772 = vmatprep.mubr.msk.bf16.mxu0 %vm3468_vm0, %v3466_v7 }
 0x51b   : > { %1490 = vadd.xlane.f32.xlu1 %v1489_v55 }
 0x52c   : > { %1213 = vrot.lane.b32.xlu1 %v3986_v18, %s3471_s27 }
 0x563   : > { %v1476_v56 = vpop.xlane.xlu0 %1475 }
 0x564   : > { %3078 = vrcp.f32 %v1476_v56 }
 0x567   : > { %v1479_v59 = vpop.xlane.xlu1 %1478 }
 0x568   : > { %3080 = vrcp.f32 %v1479_v59 }
 0x56b   : > { %v1482_v60 = vpop.xlane.xlu0 %1481 }
 0x56c   : > { %3082 = vrcp.f32 %v1482_v60 }
 0x56f   : > { %v1485_v62 = vpop.xlane.xlu1 %1484 }
 0x570   : > { %3084 = vrcp.f32 %v1485_v62 }
 0x571   : > { %v3079_v63 = vpop.eup %3078 }
 0x572   : > { %v1502_v5 = vmul.f32 %v3079_v63, %v3063_v33 }
 0x573   : > { %v1488_v0 = vpop.xlane.xlu0 %1487  ;;  %v1211_v1 = vpop.permute.xlu1 %1210 }
 0x574   : > { %2771 = vmatpush3.bf16.msra.mxu0 %v1211_v1  ;;  %3086 = vrcp.f32 %v1488_v0 }
 0x575   : > { %v3081_v2 = vpop.eup %3080  ;;  %2782 = vmatprep.subr.bf16.mxu0 %v3466_v7 }
 0x576   : > { %v1503_v6 = vmul.f32 %v3081_v2, %v3065_v36 }
 0x577   : > { %v1208_v8 = vpop.permute.xlu0 %1207 }
 0x578   : > { %2765 = vmatpush3.bf16.msra.mxu1 %v1208_v8  ;;  %v1509_v18 = vpack.c.bf16 %v1503_v6, %v1502_v5  ;;  %v2588_v5 = vld [vmem:[%s841_s13] ss:$0 sm:$0xff] }
 0x579   : > { %2776 = vmatprep.subr.bf16.mxu1 %v3466_v7  ;;  %v3083_v9 = vpop.eup %3082 }
 0x57a   : > { %v1504_v11 = vmul.f32 %v3083_v9, %v3067_v38 }
 0x57b   : > { %2767 = vmatmul.mubr.msk.bf16.vlgmr.msra.gmra.mxu1 %vm1419_vm2, %v1509_v18 }
 0x57c   : > { %2778 = vmatprep.mubr.msk.bf16.mxu1 %vm3468_vm0, %v3466_v7 }
 0x57d   : > { %v3085_v10 = vpop.eup %3084 }
 0x57e   : > { %v1505_v12 = vmul.f32 %v3085_v10, %v3069_v40  ;;  %v3010_v40 = vld [vmem:[%s3905_s4 + $0x18] sm:$0xff]  }
 0x580   : > { %v1510_v13 = vpack.c.bf16 %v1505_v12, %v1504_v11 }
 0x581   : > { %v3087_v16 = vpop.eup %3086 }
 0x582   : > { %2773 = vmatmul.mubr.msk.bf16.vlgmr.msra.gmra.mxu0 %vm1419_vm2, %v1510_v13  ;;  %v1506_v19 = vmul.f32 %v3087_v16, %v3071_v42  ;;  %v3012_v42 = vld [vmem:[%s3905_s4 + $0x8] sm:$0xff]  }
 0x583   : > { %2798 = vmatprep.mubr.msk.bf16.mxu0 %vm3468_vm0, %v3466_v7  ;;  %2783 = vmatpush3.bf16.msra.mxu0 %v3006_v28  ;;  %v3025_v28 = vld [vmem:[%s3907_s20 + $0x44] ss:$8 sps:$4 sm:$0xff]  }
 0x584   : > { %2784 = vmatprep.subr.bf16.mxu0 %v3466_v7 }
 0x587   : > { %2785 = vmatpush3.bf16.msra.mxu0 %v3007_v32  ;;  %v3031_v32 = vld [vmem:[%s3907_s20 + $0x24] ss:$8 sps:$4 sm:$0xff]  }
 0x588   : > { %2786 = vmatprep.subr.bf16.mxu0 %v3466_v7 }
 0x58b   : > { %2787 = vmatpush3.bf16.msra.mxu0 %v3008_v35  ;;  %v3037_v35 = vld [vmem:[%s3907_s20 + $0x4] ss:$8 sps:$4 sm:$0xff]  }
 0x58c   : > { %2788 = vmatprep.subr.bf16.mxu0 %v3466_v7 }
 0x58f   : > { %2789 = vmatpush3.bf16.msra.mxu0 %v3009_v39  ;;  %v3040_v39 = vld [vmem:[%s3909_s18 + $0x70] sm:$0xff]  }
 0x590   : > { %2790 = vmatprep.subr.bf16.mxu0 %v3466_v7 }
 0x593   : > { %2791 = vmatpush3.bf16.msra.mxu0 %v3010_v40  ;;  %v3041_v40 = vld [vmem:[%s3909_s18 + $0x30] sm:$0xff]  }
 0x594   : > { %2792 = vmatprep.subr.bf16.mxu0 %v3466_v7 }
 0x597   : > { %2793 = vmatpush3.bf16.msra.mxu0 %v3011_v41  ;;  %v3042_v41 = vld [vmem:[%s3909_s18 + $0x68] sm:$0xff]  }
 0x598   : > { %2794 = vmatprep.subr.bf16.mxu0 %v3466_v7 }
 0x59b   : > { %2795 = vmatpush3.bf16.msra.mxu0 %v3012_v42  ;;  %v3043_v42 = vld [vmem:[%s3909_s18 + $0x28] sm:$0xff]  }
 0x59c   : > { %2796 = vmatprep.subr.bf16.mxu0 %v3466_v7 }
 0x59f   : > { %2797 = vmatpush3.bf16.msra.mxu0 %v3013_v43  ;;  %v3044_v43 = vld [vmem:[%s3909_s18 + $0x60] sm:$0xff]  }
 0x5a4   : > { %v1491_v14 = vpop.xlane.xlu1 %1490 }
 0x5a5   : > { %3088 = vrcp.f32 %v1491_v14  ;;  %v3014_v14 = vld [vmem:[%s3907_s20 + $0x70] ss:$8 sps:$4 sm:$0xff]  }
 0x5a8   : > { %v1214_v15 = vpop.permute.xlu1 %1213 }
 0x5a9   : > { %2777 = vmatpush3.bf16.msra.mxu1 %v1214_v15  ;;  %v3016_v15 = vld [vmem:[%s3907_s20 + $0x74] ss:$8 sps:$4 sm:$0xff]  }
 0x5aa   : > { %1967 = vmatprep.subr.bf16.mxu1 %v3016_v15 }
 0x5b2   : > { %v3089_v17 = vpop.eup %3088 }
 0x5b3   : > { %v1507_v20 = vmul.f32 %v3089_v17, %v3077_v54 }
 0x5b5   : > { %v1511_v21 = vpack.c.bf16 %v1507_v20, %v1506_v19 }
 0x5b7   : > { %2779 = vmatmul.mubr.msk.bf16.vlgmr.msra.gmra.mxu1 %vm1419_vm2, %v1511_v21 }
 0x5b8   : > { %1999 = vmatprep.mubr.bf16.mxu1 %v3467_v30  ;;  %1968 = vmatpush1.bf16.msra.mxu1 %v3014_v14 }
 0x5c7   : > { %v1549_v22 = vpop.f32.mrf.mxu0 }
 0x5c9   : > { %v2762_v23 = vpop.f32.mrf.mxu0 }
 0x5ca   : > { %v3019_v23 = vld [vmem:[%s3907_s20 + $0x64] ss:$8 sps:$4 sm:$0xff]  }
 0x5cb   : > { %v1552_v24 = vpop.f32.mrf.mxu0  ;;  %1969 = vmatprep.subr.bf16.mxu1 %v3019_v23 }
 0x5cd   : > { %v2763_v25 = vpop.f32.mrf.mxu0 }
 0x5ce   : > { %v3022_v25 = vld [vmem:[%s3907_s20 + $0x54] ss:$8 sps:$4 sm:$0xff]  }
 0x63b   : > { %v1593_v26 = vpop.f32.mrf.mxu1 }
 0x63d   : > { %v2768_v27 = vpop.f32.mrf.mxu1 }
 0x63e   : > { %v3023_v27 = vld [vmem:[%s3907_s20 + $0x40] ss:$8 sps:$4 sm:$0xff]  }
 0x63f   : > { %v1596_v29 = vpop.f32.mrf.mxu1 }
 0x640   : > { %v2959_v31 = vpack.i.bf16 %v1596_v29, %v1593_v26  ;;  %v3020_v26 = vld [vmem:[%s3907_s20 + $0x50] ss:$8 sps:$4 sm:$0xff]   ;;  %v3028_v29 = vld [vmem:[%s3907_s20 + $0x34] ss:$8 sps:$4 sm:$0xff]  }
 0x641   : > { %v2769_v33 = vpop.f32.mrf.mxu1 }
 0x642   : > { %v1637_v34 = vpop.f32.mrf.mxu0  ;;  %2960 = vrot.lane.b32.xlu1 %v2959_v31, %s3471_s27  ;;  %v3026_v31 = vld [vmem:[%s3907_s20 + $0x30] ss:$8 sps:$4 sm:$0xff]   ;;  %v3029_v33 = vld [vmem:[%s3907_s20 + $0x20] ss:$8 sps:$4 sm:$0xff]  }
 0x644   : > { %v2774_v30 = vpop.f32.mrf.mxu0 }
 0x645   : > { %v3032_v30 = vld [vmem:[%s3907_s20 + $0x10] ss:$8 sps:$4 sm:$0xff]  }
 0x646   : > { %v1640_v36 = vpop.f32.mrf.mxu0 }
 0x647   : > { %v2964_v37 = vpack.i.bf16 %v1640_v36, %v1637_v34  ;;  %v3034_v34 = vld [vmem:[%s3907_s20 + $0x14] ss:$8 sps:$4 sm:$0xff]   ;;  %v3035_v36 = vld [vmem:[%s3907_s20] ss:$8 sps:$4 sm:$0xff]  }
 0x648   : > { %v2775_v38 = vpop.f32.mrf.mxu0 }
 0x649   : > { %2965 = vrot.lane.b32.xlu0 %v2964_v37, %s3470_s10  ;;  %v3038_v37 = vld [vmem:[%s3909_s18 + $0x78] sm:$0xff]  }
 0x64a   : > { %v3039_v38 = vld [vmem:[%s3909_s18 + $0x38] sm:$0xff]   ;;  %2692 = vmatprep.subr.bf16.mxu0 %v3038_v37 }
 0x677   : > { %v1681_v44 = vpop.f32.mrf.mxu1 }
 0x679   : > { %v2780_v45 = vpop.f32.mrf.mxu1 }
 0x67a   : > { %v3046_v45 = vld [vmem:[%s3909_s18 + $0x58] sm:$0xff]  }
 0x67b   : > { %v1684_v46 = vpop.f32.mrf.mxu1 }
 0x67c   : > { %v2969_v47 = vpack.i.bf16 %v1684_v46, %v1681_v44  ;;  %v3045_v44 = vld [vmem:[%s3909_s18 + $0x20] sm:$0xff]   ;;  %v3047_v46 = vld [vmem:[%s3909_s18 + $0x18] sm:$0xff]  }
 0x67d   : > { %v2781_v48 = vpop.f32.mrf.mxu1 }
 0x67e   : > { %2970 = vrot.lane.b32.xlu1 %v2969_v47, %s3469_s6 }
 0x6b4   : > { %v2961_v49 = vpop.permute.xlu1 %2960 }
 0x6b5   : > { %v2963_v51 = vunpack.i.h.bf16 %v2961_v49  ;;  %v2962_v52 = vunpack.i.l.bf16 %v2961_v49 }
 0x6b7   : > { %v1713_v7 = vsel %vm1216_vm1, %v1552_v24, %v2963_v51  ;;  %v1712_v56 = vsel %vm1216_vm1, %v1549_v22, %v2962_v52  ;;  %v3017_v24 = vld [vmem:[%s3907_s20 + $0x60] ss:$8 sps:$4 sm:$0xff]  }
 0x6b8   : > { %1970 = vmatpush1.bf16.msra.mxu1 %v3017_v24 }
 0x6b9   : > { %1971 = vmatprep.subr.bf16.mxu1 %v3022_v25 }
 0x6bb   : > { %v2966_v50 = vpop.permute.xlu0 %2965 }
 0x6bc   : > { %v2968_v53 = vunpack.i.h.bf16 %v2966_v50  ;;  %v2967_v54 = vunpack.i.l.bf16 %v2966_v50  ;;  %1972 = vmatpush1.bf16.msra.mxu1 %v3020_v26 }
 0x6bd   : > { %1973 = vmatprep.subr.bf16.mxu1 %v3025_v28 }
 0x6be   : > { %v1715_v62 = vsel %vm1714_vm3, %v1712_v56, %v2967_v54  ;;  %v1716_v63 = vsel %vm1714_vm3, %v1713_v7, %v2968_v53 }
 0x6c0   : > { %1974 = vmatpush1.bf16.msra.mxu1 %v3023_v27 }
 0x6c1   : > { %1975 = vmatprep.subr.bf16.mxu1 %v3028_v29 }
 0x6c4   : > { %1976 = vmatpush1.bf16.msra.mxu1 %v3026_v31 }
 0x6c5   : > { %1977 = vmatprep.subr.bf16.mxu1 %v3031_v32 }
 0x6c8   : > { %1978 = vmatpush1.bf16.msra.mxu1 %v3029_v33 }
 0x6c9   : > { %1979 = vmatprep.subr.bf16.mxu1 %v3034_v34 }
 0x6cc   : > { %1980 = vmatpush1.bf16.msra.mxu1 %v3032_v30 }
 0x6cd   : > { %1981 = vmatprep.subr.bf16.mxu1 %v3037_v35 }
 0x6d0   : > { %1982 = vmatpush1.bf16.msra.mxu1 %v3035_v36 }
 0x6f0   : > { %v2971_v55 = vpop.permute.xlu1 %2970 }
 0x6f1   : > { %v2973_v59 = vunpack.i.h.bf16 %v2971_v55  ;;  %v2972_v60 = vunpack.i.l.bf16 %v2971_v55  ;;  %v2597_v55 = vld [vmem:[%s844_s28] ss:$0 sm:$0xff] }
 0x6f3   : > { %v1719_v0 = vsel %vm1717_vm4, %v1716_v63, %v2973_v59  ;;  %v1718_v1 = vsel %vm1717_vm4, %v1715_v62, %v2972_v60  ;;  %v2598_v60 = vld [vmem:[%s847_s8] ss:$0 sm:$0xff] }
 0x6f4   : > { %v1720_v2 = vpack.c.bf16 %v1719_v0, %v1718_v1 }
 0x6f6   : > { %2799 = vmatmul.mubr.bf16.vlgmr.msra.gmra.mxu0 %v1720_v2  ;;  %v3048_v2 = vld [vmem:[%s3909_s18 + $0x50] sm:$0xff]  }
 0x6f7   : > { %2693 = vmatpush3.bf16.msra.mxu0 %v3039_v38 }
 0x6f8   : > { %2694 = vmatprep.subr.bf16.mxu0 %v3040_v39 }
 0x6fb   : > { %2695 = vmatpush3.bf16.msra.mxu0 %v3041_v40 }
 0x6fc   : > { %2696 = vmatprep.subr.bf16.mxu0 %v3042_v41 }
 0x6ff   : > { %2697 = vmatpush3.bf16.msra.mxu0 %v3043_v42 }
 0x700   : > { %2698 = vmatprep.subr.bf16.mxu0 %v3044_v43 }
 0x703   : > { %2699 = vmatpush3.bf16.msra.mxu0 %v3045_v44 }
 0x704   : > { %2700 = vmatprep.subr.bf16.mxu0 %v3046_v45 }
 0x707   : > { %2701 = vmatpush3.bf16.msra.mxu0 %v3047_v46 }
 0x708   : > { %2702 = vmatprep.subr.bf16.mxu0 %v3048_v2 }
 0x7b6   : > { %v1809_v6 = vpop.f32.mrf.mxu0 }
 0x7b7   : > { %v1810_v8 = vadd.f32 %v2588_v5, %v1809_v6  ;;  %v3050_v6 = vld [vmem:[%s3909_s18 + $0x48] sm:$0xff]  }
 0x7b8   : > { %v2800_v18 = vpop.f32.mrf.mxu0 }
 0x7b9   : > { %v4081_v9 = vadd.f32 %v1810_v8, %v3913_v3  ;;  %v3051_v8 = vld [vmem:[%s3909_s18 + $0x8] sm:$0xff]   ;;  %v3052_v18 = vld [vmem:[%s3909_s18 + $0x40] sm:$0xff]  }
 0x7ba   : > { %v1812_v10 = vpop.f32.mrf.mxu0 }
 0x7bb   : > { %v1813_v11 = vadd.f32 %v2588_v5, %v1812_v10  ;;  %1820 = vadd.xlane.f32.xlu0 %v4081_v9  ;;  %v3049_v5 = vld [vmem:[%s3909_s18 + $0x10] sm:$0xff]   ;;  %v3053_v10 = vld [vmem:[%s3909_s18] sm:$0xff]  }
 0x7bc   : > { %v2801_v12 = vpop.f32.mrf.mxu0  ;;  %2703 = vmatpush3.bf16.msra.mxu0 %v3049_v5 }
 0x7bd   : > { %v4085_v13 = vadd.f32 %v1813_v11, %v3915_v4  ;;  %2704 = vmatprep.subr.bf16.mxu0 %v3050_v6  ;;  %v1875_v11 = vld [vmem:[%s3896_s12] sm:$0x3] }
 0x7be   : > { %v1884_v14 = vrot.slane %v1875_v11, %v950_v61  ;;  %v1880_v15 = vrot.slane %v1875_v11, %v946_v58  ;;  %v2631_v58 = vld [vmem:[%s854_s7] ss:$0 sm:$0xff] }
 0x7bf   : > { %1822 = vadd.xlane.f32.xlu1 %v4085_v13 }
 0x7c0   : > { %2705 = vmatpush3.bf16.msra.mxu0 %v3051_v8 }
 0x7c1   : > { %2706 = vmatprep.subr.bf16.mxu0 %v3052_v18 }
 0x7c4   : > { %2707 = vmatpush3.bf16.msra.mxu0 %v3053_v10 }
 0x844   : > { %v1821_v3 = vpop.xlane.xlu0 %1820 }
 0x845   : > { %v1824_v16 = vmul.f32 0.0078125, %v1821_v3 }
 0x847   : > { %v4091_v17 = vsub.f32 %v4081_v9, %v1824_v16 }
 0x848   : > { %v1823_v19 = vpop.xlane.xlu1 %1822 }
 0x849   : > { %v1825_v4 = vmul.f32 0.0078125, %v1823_v19  ;;  %v1828_v20 = vmul.f32 %v4091_v17, %v4091_v17 }
 0x84b   : > { %v4096_v21 = vsub.f32 %v4085_v13, %v1825_v4  ;;  %1830 = vadd.xlane.f32.xlu0 %v1828_v20 }
 0x84d   : > { %v1829_v22 = vmul.f32 %v4096_v21, %v4096_v21 }
 0x84f   : > { %1832 = vadd.xlane.f32.xlu0 %v1829_v22 }
 0x8d4   : > { %v1831_v47 = vpop.xlane.xlu0 %1830 }
 0x8d5   : > { %v1834_v48 = vmul.f32 0.0078125, %v1831_v47 }
 0x8d7   : > { %v1836_v49 = vadd.f32 1e-05, %v1834_v48 }
 0x8d8   : > { %v1833_v50 = vpop.xlane.xlu0 %1832 }
 0x8d9   : > { %3090 = vrsqrt.f32 %v1836_v49  ;;  %v1835_v51 = vmul.f32 0.0078125, %v1833_v50 }
 0x8db   : > { %v1837_v52 = vadd.f32 1e-05, %v1835_v51 }
 0x8dd   : > { %3092 = vrsqrt.f32 %v1837_v52 }
 0x8e6   : > { %v3091_v53 = vpop.eup %3090 }
 0x8e7   : > { %v1840_v54 = vmul.f32 %v3091_v53, %v4091_v17 }
 0x8e9   : > { %v1848_v59 = vmul.f32 %v2597_v55, %v1840_v54 }
 0x8ea   : > { %v3093_v7 = vpop.eup %3092 }
 0x8eb   : > { %v1841_v56 = vmul.f32 %v3093_v7, %v4096_v21  ;;  %v1856_v63 = vadd.f32 %v2598_v60, %v1848_v59 }
 0x8ed   : > { %v1849_v62 = vmul.f32 %v2597_v55, %v1841_v56 }
 0x8ef   : > { %v1857_v0 = vadd.f32 %v2598_v60, %v1849_v62 }
 0x8f1   : > { %v1858_v1 = vpack.c.bf16 %v1857_v0, %v1856_v63 }
 0x8f3   : > { %2000 = vmatmul.mubr.bf16.vlgmr.msra.gmra.mxu1 %v1858_v1 }
 0x9b3   : > { %v2001_v12 = vpop.f32.mrf.mxu1 }
 0x9b4   : > { %v2002_v4 = vadd.f32 %v2001_v12, %v1880_v15 }
 0x9b5   : > { %v2003_v3 = vpop.f32.mrf.mxu1 }
 0x9b6   : > { %v2004_v17 = vadd.f32 %v2003_v3, %v1884_v14  ;;  %v2010_v25 = vmax.f32 %v2002_v4, 0.0 }
 0x9b7   : > { %v2005_v16 = vpop.f32.mrf.mxu1 }
 0x9b8   : > { %v2006_v19 = vadd.f32 %v2005_v16, %v1880_v15  ;;  %v2011_v23 = vmax.f32 %v2004_v17, 0.0 }
 0x9b9   : > { %v2007_v20 = vpop.f32.mrf.mxu1 }
 0x9ba   : > { %v2008_v21 = vadd.f32 %v2007_v20, %v1884_v14  ;;  %v2012_v22 = vmax.f32 %v2006_v19, 0.0 }
 0x9bc   : > { %v2013_v24 = vmax.f32 %v2008_v21, 0.0  ;;  %v2014_v27 = vpack.c.bf16 %v2012_v22, %v2010_v25 }
 0x9be   : > { %v2015_v26 = vpack.c.bf16 %v2013_v24, %v2011_v23 }
 0x9c0   : > { %2176 = vmatprep.mubr.bf16.mxu0 %v2015_v26 }
 0x9c1   : > { %2177 = vmatmul.mubr.bf16.vlgmr.msra.gmra.mxu0 %v2014_v27 }
 0xa81   : > { %v2708_v61 = vpop.f32.mrf.mxu0 }
 0xa83   : > { %v2709_v28 = vpop.f32.mrf.mxu0 }
 0xa84   : > { %v2710_v57 = vadd.f32 %v2709_v28, %v2708_v61 }
 0xa85   : > { %v2711_v29 = vpop.f32.mrf.mxu0 }
 0xa86   : > { %v2185_v31 = vadd.f32 %v2710_v57, %v4081_v9 }
 0xa87   : > { %v2712_v32 = vpop.f32.mrf.mxu0 }
 0xa88   : > { %v2194_v33 = vadd.f32 %v2631_v58, %v2185_v31  ;;  %v2713_v34 = vadd.f32 %v2712_v32, %v2711_v29 }
 0xa8a   : > { %2196 = vst [vmem:[#allocation2] sm:$0xff] %v2194_v33  ;;  %v2186_v30 = vadd.f32 %v2713_v34, %v4085_v13  ;;  %2201 = sbr.rel (%p2632_p0) target bundleno = 3016 (0xbc8), region = 124 }
 0xa8c   : > { %v2195_v35 = vadd.f32 %v2631_v58, %v2186_v30 }
 0xa8e   : > { %2197 = vst [vmem:[#allocation2 + $0x8] sm:$0xff] %v2195_v35 }
 0xa8f   : > { %2204 = vadd.xlane.f32.xlu0 %v2194_v33  ;;  %v2633_v50 = vld [vmem:[%s4362_s0] ss:$0 sm:$0xff] }
 0xa90   : > { %v2634_v54 = vld [vmem:[%s4363_s16] ss:$0 sm:$0xff] }
 0xa93   : > { %2206 = vadd.xlane.f32.xlu0 %v2195_v35 }
 0xb18   : > { %v2205_v36 = vpop.xlane.xlu0 %2204 }
 0xb19   : > { %v2208_v37 = vmul.f32 0.0078125, %v2205_v36 }
 0xb1b   : > { %v2210_v38 = vsub.f32 %v2194_v33, %v2208_v37 }
 0xb1c   : > { %v2207_v39 = vpop.xlane.xlu0 %2206 }
 0xb1d   : > { %v2209_v40 = vmul.f32 0.0078125, %v2207_v39  ;;  %v2212_v41 = vmul.f32 %v2210_v38, %v2210_v38 }
 0xb1f   : > { %v2211_v9 = vsub.f32 %v2195_v35, %v2209_v40  ;;  %2214 = vadd.xlane.f32.xlu1 %v2212_v41 }
 0xb21   : > { %v2213_v42 = vmul.f32 %v2211_v9, %v2211_v9 }
 0xb23   : > { %2216 = vadd.xlane.f32.xlu1 %v2213_v42 }
 0xba8   : > { %v2215_v43 = vpop.xlane.xlu1 %2214 }
 0xba9   : > { %v2218_v44 = vmul.f32 0.0078125, %v2215_v43 }
 0xbab   : > { %v2220_v13 = vadd.f32 1e-05, %v2218_v44 }
 0xbac   : > { %v2217_v45 = vpop.xlane.xlu1 %2216 }
 0xbad   : > { %3094 = vrsqrt.f32 %v2220_v13  ;;  %v2219_v46 = vmul.f32 0.0078125, %v2217_v45 }
 0xbaf   : > { %v2221_v47 = vadd.f32 1e-05, %v2219_v46 }
 0xbb1   : > { %3096 = vrsqrt.f32 %v2221_v47 }
 0xbba   : > { %v3095_v48 = vpop.eup %3094 }
 0xbbb   : > { %v2224_v49 = vmul.f32 %v3095_v48, %v2210_v38 }
 0xbbd   : > { %v2232_v52 = vmul.f32 %v2633_v50, %v2224_v49 }
 0xbbe   : > { %v3097_v51 = vpop.eup %3096 }
 0xbbf   : > { %v2225_v53 = vmul.f32 %v3097_v51, %v2211_v9  ;;  %v2240_v7 = vadd.f32 %v2634_v54, %v2232_v52 }
 0xbc1   : > { %v2233_v55 = vmul.f32 %v2633_v50, %v2225_v53 }
 0xbc3   : > { %v2241_v56 = vadd.f32 %v2634_v54, %v2233_v55 }
 0xbc5   : > { %v2656_v59 = vpack.c.bf16 %v2241_v56, %v2240_v7 }
 0xbc7   : > { %2657 = vst [vmem:[%s834_s11] sm:$0xff] %v2656_v59  }
 0xbc8 PF: > { %s4364_s3 = sld [smem:[#allocation24_spill]]  ;;  %s2266_s15 = sshll.u32 %s834_s11, 4  ;;  %s4172_s15 = int_to_ptr.vmem [resolvable:$true] %s2266_s15 }
 0xbc9   : > { %s4366_s1 = sld [smem:[#allocation50_spill]]  ;;  %s3322_s9 = scalar_lea.vmem %s4172_s15, 128 }
 0xbca   : > { %s4367_s6 = sld [smem:[#allocation21_spill]]  ;;  %p3323_p7 = scmp.ne.s32.totalorder %s4172_s15, %s3322_s9 }
 0xbcb   : > { %s4368_s27 = sld [smem:[#allocation32_spill]]  ;;  %s3472_s2 = smov [#allocation14]  }
 0xbcc   : > { %s3326_s13 = sshll.u32 %s3472_s2, 4  ;;  %s3327_s13 = int_to_ptr.vmem [resolvable:$false] %s3326_s13 }
 0xbcd   : > { %s3328_s23 = scalar_lea.vmem %s3327_s13, 256  ;;  %p3329_p3 = scmp.lt.s32.totalorder %s4172_s15, %s3327_s13 }
 0xbce   : > { %s4365_s4 = sshll.u32 %s4364_s3, 7  ;;  %p3330_p10 = scmp.lt.s32.totalorder %s3328_s23, %s3322_s9 }
 0xbcf   : > { %s4168_s30 = scalar_lea.hbm %s4366_s1, %s4365_s4 }
 0xbd0   : > { %s4369_s19 = sand.u32 1, %s4367_s6   ;;  %p3331_p12 = por %p3330_p10, %p3329_p3 }
 0xbd1   : > { %s4176_s17 = scalar_lea.sflag [#allocation5], %s4369_s19  ;;  %p4370_p9 = scmp.ne.s32.totalorder %s4368_s27, 0 }
 0xbd3   : > { %p3324_p13 = pnand %p3323_p7, %p4370_p9 }
 0xbd5   : > { %p3325_p4 = pneg %p3324_p13 }
 0xbd7   : > { %p3332_p5 = pnand %p3331_p12, %p3325_p4 }
 0xbd9   : > { %3335 = shalt.err (!%p3332_p5)
}
 0xbda   : > { %s3336_s24 = scalar_lea.hbm %s4168_s30, 128  ;;  %s3340_s12 = scalar_lea.hbm %s4366_s1, 256 }
 0xbdb   : > { %p3337_p8 = scmp.ne.s32.totalorder %s4168_s30, %s3336_s24  ;;  %p3341_p1 = scmp.lt.s32.totalorder %s4168_s30, %s4366_s1 }
 0xbdc   : > { %p3342_p11 = scmp.lt.s32.totalorder %s3340_s12, %s3336_s24 }
 0xbdd   : > { %p3338_p2 = pnand %p3337_p8, %p4370_p9 }
 0xbde   : > { %p3343_p0 = por %p3342_p11, %p3341_p1 }
 0xbdf   : > { %p3339_p6 = pneg %p3338_p2 }
 0xbe1   : > { %p3344_p7 = pnand %p3343_p0, %p3339_p6 }
 0xbe3   : > { %3347 = shalt.err (!%p3344_p7)
}
 0xbe4   : > { %s3473_s26 = smov 4  }
 0xbe5   : > { %2822 = dma.vmem_to_hbm [thread:$0]  (%p4370_p9), %s4172_s15, 128, %s4168_s30, %s4176_s17, %s3470_s10, %s3470_s10, %s3473_s26  }
 0xbe6 PF: > { %s4371_s14 = sld [smem:[#allocation26_spill]] }
 0xbe7   : > { %s4372_s25 = sld [smem:[#allocation20_spill]] }
 0xbe8   : > { %s4373_s0 = sld [smem:[#allocation33_spill]] }
 0xbec   : > { %p2855_p13 = scmp.ge.s32.totalorder %s4371_s14, 2 }
 0xbed   : > { %s2281_s5 = sand.u32 1, %s4372_s25  }
 0xbee   : > { %p4374_p4 = scmp.ne.s32.totalorder %s4373_s0, 0  ;;  %s2282_s7 = scalar_lea.sflag [#allocation5], %s2281_s5 }
 0xbf0   : > { %p2851_p3 = pnand %p2855_p13, %p4374_p4 }
 0xbf2   : > { %p2852_p10 = pneg %p2851_p3 }
 0xbf4   : > { %3405 = dma.done.wait (%p2852_p10), %s2282_s7, 128  }
 0xbf5   : > { %3407 = vsyncadd (%p2852_p10), %s2282_s7, 4294967168  ;;  %s31_s0 = sadd.s32 1, %s4371_s14   ;;  %s4375_s16 = sld [smem:[#allocation19_spill]] }
 0xbf6   : > { %p28_p12 = scmp.ge.s32.totalorder %s31_s0, 6   ;;  %s4376_s23 = sld [smem:[#allocation29_spill]] }
 0xbf7   : > { %s4377_s24 = sld [smem:[#allocation21_spill]]  ;;  %s4383_s21 = smov %s3414_s22 }
 0xbf8   : > { %s4378_s25 = sld [smem:[#allocation22_spill]]  ;;  %s4385_s27 = smov %s3442_s29 }
 0xbf9   : > { %s4379_s26 = sld [smem:[#allocation30_spill]] }
 0xbfa   : > { %s4380_s28 = sld [smem:[#allocation25_spill]] }
 0xbfb   : > { %s4381_s10 = sld [smem:[#allocation27_spill]]  ;;  %s4384_s22 = smov %s4375_s16 }
 0xbfc   : > { %s4382_s30 = sld [smem:[#allocation28_spill]] }
 0xbfd   :  { %30 = sbr.rel (!%p28_p12) target bundleno = 27 (0x1b), region = 219 }
 0xc01   : > { %s4386_s29 = smov %s4381_s10 }
 0xc02   :  { %2287 = vsyncpa [#allocation4], 1 }
 0xc03   :  { %2289 = vsyncpa [#allocation4 + $0x1], 1 }
 0xc04   :  { %2290 = vsyncpa [#allocation7], 1 }
 0xc05   :  { %2291 = vsyncpa [#allocation5], 1 }
 0xc06   :  { %2293 = vsyncpa [#allocation5 + $0x1], 1 }

// kernel: tpu_custom_call.1
= control target key start
LH: loop header
LB: loop body
LE: loop exit
PB: predicated region body
PF: predicated region fallthrough
CT: control target
= control target key end

     0   :  { %s4305_s0 = inlined_call_operand.hbm [shape: f32[2,1,16], index: 0, kind: input, shape index: {}]   ;;  %s4306_s1 = inlined_call_operand.hbm [shape: bf16[2,16,128], index: 1, kind: input, shape index: {}]   ;;  %s4307_s2 = inlined_call_operand.hbm [shape: f32[2,1,128], index: 2, kind: input, shape index: {}]   ;;  %s4308_s3 = inlined_call_operand.hbm [shape: f32[2,1,128], index: 3, kind: input, shape index: {}]   ;;  %s4309_s4 = inlined_call_operand.hbm [shape: bf16[2,128,384], index: 4, kind: input, shape index: {}]   ;;  %s4310_s5 = inlined_call_operand.vmem [shape: f32[2,1,384], index: 5, kind: input, shape index: {}]   ;;  %s4311_s6 = inlined_call_operand.hbm [shape: bf16[2,128,128], index: 6, kind: input, shape index: {}]   ;;  %s4312_s7 = inlined_call_operand.vmem [shape: f32[2,1,128], index: 7, kind: input, shape index: {}]   ;;  %s4313_s8 = inlined_call_operand.vmem [shape: f32[2,1,128], index: 8, kind: input, shape index: {}]   ;;  %s4314_s9 = inlined_call_operand.vmem [shape: f32[2,1,128], index: 9, kind: input, shape index: {}]   ;;  %s4315_s10 = inlined_call_operand.hbm [shape: bf16[2,128,256], index: 10, kind: input, shape index: {}]   ;;  %s4316_s11 = inlined_call_operand.vmem [shape: f32[2,1,256], index: 11, kind: input, shape index: {}]   ;;  %s4317_s12 = inlined_call_operand.hbm [shape: bf16[2,256,128], index: 12, kind: input, shape index: {}]   ;;  %s4318_s13 = inlined_call_operand.vmem [shape: f32[2,1,128], index: 13, kind: input, shape index: {}]   ;;  %s4319_s14 = inlined_call_operand.vmem [shape: f32[1,128], index: 14, kind: input, shape index: {}]   ;;  %s4320_s15 = inlined_call_operand.vmem [shape: f32[1,128], index: 15, kind: input, shape index: {}]   ;;  %s4321_s16 = inlined_call_operand.hbm [shape: bf16[2,16,128], index: 16, kind: output, shape index: {}]  }
   0x1   :  { %4354 = sst [smem:[#allocation44_spill]] %s4305_s0 }
   0x2   :  { %4355 = sst [smem:[#allocation45_spill]] %s4306_s1 }
   0x3   :  { %4356 = sst [smem:[#allocation46_spill]] %s4307_s2 }
   0x4   :  { %4357 = sst [smem:[#allocation47_spill]] %s4308_s3 }
   0x5   :  { %4358 = sst [smem:[#allocation48_spill]] %s4309_s4 }
   0x6   :  { %4359 = sst [smem:[#allocation49_spill]] %s4310_s5 }
   0x7   :  { %4360 = sst [smem:[#allocation50_spill]] %s4311_s6 }
   0x8   :  { %4361 = sst [smem:[#allocation51_spill]] %s4312_s7 }
   0x9   :  { %4362 = sst [smem:[#allocation52_spill]] %s4313_s8 }
   0xa   :  { %4363 = sst [smem:[#allocation53_spill]] %s4314_s9 }
   0xb   :  { %4364 = sst [smem:[#allocation54_spill]] %s4315_s10 }
   0xc   :  { %4365 = sst [smem:[#allocation55_spill]] %s4316_s11 }
   0xd   :  { %4366 = sst [smem:[#allocation56_spill]] %s4317_s12 }
   0xe   :  { %4367 = sst [smem:[#allocation57_spill]] %s4318_s13 }
   0xf   :  { %4368 = sst [smem:[#allocation58_spill]] %s4319_s14 }
  0x10   :  { %4369 = sst [smem:[#allocation59_spill]] %s4320_s15 }
  0x11   :  { %4370 = sst [smem:[#allocation60_spill]] %s4321_s16 }
  0x12   :  { %21 = vsyncpa [#allocation4], 0 }
  0x13   :  { %23 = vsyncpa [#allocation4 + $0x1], 0 }
  0x14   :  { %24 = vsyncpa [#allocation7], 0 }
  0x15   :  { %26 = vsyncpa [#allocation7 + $0x1], 0 }
  0x16   :  { %27 = vsyncpa [#allocation10], 0 }
  0x17   :  { %29 = vsyncpa [#allocation10 + $0x1], 0 }
  0x18   :  { %30 = vsyncpa [#allocation13], 0 }
  0x19   :  { %32 = vsyncpa [#allocation13 + $0x1], 0 }
  0x1a   :  { %33 = vsyncpa [#allocation16], 0 }
  0x1b   :  { %35 = vsyncpa [#allocation16 + $0x1], 0 }
  0x1c   :  { %36 = vsyncpa [#allocation5], 0 }
  0x1d   :  { %38 = vsyncpa [#allocation5 + $0x1], 0  ;;  %s3636_s21 = smov 0   ;;  %s3638_s22 = smov 0  }
  0x1e   :  { %s3640_s23 = smov 0   ;;  %s3642_s24 = smov 0  }
  0x1f   :  { %s3644_s25 = smov 0   ;;  %s3646_s26 = smov 0  }
  0x20   :  { %s3648_s27 = smov 0   ;;  %s3650_s28 = smov 0  }
  0x21   :  { %s3652_s29 = smov 0   ;;  %s3654_s30 = smov 0  }
  0x22   :  { %s3656_s0 = smov 0  }
  0x23 LB: > { %4371 = sst [smem:[#allocation25_spill]] %s3491_s22  ;;  %s3692_s17 = sadd.s32 4294967295, %s3527_s0   ;;  %s3527_s0 = sphi %s3656_s0, %s44_s0   ;;  %s3523_s30 = sphi %s3654_s30, %s4454_s30   ;;  %s3519_s29 = sphi %s3652_s29, %s4453_s29   ;;  %s3515_s28 = sphi %s3650_s28, %s4452_s28   ;;  %s3511_s27 = sphi %s3648_s27, %s4451_s27   ;;  %s3507_s26 = sphi %s3646_s26, %s4450_s26   ;;  %s3503_s25 = sphi %s3644_s25, %s4449_s25   ;;  %s3499_s24 = sphi %s3642_s24, %s4448_s24   ;;  %s3495_s23 = sphi %s3640_s23, %s4447_s23   ;;  %s3491_s22 = sphi %s3638_s22, %s4446_s22   ;;  %s3487_s21 = sphi %s3636_s21, %s4445_s21  }
  0x24   : > { %4372 = sst [smem:[#allocation26_spill]] %s3495_s23  ;;  %s2594_s18 = sadd.s32 4294967294, %s3527_s0  }
  0x25   : > { %4373 = sst [smem:[#allocation27_spill]] %s3499_s24  ;;  %p70_p0 = scmp.ne.s32.totalorder %s3507_s26, %s3503_s25 }
  0x26   : > { %4374 = sst [smem:[#allocation28_spill]] %s3503_s25  ;;  %p71_p1 = scmp.eq.s32.totalorder %s3527_s0, 0 }
  0x27   : > { %4375 = sst [smem:[#allocation29_spill]] %s3507_s26  ;;  %p76_p2 = scmp.ne.s32.totalorder %s3503_s25, %s3499_s24 }
  0x28   : > { %4376 = sst [smem:[#allocation30_spill]] %s3511_s27  ;;  %p4331_p3 = scmp.eq.s32.totalorder %s3692_s17, 0 }
  0x29   : > { %4377 = sst [smem:[#allocation31_spill]] %s3515_s28  ;;  %p72_p4 = por %p71_p1, %p70_p0 }
  0x2a   : > { %4378 = sst [smem:[#allocation32_spill]] %s3519_s29  ;;  %p480_p5 = scmp.eq.s32.totalorder %s3692_s17, 3 }
  0x2b   : > { %4379 = sst [smem:[#allocation33_spill]] %s3523_s30  ;;  %p3708_p6 = por %p4331_p3, %p76_p2 }
  0x2c   : > { %4380 = sst [smem:[#allocation34_spill]] %s3527_s0  ;;  %p486_p7 = scmp.eq.s32.totalorder %s2594_s18, 3 }
  0x2d   : > { %4381 = sst [smem:[#allocation35_spill]] %s3692_s17  ;;  %p3712_p8 = por %p480_p5, %p70_p0 }
  0x2e   : > { %s4382_s16 = scalar_select %p3708_p6, 1, 0 }
  0x2f   : > { %s4384_s28 = scalar_select %p3712_p8, 1, 0 }
  0x30   : > { %4383 = sst [smem:[#allocation36_spill]] %s4382_s16  ;;  %p3716_p9 = por %p486_p7, %p76_p2 }
  0x31   : > { %4385 = sst [smem:[#allocation37_spill]] %s4384_s28  ;;  %p4330_p10 = scmp.lt.s32.totalorder %s3527_s0, 4 }
  0x32   : > { %s4386_s20 = scalar_select %p3716_p9, 1, 0 }
  0x33   : > { %s3722_s19 = sand.u32 1, %s3507_s26   ;;  %s3725_s24 = sand.u32 1, %s3527_s0  }
  0x34   : > { %4387 = sst [smem:[#allocation38_spill]] %s4386_s20  ;;  %p3729_p11 = pnand %p4330_p10, %p72_p4 }
  0x35   : > { %s2598_s18 = sshll.u32 %s3722_s19, 3  ;;  %s2710_s28 = sshll.u32 %s3523_s30, 7 }
  0x36   : > { %s4389_s1 = sld [smem:[#allocation45_spill]]  ;;  %s533_s11 = scalar_lea.vmem [#allocation6], %s2598_s18 }
  0x37   : > { %s540_s5 = sshll.u32 %s533_s11, 4  ;;  %p2613_p12 = scmp.ge.s32.totalorder %s3527_s0, 1  ;;  %s541_s5 = int_to_ptr.vmem [resolvable:$true] %s540_s5 }
  0x38   : > { %s4333_s9 = scalar_lea.sflag [#allocation7], %s3725_s24  ;;  %p4332_p13 = pneg %p3729_p11 }
  0x39   : > { %s3176_s8 = scalar_lea.vmem %s541_s5, 128  ;;  %s3529_s7 = smov [#allocation6]  }
  0x3a   : > { %p3177_p0 = scmp.ne.s32.totalorder %s541_s5, %s3176_s8  ;;  %s3181_s27 = sshll.u32 %s3529_s7, 4  ;;  %s3182_s27 = int_to_ptr.vmem [resolvable:$false] %s3181_s27 }
  0x3b   : > { %s3183_s16 = scalar_lea.vmem %s3182_s27, 256  ;;  %p3184_p5 = scmp.lt.s32.totalorder %s541_s5, %s3182_s27 }
  0x3c   : > { %s539_s20 = scalar_lea.hbm %s4389_s1, %s2710_s28  ;;  %p3179_p2 = pnand %p3177_p0, %p4332_p13 }
  0x3d   : > { %p3185_p7 = scmp.lt.s32.totalorder %s3183_s16, %s3176_s8 }
  0x3e   : > { %p3180_p4 = pneg %p3179_p2 }
  0x3f   : > { %p3186_p10 = por %p3185_p7, %p3184_p5 }
  0x41   : > { %p3187_p3 = pnand %p3186_p10, %p3180_p4 }
  0x43   : > { %3190 = shalt.err (!%p3187_p3)
}
  0x44   : > { %s4334_s11 = smov 64   ;;  %s4336_s7 = smov 4  }
  0x45   : > { %2898 = dma.hbm_to_vmem [thread:$0]  (!%p3729_p11), %s539_s20, 128, %s541_s5, %s4333_s9, %s4334_s11, %s4334_s11, %s4336_s7  }
  0x46   : > { %p704_p3 = scmp.lt.s32.totalorder %s3527_s0, 5  ;;  %s53_s13 = sadd.s32 1, %s3519_s29 }
  0x47   : > { %s115_s14 = sadd.s32 1, %s3495_s23  ;;  %p54_p0 = scmp.ge.s32.totalorder %s53_s13, 2 }
  0x48   : > { %p3755_p10 = pnand %p2613_p12, %p704_p3  ;;  %p122_p2 = scmp.ne.s32.totalorder %s3495_s23, %s3491_s22 }
  0x49   : > { %p128_p4 = scmp.ne.s32.totalorder %s3491_s22, %s3487_s21  ;;  %s3766_s16 = sand.u32 1, %s3495_s23  }
  0x4a   : > { %s4456_s13 = smov (%p54_p0, %s53_s13), 0  ;;  %s4392_s5 = sadd.s32 1, %s3523_s30 }
  0x4b   : > { %4391 = sst [smem:[#allocation39_spill]] %s4456_s13  ;;  %s4458_s5 = smov (!%p54_p0, %s4392_s5), %s3523_s30 }
  0x4c   : > { %s112_s27 = ssub.s32 %s3519_s29, %s4456_s13  ;;  %p124_p12 = por %p122_p2, %p71_p1 }
  0x4d   : > { %p58_p5 = scmp.ge.s32.totalorder %s4458_s5, 2  ;;  %p113_p7 = scmp.eq.s32.totalorder %s112_s27, 0 }
  0x4e   : > { %p4393_p3 = scmp.eq.s32.totalorder %s3692_s17, 0  ;;  %s2601_s28 = sshll.u32 %s3519_s29, 4 }
  0x4f   : > { %s4460_s5 = smov (%p58_p5, %s4458_s5), 0  ;;  %s4398_s2 = sld [smem:[#allocation46_spill]] }
  0x50   : > { %p3779_p13 = por %p128_p4, %p4393_p3  ;;  %4396 = sst [smem:[#allocation41_spill]] %s4460_s5 }
  0x51   : > { %s3787_s20 = scalar_select %p113_p7, %s3495_s23, %s115_s14  }
  0x52   : > { %s4394_s21 = scalar_select %p3779_p13, 1, 0 }
  0x53   : > { %4397 = sst [smem:[#allocation42_spill]] %s3787_s20  ;;  %s60_s18 = ssub.s32 %s3523_s30, %s4460_s5 }
  0x54   : > { %4395 = sst [smem:[#allocation40_spill]] %s4394_s21  ;;  %p61_p1 = scmp.eq.s32.totalorder %s60_s18, 0 }
  0x55   : > { %s3794_s7 = scalar_lea.hbm %s4398_s2, %s2601_s28  ;;  %p4399_p0 = scmp.lt.s32.totalorder %s3527_s0, 4 }
  0x56   : > { %s4401_s1 = sadd.s32 1, %s3507_s26  ;;  %s4403_s3 = sld [smem:[#allocation47_spill]] }
  0x57   : > { %p3798_p2 = pnand %p4399_p0, %p124_p12  ;;  %s570_s5 = scalar_lea.vmem [#allocation9], %s3766_s16 }
  0x58   : > { %s3805_s13 = scalar_select %p61_p1, %s3507_s26, %s4401_s1  }
  0x59   : > { %s577_s20 = sshll.u32 %s570_s5, 4  ;;  %s2604_s9 = sshll.u32 %s3766_s16, 6  ;;  %s578_s20 = int_to_ptr.vmem [resolvable:$true] %s577_s20 }
  0x5a   : > { %4402 = sst [smem:[#allocation43_spill]] %s3805_s13  ;;  %s4347_s11 = scalar_lea.sflag [#allocation10], %s3725_s24 }
  0x5b   : > { %p3815_p4 = pneg %p3798_p2  ;;  %s3204_s2 = scalar_lea.vmem %s578_s20, 16 }
  0x5c   : > { %s575_s14 = scalar_lea.hbm %s4403_s3, %s2601_s28  ;;  %p3205_p12 = scmp.ne.s32.totalorder %s578_s20, %s3204_s2 }
  0x5d   : > { %s3532_s1 = smov [#allocation9]  }
  0x5e   : > { %p3207_p5 = pnand %p3205_p12, %p3815_p4  ;;  %s3209_s13 = sshll.u32 %s3532_s1, 4  ;;  %s3210_s13 = int_to_ptr.vmem [resolvable:$false] %s3209_s13 }
  0x5f   : > { %s3211_s22 = scalar_lea.vmem %s3210_s13, 32  ;;  %p3212_p3 = scmp.lt.s32.totalorder %s578_s20, %s3210_s13 }
  0x60   : > { %p3208_p7 = pneg %p3207_p5  ;;  %p3213_p1 = scmp.lt.s32.totalorder %s3211_s22, %s3204_s2 }
  0x62   : > { %p3214_p0 = por %p3213_p1, %p3212_p3 }
  0x64   : > { %p3215_p9 = pnand %p3214_p0, %p3208_p7 }
  0x66   : > { %3218 = shalt.err (!%p3215_p9)
}
  0x67   : > { %2904 = dma.hbm_to_vmem [thread:$0]  (!%p3798_p2), %s575_s14, 16, %s578_s20, %s4347_s11  }
  0x68   : > { %s2711_s5 = sshll.u32 %s3519_s29, 10  ;;  %s4405_s6 = sld [smem:[#allocation50_spill]] }
  0x69   : > { %s616_s3 = scalar_lea.vmem [#allocation12], %s2604_s9  ;;  %s613_s2 = scalar_lea.sflag [#allocation13], %s3725_s24 }
  0x6a   : > { %s623_s26 = sshll.u32 %s616_s3, 4  ;;  %s3533_s22 = smov [#allocation12]   ;;  %s624_s26 = int_to_ptr.vmem [resolvable:$true] %s623_s26 }
  0x6b   : > { %s3232_s13 = scalar_lea.vmem %s624_s26, 1024  ;;  %s3237_s23 = sshll.u32 %s3533_s22, 4  ;;  %s3238_s23 = int_to_ptr.vmem [resolvable:$false] %s3237_s23 }
  0x6c   : > { %p3233_p12 = scmp.ne.s32.totalorder %s624_s26, %s3232_s13  ;;  %s3239_s0 = scalar_lea.vmem %s3238_s23, 2048 }
  0x6d   : > { %p3240_p7 = scmp.lt.s32.totalorder %s624_s26, %s3238_s23  ;;  %p3241_p3 = scmp.lt.s32.totalorder %s3239_s0, %s3232_s13 }
  0x6e   : > { %s622_s1 = scalar_lea.hbm %s4405_s6, %s2711_s5  ;;  %p3235_p9 = pnand %p3233_p12, %p3815_p4 }
  0x6f   : > { %p3242_p1 = por %p3241_p3, %p3240_p7 }
  0x70   : > { %p3236_p5 = pneg %p3235_p9 }
  0x72   : > { %p3243_p0 = pnand %p3242_p1, %p3236_p5 }
  0x74   : > { %3246 = shalt.err (!%p3243_p0)
}
  0x75   : > { %s4406_s20 = smov 4   ;;  %s4407_s3 = smov 64  }
  0x76   : > { %2910 = dma.hbm_to_vmem [thread:$0]  (!%p3798_p2), %s622_s1, 1024, %s624_s26, %s613_s2, %s4407_s3, %s4407_s3, %s4406_s20  }
  0x77   : > { %s2597_s14 = sshll.u32 %s3523_s30, 4  ;;  %s4408_s23 = sld [smem:[#allocation44_spill]] }
  0x78   : > { %s515_s21 = scalar_lea.vmem [#allocation3], %s3722_s19  ;;  %s513_s13 = scalar_lea.sflag [#allocation4], %s3722_s19 }
  0x79   : > { %s522_s28 = sshll.u32 %s515_s21, 4  ;;  %p4409_p9 = pneg %p3729_p11  ;;  %s523_s28 = int_to_ptr.vmem [resolvable:$true] %s522_s28 }
  0x7a   : > { %s3260_s22 = scalar_lea.vmem %s523_s28, 16  ;;  %s3534_s11 = smov [#allocation3]  }
  0x7b   : > { %p3261_p12 = scmp.ne.s32.totalorder %s523_s28, %s3260_s22  ;;  %s3265_s6 = sshll.u32 %s3534_s11, 4  ;;  %s3266_s6 = int_to_ptr.vmem [resolvable:$false] %s3265_s6 }
  0x7c   : > { %s3267_s17 = scalar_lea.vmem %s3266_s6, 32  ;;  %p3268_p3 = scmp.lt.s32.totalorder %s523_s28, %s3266_s6 }
  0x7d   : > { %s520_s0 = scalar_lea.hbm %s4408_s23, %s2597_s14  ;;  %p3263_p5 = pnand %p3261_p12, %p4409_p9 }
  0x7e   : > { %p3269_p1 = scmp.lt.s32.totalorder %s3267_s17, %s3260_s22 }
  0x7f   : > { %p3264_p7 = pneg %p3263_p5 }
  0x80   : > { %p3270_p0 = por %p3269_p1, %p3268_p3 }
  0x82   : > { %p3271_p8 = pnand %p3270_p0, %p3264_p7 }
  0x84   : > { %3274 = shalt.err (!%p3271_p8)
}
  0x85   : > { %2895 = dma.hbm_to_vmem [thread:$0]  (!%p3729_p11), %s520_s0, 16, %s523_s28, %s513_s13  }
  0x86   : > { %s553_s26 = scalar_lea.vmem [#allocation8], %s3766_s16  ;;  %s2870_s1 = smul.u32 192, %s3766_s16 }
  0x87   : > { %s560_s19 = sshll.u32 %s553_s26, 4  ;;  %s2871_s14 = smul.u32 3072, %s3519_s29  ;;  %s561_s19 = int_to_ptr.vmem [resolvable:$true] %s560_s19 }
  0x88   : > { %s3288_s11 = scalar_lea.vmem %s561_s19, 16  ;;  %s3535_s6 = smov [#allocation8]  }
  0x89   : > { %p3289_p12 = scmp.ne.s32.totalorder %s561_s19, %s3288_s11  ;;  %s3293_s17 = sshll.u32 %s3535_s6, 4  ;;  %s3294_s17 = int_to_ptr.vmem [resolvable:$false] %s3293_s17 }
  0x8a   : > { %s3295_s9 = scalar_lea.vmem %s3294_s17, 32  ;;  %p3296_p8 = scmp.lt.s32.totalorder %s561_s19, %s3294_s17 }
  0x8b   : > { %p3291_p9 = pnand %p3289_p12, %p3815_p4  ;;  %p3297_p7 = scmp.lt.s32.totalorder %s3295_s9, %s3288_s11 }
  0x8d   : > { %p3292_p5 = pneg %p3291_p9  ;;  %p3298_p3 = por %p3297_p7, %p3296_p8 }
  0x8f   : > { %p3299_p1 = pnand %p3298_p3, %p3292_p5 }
  0x91   : > { %3302 = shalt.err (!%p3299_p1)
}
  0x92   : > { %s4410_s15 = scalar_lea.sflag [#allocation7], %s3725_s24  ;;  %s4411_s4 = sld [smem:[#allocation48_spill]] }
  0x93   : > { %2901 = dma.hbm_to_vmem [thread:$0]  (!%p3798_p2), %s3794_s7, 16, %s561_s19, %s4410_s15  }
  0x94   : > { %s588_s21 = scalar_lea.vmem [#allocation11], %s2870_s1  ;;  %s3536_s22 = smov [#allocation11]  }
  0x95   : > { %s595_s28 = sshll.u32 %s588_s21, 4  ;;  %s3321_s26 = sshll.u32 %s3536_s22, 4  ;;  %s596_s28 = int_to_ptr.vmem [resolvable:$true] %s595_s28  ;;  %s3322_s26 = int_to_ptr.vmem [resolvable:$false] %s3321_s26 }
  0x96   : > { %s3316_s13 = scalar_lea.vmem %s596_s28, 3072  ;;  %s3323_s11 = scalar_lea.vmem %s3322_s26, 6144 }
  0x97   : > { %p3317_p11 = scmp.ne.s32.totalorder %s596_s28, %s3316_s13  ;;  %p3324_p9 = scmp.lt.s32.totalorder %s596_s28, %s3322_s26 }
  0x98   : > { %s594_s0 = scalar_lea.hbm %s4411_s4, %s2871_s14  ;;  %p3325_p5 = scmp.lt.s32.totalorder %s3323_s11, %s3316_s13 }
  0x99   : > { %p3319_p0 = pnand %p3317_p11, %p3815_p4 }
  0x9a   : > { %p3326_p8 = por %p3325_p5, %p3324_p9 }
  0x9b   : > { %p3320_p12 = pneg %p3319_p0 }
  0x9d   : > { %p3327_p7 = pnand %p3326_p8, %p3320_p12 }
  0x9f   : > { %3330 = shalt.err (!%p3327_p7)
}
  0xa0   : > { %s3537_s7 = smov 192   ;;  %s3538_s19 = smov 12  }
  0xa1   : > { %s4412_s1 = scalar_lea.sflag [#allocation10], %s3725_s24  ;;  %s2607_s14 = sshll.u32 %s3766_s16, 7 }
  0xa2   : > { %2907 = dma.hbm_to_vmem [thread:$0]  (!%p3798_p2), %s594_s0, 3072, %s596_s28, %s4412_s1, %s3537_s7, %s3537_s7, %s3538_s19  }
  0xa3   : > { %s2712_s6 = sshll.u32 %s3519_s29, 11  ;;  %s4413_s10 = sld [smem:[#allocation54_spill]] }
  0xa4   : > { %s655_s5 = scalar_lea.vmem [#allocation14], %s2607_s14  ;;  %s3539_s13 = smov [#allocation14]  }
  0xa5   : > { %s662_s23 = sshll.u32 %s655_s5, 4  ;;  %s3349_s22 = sshll.u32 %s3539_s13, 4  ;;  %s663_s23 = int_to_ptr.vmem [resolvable:$true] %s662_s23  ;;  %s3350_s22 = int_to_ptr.vmem [resolvable:$false] %s3349_s22 }
  0xa6   : > { %s3344_s21 = scalar_lea.vmem %s663_s23, 2048  ;;  %s3351_s26 = scalar_lea.vmem %s3350_s22, 4096 }
  0xa7   : > { %p3345_p3 = scmp.ne.s32.totalorder %s663_s23, %s3344_s21  ;;  %p3352_p0 = scmp.lt.s32.totalorder %s663_s23, %s3350_s22 }
  0xa8   : > { %p3353_p12 = scmp.lt.s32.totalorder %s3351_s26, %s3344_s21 }
  0xa9   : > { %s661_s15 = scalar_lea.hbm %s4413_s10, %s2712_s6  ;;  %p3347_p1 = pnand %p3345_p3, %p3815_p4 }
  0xaa   : > { %p3354_p9 = por %p3353_p12, %p3352_p0 }
  0xab   : > { %p3348_p11 = pneg %p3347_p1 }
  0xad   : > { %p3355_p5 = pnand %p3354_p9, %p3348_p11 }
  0xaf   : > { %3358 = shalt.err (!%p3355_p5)
}
  0xb0   : > { %s3540_s0 = smov 128   ;;  %s3541_s28 = smov 8  }
  0xb1   : > { %2913 = dma.hbm_to_vmem [thread:$0]  (!%p3798_p2), %s661_s15, 2048, %s663_s23, %s613_s2, %s3540_s0, %s3540_s0, %s3541_s28  }
  0xb2   : > { %s4414_s12 = sld [smem:[#allocation56_spill]]  ;;  %s683_s1 = scalar_lea.vmem [#allocation15], %s2607_s14 }
  0xb3   : > { %s690_s17 = sshll.u32 %s683_s1, 4  ;;  %s680_s9 = scalar_lea.sflag [#allocation16], %s3766_s16  ;;  %s691_s17 = int_to_ptr.vmem [resolvable:$true] %s690_s17 }
  0xb4   : > { %s3372_s5 = scalar_lea.vmem %s691_s17, 2048  ;;  %s3542_s21 = smov [#allocation15]  }
  0xb5   : > { %p3373_p8 = scmp.ne.s32.totalorder %s691_s17, %s3372_s5  ;;  %s3377_s13 = sshll.u32 %s3542_s21, 4  ;;  %s3378_s13 = int_to_ptr.vmem [resolvable:$false] %s3377_s13 }
  0xb6   : > { %s3379_s22 = scalar_lea.vmem %s3378_s13, 4096  ;;  %p3380_p1 = scmp.lt.s32.totalorder %s691_s17, %s3378_s13 }
  0xb7   : > { %p3375_p7 = pnand %p3373_p8, %p3815_p4  ;;  %p3381_p11 = scmp.lt.s32.totalorder %s3379_s22, %s3372_s5 }
  0xb8   : > { %s689_s19 = scalar_lea.hbm %s4414_s12, %s2712_s6 }
  0xb9   : > { %p3376_p3 = pneg %p3375_p7  ;;  %p3382_p0 = por %p3381_p11, %p3380_p1 }
  0xbb   : > { %p3383_p12 = pnand %p3382_p0, %p3376_p3 }
  0xbd   : > { %3386 = shalt.err (!%p3383_p12)
}
  0xbe   : > { %2916 = dma.hbm_to_vmem [thread:$0]  (!%p3798_p2), %s689_s19, 2048, %s691_s17, %s680_s9, %s4407_s3, %s4407_s3, %s4406_s20  }
  0xbf   : > { %708 = sbr.rel (%p3755_p10) target bundleno = 3047 (0xbe7), region = 84  ;;  %s3894_s16 = sand.u32 (!%p3755_p10), 1, %s3503_s25  }
  0xc0   : > { %s711_s18 = scalar_lea.sflag (!%p3755_p10), [#allocation4], %s3894_s16 }
  0xc4   : > { %3458 = dma.done.wait (%p3708_p6), %s711_s18, 16  }
  0xc5   : > { %3460 = vsyncadd (%p3708_p6), %s711_s18, 4294967280  ;;  %s4416_s27 = sld [smem:[#allocation35_spill]]  ;;  %s4350_s8 = sshll.u32 %s3894_s16, 3 }
  0xc6   : > { %s3906_s14 = scalar_lea.vmem [#allocation6], %s4350_s8 }
  0xcb   : > { %s718_s20 = sand.u32 1, %s4416_s27  }
  0xcc   : > { %s719_s3 = scalar_lea.sflag [#allocation7], %s718_s20 }
  0xcd   : > { %3462 = dma.done.wait (%p3708_p6), %s719_s3, 128  }
  0xce   : > { %3464 = vsyncadd (%p3708_p6), %s719_s3, 4294967168  ;;  %s4417_s6 = sld [smem:[#allocation25_spill]] }
  0xd4   : > { %s3913_s23 = sand.u32 1, %s4417_s6  }
  0xd5   : > { %3466 = dma.done.wait (%p3779_p13), %s719_s3, 16  }
  0xd6   : > { %3468 = vsyncadd (%p3779_p13), %s719_s3, 4294967280  ;;  %s736_s0 = scalar_lea.sflag [#allocation10], %s718_s20 }
  0xd7   : > { %3470 = dma.done.wait (%p3779_p13), %s736_s0, 3088  }
  0xd8   : > { %3472 = vsyncadd (%p3779_p13), %s736_s0, 4294964208  ;;  %s2872_s11 = smul.u32 192, %s3913_s23  ;;  %s2615_s7 = sshll.u32 %s3913_s23, 6 }
  0xd9   : > { %s753_s1 = scalar_lea.sflag [#allocation13], %s718_s20  ;;  %s3929_s17 = scalar_lea.vmem [#allocation12], %s2615_s7 }
  0xda   : > { %s3927_s19 = scalar_lea.vmem [#allocation11], %s2872_s11 }
  0xdb   : > { %3474 = dma.done.wait (%p3779_p13), %s753_s1, 3072  }
  0xdc   : > { %3476 = vsyncadd (%p3779_p13), %s753_s1, 4294964224  ;;  %s2616_s9 = sshll.u32 %s3913_s23, 7  ;;  %s771_s21 = scalar_lea.sflag [#allocation16], %s3913_s23 }
  0xdd   : > { %s3936_s5 = scalar_lea.vmem [#allocation14], %s2616_s9  ;;  %s3939_s13 = scalar_lea.vmem [#allocation15], %s2616_s9 }
  0xde   : > { %3478 = dma.done.wait (%p3779_p13), %s771_s21, 2048  }
  0xdf   : > { %3480 = vsyncadd (%p3779_p13), %s771_s21, 4294965248  ;;  %s4419_s22 = sld [smem:[#allocation30_spill]]  ;;  %s4426_s15 = sshll.u32 %s3894_s16, 3 }
  0xe0   : > { %s4420_s3 = sld [smem:[#allocation51_spill]] }
  0xe1   : > { %s4421_s11 = sld [smem:[#allocation52_spill]] }
  0xe2   : > { %s4422_s21 = sld [smem:[#allocation53_spill]] }
  0xe3   : > { %s4423_s8 = sld [smem:[#allocation49_spill]] }
  0xe4   : > { %s4424_s29 = sld [smem:[#allocation55_spill]] }
  0xe5   : > { %p875_p6 = scmp.lt.s32.totalorder %s4419_s22, 1  ;;  %p2620_p13 = scmp.ne.s32.totalorder %s4419_s22, 0 }
  0xe7   : > { %s3947_s24 = scalar_select %p875_p6, %s4419_s22, 1 }
  0xe9   : > { %s2873_s18 = smul.u32 3, %s3947_s24  ;;  %s881_s6 = scalar_lea.vmem %s4420_s3, %s3947_s24 }
  0xea   : > { %s884_s7 = scalar_lea.vmem %s4421_s11, %s3947_s24  ;;  %s887_s2 = scalar_lea.vmem %s4422_s21, %s3947_s24 }
  0xeb   : > { %s3965_s4 = scalar_lea.vmem %s4423_s8, %s2873_s18  ;;  %s2619_s10 = sshll.u32 %s3947_s24, 1 }
  0xec   : > { %s3971_s25 = scalar_lea.vmem %s4424_s29, %s2619_s10  ;;  %s4425_s3 = sld [smem:[#allocation57_spill]] }
  0xed   : > { %s3979_s11 = scalar_lea.vmem [#allocation17], %s4426_s15 }
  0xee   : > { %899 = sbr.rel (%p2620_p13) target bundleno = 247 (0xf7), region = 120 }
  0xf2   : > { %s894_s0 = scalar_lea.vmem %s4425_s3, %s3947_s24 }
  0xf3   : > { %v2718_v0 = vld [vmem:[%s3906_s14] sm:$0xff]  }
  0xf4   : > { %v2719_v1 = vunpack.c.l.bf16 %v2718_v0  ;;  %v2720_v2 = vunpack.c.h.bf16 %v2718_v0 }
  0xf6   : > { %904 = vst [vmem:[#allocation2] sm:$0xff] %v2719_v1  ;;  %905 = vst [vmem:[#allocation2 + $0x8] sm:$0xff] %v2720_v2 }
  0xf7 PF: > { %v3039_v5 = vld [vmem:[%s3927_s19 + $0xac] ss:$12 sps:$4 sm:$0xff]   ;;  %v3041_v6 = vld [vmem:[%s3927_s19 + $0xa8] ss:$12 sps:$4 sm:$0xff]   ;;  %v3543_v7 = vmov 0.0   ;;  %v3544_v30 = vmov 0   ;;  %v984_v56 = vlaneseq }
  0xf8   : > { %2782 = vmatprep.subr.bf16.mxu1 %v3543_v7  ;;  %v3042_v8 = vld [vmem:[%s3927_s19 + $0xb0] ss:$12 sps:$4 sm:$0xff]   ;;  %1127 = vmatprep.subr.bf16.mxu0 %v3039_v5  ;;  %v3043_v17 = vld [vmem:[%s3927_s19 + $0x94] ss:$12 sps:$4 sm:$0xff]   ;;  %v3046_v19 = vld [vmem:[%s3927_s19 + $0x98] ss:$12 sps:$4 sm:$0xff]  }
  0xf9   : > { %1128 = vmatpush1.bf16.msra.mxu0 %v3041_v6  ;;  %2783 = vmatpush3.bf16.msra.mxu1 %v3042_v8  ;;  %v3045_v18 = vld [vmem:[%s3927_s19 + $0x90] ss:$12 sps:$4 sm:$0xff]   ;;  %v3049_v21 = vld [vmem:[%s3927_s19 + $0x78] ss:$12 sps:$4 sm:$0xff]   ;;  %v3050_v22 = vld [vmem:[%s3927_s19 + $0x80] ss:$12 sps:$4 sm:$0xff]  }
  0xfa   : > { %2784 = vmatprep.subr.bf16.mxu1 %v3543_v7  ;;  %1129 = vmatprep.subr.bf16.mxu0 %v3043_v17  ;;  %v3047_v20 = vld [vmem:[%s3927_s19 + $0x7c] ss:$12 sps:$4 sm:$0xff]   ;;  %v3051_v23 = vld [vmem:[%s3927_s19 + $0x64] ss:$12 sps:$4 sm:$0xff]   ;;  %v3053_v24 = vld [vmem:[%s3927_s19 + $0x60] ss:$12 sps:$4 sm:$0xff]  }
  0xfb   : > { %v3054_v25 = vld [vmem:[%s3927_s19 + $0x68] ss:$12 sps:$4 sm:$0xff]   ;;  %v3055_v26 = vld [vmem:[%s3927_s19 + $0x4c] ss:$12 sps:$4 sm:$0xff]   ;;  %v3058_v28 = vld [vmem:[%s3927_s19 + $0x50] ss:$12 sps:$4 sm:$0xff]   ;;  %1159 = vmatprep.mubr.bf16.mxu0 %v3544_v30 }
  0xfc   : > { %v3057_v27 = vld [vmem:[%s3927_s19 + $0x48] ss:$12 sps:$4 sm:$0xff]   ;;  %vm3545_vm0 = vmmov 0   ;;  %v3061_v31 = vld [vmem:[%s3927_s19 + $0x30] ss:$12 sps:$4 sm:$0xff]   ;;  %s4427_s10 = scalar_lea.vmem [#allocation8], %s3913_s23 }
  0xfd   : > { %v3983_v3 = vld [vmem:[#allocation2] sm:$0xff]  ;;  %v3985_v4 = vld [vmem:[#allocation2 + $0x8] sm:$0xff]  ;;  %1130 = vmatpush1.bf16.msra.mxu0 %v3045_v18  ;;  %2785 = vmatpush3.bf16.msra.mxu1 %v3046_v19  ;;  %s4428_s12 = scalar_lea.vmem [#allocation9], %s3913_s23  ;;  %v4046_v57 = vshrl.u32 %v984_v56, 7  ;;  %vm1256_vm1 = vcmask 261120   ;;  %s3547_s29 = smov 64  }
  0xfe   : > { %910 = vadd.xlane.f32.xlu0 %v3983_v3  ;;  %2786 = vmatprep.subr.bf16.mxu1 %v3543_v7  ;;  %v3059_v29 = vld [vmem:[%s3927_s19 + $0x34] ss:$12 sps:$4 sm:$0xff]   ;;  %v3062_v32 = vld [vmem:[%s3927_s19 + $0x38] ss:$12 sps:$4 sm:$0xff]   ;;  %v3063_v33 = vld [vmem:[%s3927_s19 + $0x1c] ss:$12 sps:$4 sm:$0xff]  }
  0xff   : > { %1131 = vmatprep.subr.bf16.mxu0 %v3047_v20  ;;  %2798 = vmatprep.mubr.msk.bf16.mxu1 %vm3545_vm0, %v3543_v7  ;;  %v3065_v34 = vld [vmem:[%s3927_s19 + $0x18] ss:$12 sps:$4 sm:$0xff]   ;;  %v3066_v35 = vld [vmem:[%s3927_s19 + $0x20] ss:$12 sps:$4 sm:$0xff]   ;;  %v3070_v38 = vld [vmem:[%s3927_s19 + $0x8] ss:$12 sps:$4 sm:$0xff]  }
 0x100   : > { %v3067_v36 = vld [vmem:[%s3927_s19 + $0x4] ss:$12 sps:$4 sm:$0xff]   ;;  %v3069_v37 = vld [vmem:[%s3927_s19] ss:$12 sps:$4 sm:$0xff]   ;;  %v2621_v47 = vld [vmem:[%s4427_s10] ss:$0 sm:$0xff] }
 0x101   : > { %1132 = vmatpush1.bf16.msra.mxu0 %v3049_v21  ;;  %2787 = vmatpush3.bf16.msra.mxu1 %v3050_v22  ;;  %v2622_v51 = vld [vmem:[%s4428_s12] ss:$0 sm:$0xff]  ;;  %v986_v58 = vsub.s32 0, %v4046_v57  ;;  %v994_v59 = vsub.s32 2, %v4046_v57  ;;  %v990_v61 = vsub.s32 1, %v4046_v57  ;;  %s3548_s30 = smov 32  }
 0x102   : > { %912 = vadd.xlane.f32.xlu0 %v3985_v4  ;;  %2788 = vmatprep.subr.bf16.mxu1 %v3543_v7  ;;  %v982_v60 = vld [vmem:[%s3965_s4] sm:$0x7]  ;;  %s3546_s4 = smov 96   ;;  %s4429_s8 = scalar_lea.vmem [#allocation3], %s3894_s16  ;;  %vm1459_vm2 = vcmask 130048   ;;  %vm1754_vm3 = vcmask 523264  }
 0x103   : > { %1133 = vmatprep.subr.bf16.mxu0 %v3051_v23  ;;  %v987_v0 = vrot.slane %v982_v60, %v986_v58  ;;  %v995_v1 = vrot.slane %v982_v60, %v994_v59  ;;  %v991_v6 = vrot.slane %v982_v60, %v990_v61  ;;  %vm1757_vm4 = vcmask 785408  }
 0x105   : > { %1134 = vmatpush1.bf16.msra.mxu0 %v3053_v24  ;;  %2789 = vmatpush3.bf16.msra.mxu1 %v3054_v25 }
 0x106   : > { %1135 = vmatprep.subr.bf16.mxu0 %v3055_v26  ;;  %2790 = vmatprep.subr.bf16.mxu1 %v3543_v7 }
 0x109   : > { %1136 = vmatpush1.bf16.msra.mxu0 %v3057_v27  ;;  %2791 = vmatpush3.bf16.msra.mxu1 %v3058_v28 }
 0x10a   : > { %1137 = vmatprep.subr.bf16.mxu0 %v3059_v29  ;;  %2792 = vmatprep.subr.bf16.mxu1 %v3543_v7 }
 0x10d   : > { %1138 = vmatpush1.bf16.msra.mxu0 %v3061_v31  ;;  %2793 = vmatpush3.bf16.msra.mxu1 %v3062_v32  ;;  %v2651_v32 = vld [vmem:[%s4429_s8] ss:$0 sm:$0xff] }
 0x10e   : > { %1139 = vmatprep.subr.bf16.mxu0 %v3063_v33  ;;  %2794 = vmatprep.subr.bf16.mxu1 %v3543_v7 }
 0x111   : > { %1140 = vmatpush1.bf16.msra.mxu0 %v3065_v34  ;;  %2795 = vmatpush3.bf16.msra.mxu1 %v3066_v35 }
 0x112   : > { %1141 = vmatprep.subr.bf16.mxu0 %v3067_v36  ;;  %2796 = vmatprep.subr.bf16.mxu1 %v3543_v7 }
 0x115   : > { %1142 = vmatpush1.bf16.msra.mxu0 %v3069_v37  ;;  %2797 = vmatpush3.bf16.msra.mxu1 %v3070_v38 }
 0x116   : > { %2826 = vmatprep.subr.bf16.mxu0 %v3543_v7  ;;  %2802 = vmatprep.subr.bf16.mxu1 %v3543_v7 }
 0x187   : > { %v911_v9 = vpop.xlane.xlu0 %910 }
 0x188   : > { %v915_v10 = vmul.f32 0.0078125, %v911_v9 }
 0x18a   : > { %v3995_v11 = vsub.f32 %v3983_v3, %v915_v10 }
 0x18b   : > { %v913_v12 = vpop.xlane.xlu0 %912 }
 0x18c   : > { %v916_v13 = vmul.f32 0.0078125, %v913_v12  ;;  %v919_v14 = vmul.f32 %v3995_v11, %v3995_v11 }
 0x18e   : > { %v4000_v15 = vsub.f32 %v3985_v4, %v916_v13  ;;  %921 = vadd.xlane.f32.xlu1 %v919_v14 }
 0x190   : > { %v920_v16 = vmul.f32 %v4000_v15, %v4000_v15 }
 0x192   : > { %923 = vadd.xlane.f32.xlu1 %v920_v16 }
 0x217   : > { %v922_v39 = vpop.xlane.xlu1 %921 }
 0x218   : > { %v925_v40 = vmul.f32 0.0078125, %v922_v39 }
 0x21a   : > { %v927_v41 = vadd.f32 1e-05, %v925_v40 }
 0x21b   : > { %v924_v42 = vpop.xlane.xlu1 %923 }
 0x21c   : > { %3119 = vrsqrt.f32 %v927_v41  ;;  %v926_v43 = vmul.f32 0.0078125, %v924_v42 }
 0x21e   : > { %v928_v44 = vadd.f32 1e-05, %v926_v43 }
 0x220   : > { %3121 = vrsqrt.f32 %v928_v44 }
 0x229   : > { %v3120_v45 = vpop.eup %3119 }
 0x22a   : > { %v931_v46 = vmul.f32 %v3120_v45, %v3995_v11 }
 0x22c   : > { %v939_v50 = vmul.f32 %v2621_v47, %v931_v46 }
 0x22d   : > { %v3122_v48 = vpop.eup %3121 }
 0x22e   : > { %v932_v49 = vmul.f32 %v3122_v48, %v4000_v15  ;;  %v947_v53 = vadd.f32 %v2622_v51, %v939_v50 }
 0x230   : > { %v940_v52 = vmul.f32 %v2621_v47, %v932_v49 }
 0x232   : > { %v948_v54 = vadd.f32 %v2622_v51, %v940_v52 }
 0x234   : > { %v949_v55 = vpack.c.bf16 %v948_v54, %v947_v53 }
 0x236   : > { %1160 = vmatmul.mubr.bf16.vlgmr.msra.gmra.mxu0 %v949_v55  ;;  %2799 = vmatmul.mubr.bf16.vlgmr.msra.gmra.mxu1 %v949_v55 }
 0x237   : > { %2804 = vmatprep.mubr.msk.bf16.mxu1 %vm3545_vm0, %v3543_v7  ;;  %2828 = vmatprep.mubr.msk.bf16.mxu0 %vm3545_vm0, %v3543_v7 }
 0x2f6   : > { %v1161_v62 = vpop.f32.mrf.mxu0  ;;  %v1204_v63 = vpop.f32.mrf.mxu1 }
 0x2f7   : > { %v1162_v10 = vadd.f32 %v1161_v62, %v987_v0  ;;  %v1205_v11 = vadd.f32 %v1204_v63, %v995_v1 }
 0x2f8   : > { %v1163_v2 = vpop.f32.mrf.mxu0  ;;  %v2800_v5 = vpop.f32.mrf.mxu1 }
 0x2f9   : > { %v1164_v16 = vadd.f32 %v1163_v2, %v991_v6 }
 0x2fa   : > { %v1165_v8 = vpop.f32.mrf.mxu0  ;;  %v1207_v9 = vpop.f32.mrf.mxu1 }
 0x2fb   : > { %v1166_v12 = vadd.f32 %v1165_v8, %v987_v0  ;;  %v1208_v13 = vadd.f32 %v1207_v9, %v995_v1 }
 0x2fc   : > { %v1167_v14 = vpop.f32.mrf.mxu0  ;;  %v2801_v15 = vpop.f32.mrf.mxu1 }
 0x2fd   : > { %v1211_v17 = vpack.c.bf16 %v1166_v12, %v1162_v10  ;;  %v4056_v18 = vpack.c.bf16 %v1208_v13, %v1205_v11  ;;  %v1168_v19 = vadd.f32 %v1167_v14, %v991_v6 }
 0x2ff   : > { %v1212_v20 = vpack.c.bf16 %v1168_v19, %v1164_v16  ;;  %2827 = vmatpush3.bf16.msra.mxu0 %v4056_v18  ;;  %1233 = vrot.lane.b32.xlu1 %v1211_v17, %s3546_s4 }
 0x300   : > { %2838 = vmatprep.subr.bf16.mxu0 %v3543_v7 }
 0x301   : > { %1240 = vrot.lane.b32.xlu0 %v1212_v20, %s3546_s4  ;;  %v1261_v21 = vsel %vm1256_vm1, %v1212_v20, 0 }
 0x302   : > { %2803 = vmatpush3.bf16.xpose.msra.mxu1 %v1261_v21 }
 0x303   : > { %1242 = vrot.lane.b32.xlu1 %v1212_v20, %s3547_s29  ;;  %2808 = vmatprep.subr.bf16.mxu1 %v3543_v7 }
 0x305   : > { %1244 = vrot.lane.b32.xlu0 %v1212_v20, %s3548_s30 }
 0x307   : > { %1235 = vrot.lane.b32.xlu1 %v1211_v17, %s3547_s29 }
 0x309   : > { %2805 = vmatmul.mubr.msk.bf16.vlgmr.msra.gmra.mxu1 %vm1256_vm1, %v1211_v17 }
 0x30a   : > { %2810 = vmatprep.mubr.msk.bf16.mxu1 %vm3545_vm0, %v3543_v7 }
 0x30b   : > { %1237 = vrot.lane.b32.xlu1 %v1211_v17, %s3548_s30 }
 0x371   : > { %v1234_v22 = vpop.permute.xlu1 %1233 }
 0x373   : > { %v1241_v23 = vpop.permute.xlu0 %1240 }
 0x374   : > { %v1308_v24 = vsel %vm1256_vm1, %v1241_v23, 0 }
 0x375   : > { %2809 = vmatpush3.bf16.xpose.msra.mxu1 %v1308_v24  ;;  %v1243_v25 = vpop.permute.xlu1 %1242 }
 0x376   : > { %2814 = vmatprep.subr.bf16.mxu1 %v3543_v7  ;;  %v1355_v26 = vsel %vm1256_vm1, %v1243_v25, 0 }
 0x377   : > { %v1245_v27 = vpop.permute.xlu0 %1244 }
 0x378   : > { %v1402_v29 = vsel %vm1256_vm1, %v1245_v27, 0 }
 0x379   : > { %v1236_v28 = vpop.permute.xlu1 %1235 }
 0x37c   : > { %2811 = vmatmul.mubr.msk.bf16.vlgmr.msra.gmra.mxu1 %vm1256_vm1, %v1234_v22 }
 0x37d   : > { %2815 = vmatpush3.bf16.xpose.msra.mxu1 %v1355_v26  ;;  %2816 = vmatprep.mubr.msk.bf16.mxu1 %vm3545_vm0, %v3543_v7  ;;  %v1238_v31 = vpop.permute.xlu1 %1237 }
 0x37e   : > { %2820 = vmatprep.subr.bf16.mxu1 %v3543_v7 }
 0x384   : > { %2817 = vmatmul.mubr.msk.bf16.vlgmr.msra.gmra.mxu1 %vm1256_vm1, %v1236_v28 }
 0x385   : > { %2821 = vmatpush3.bf16.xpose.msra.mxu1 %v1402_v29  ;;  %2822 = vmatprep.mubr.msk.bf16.mxu1 %vm3545_vm0, %v3543_v7 }
 0x386   : > { %2832 = vmatprep.subr.bf16.mxu1 %v3543_v7 }
 0x38c   : > { %2823 = vmatmul.mubr.msk.bf16.vlgmr.msra.gmra.mxu1 %vm1256_vm1, %v1238_v31 }
 0x38d   : > { %2834 = vmatprep.mubr.msk.bf16.mxu1 %vm3545_vm0, %v3543_v7 }
 0x3c9   : > { %v1297_v33 = vpop.f32.mrf.mxu1 }
 0x3ca   : > { %v1451_v34 = vadd.f32 %v2651_v32, %v1297_v33 }
 0x3cb   : > { %v2806_v35 = vpop.f32.mrf.mxu1 }
 0x3cc   : > { %v1460_v36 = vsel %vm1459_vm2, %v1451_v34, -inf }
 0x3cd   : > { %1461 = vmax.xlane.f32.xlu0 %v1460_v36  ;;  %v1300_v37 = vpop.f32.mrf.mxu1 }
 0x3ce   : > { %v1452_v38 = vadd.f32 %v2651_v32, %v1300_v37 }
 0x3cf   : > { %v2807_v39 = vpop.f32.mrf.mxu1 }
 0x3d0   : > { %v1463_v40 = vsel %vm1459_vm2, %v1452_v38, -inf }
 0x3d1   : > { %1464 = vmax.xlane.f32.xlu1 %v1463_v40 }
 0x43c   : > { %v1344_v41 = vpop.f32.mrf.mxu1 }
 0x43d   : > { %v1453_v42 = vadd.f32 %v2651_v32, %v1344_v41 }
 0x43e   : > { %v2812_v43 = vpop.f32.mrf.mxu1 }
 0x43f   : > { %v1466_v44 = vsel %vm1459_vm2, %v1453_v42, -inf }
 0x440   : > { %1467 = vmax.xlane.f32.xlu0 %v1466_v44  ;;  %v1347_v45 = vpop.f32.mrf.mxu1 }
 0x441   : > { %v1454_v46 = vadd.f32 %v2651_v32, %v1347_v45 }
 0x442   : > { %v2813_v47 = vpop.f32.mrf.mxu1 }
 0x443   : > { %v1469_v48 = vsel %vm1459_vm2, %v1454_v46, -inf }
 0x444   : > { %1470 = vmax.xlane.f32.xlu0 %v1469_v48  ;;  %v1391_v49 = vpop.f32.mrf.mxu1 }
 0x445   : > { %v1455_v50 = vadd.f32 %v2651_v32, %v1391_v49 }
 0x446   : > { %v2818_v51 = vpop.f32.mrf.mxu1 }
 0x447   : > { %v1472_v52 = vsel %vm1459_vm2, %v1455_v50, -inf }
 0x448   : > { %1473 = vmax.xlane.f32.xlu0 %v1472_v52  ;;  %v1394_v53 = vpop.f32.mrf.mxu1 }
 0x449   : > { %v1456_v54 = vadd.f32 %v2651_v32, %v1394_v53 }
 0x44a   : > { %v2819_v55 = vpop.f32.mrf.mxu1 }
 0x44b   : > { %v1475_v56 = vsel %vm1459_vm2, %v1456_v54, -inf }
 0x44c   : > { %1476 = vmax.xlane.f32.xlu1 %v1475_v56  ;;  %v1438_v59 = vpop.f32.mrf.mxu1 }
 0x44d   : > { %v1457_v60 = vadd.f32 %v2651_v32, %v1438_v59 }
 0x44e   : > { %v2824_v62 = vpop.f32.mrf.mxu1 }
 0x44f   : > { %v1478_v63 = vsel %vm1459_vm2, %v1457_v60, -inf }
 0x450   : > { %1479 = vmax.xlane.f32.xlu0 %v1478_v63  ;;  %v1441_v0 = vpop.f32.mrf.mxu1 }
 0x451   : > { %v4095_v1 = vadd.f32 %v2651_v32, %v1441_v0 }
 0x452   : > { %v2825_v2 = vpop.f32.mrf.mxu1 }
 0x453   : > { %v1481_v5 = vsel %vm1459_vm2, %v4095_v1, -inf }
 0x454   : > { %1482 = vmax.xlane.f32.xlu1 %v1481_v5 }
 0x456   : > { %v1462_v6 = vpop.xlane.xlu0 %1461 }
 0x457   : > { %v1484_v8 = vsub.f32 %v1451_v34, %v1462_v6 }
 0x459   : > { %v1492_v9 = vmul.f32 1.442695, %v1484_v8 }
 0x45a   : > { %v1465_v10 = vpop.xlane.xlu1 %1464 }
 0x45b   : > { %3123 = vpow2.f32 %v1492_v9  ;;  %v1485_v11 = vsub.f32 %v1452_v38, %v1465_v10 }
 0x45d   : > { %v1494_v12 = vmul.f32 1.442695, %v1485_v11 }
 0x45f   : > { %3125 = vpow2.f32 %v1494_v12 }
 0x468   : > { %v3124_v13 = vpop.eup %3123 }
 0x469   : > { %v1508_v14 = vsel %vm1459_vm2, %v3124_v13, 0.0 }
 0x46a   : > { %1509 = vadd.xlane.f32.xlu0 %v1508_v14 }
 0x46c   : > { %v3126_v15 = vpop.eup %3125 }
 0x46d   : > { %v1511_v16 = vsel %vm1459_vm2, %v3126_v15, 0.0 }
 0x46e   : > { %1512 = vadd.xlane.f32.xlu1 %v1511_v16 }
 0x4c9   : > { %v1468_v17 = vpop.xlane.xlu0 %1467 }
 0x4ca   : > { %v1486_v19 = vsub.f32 %v1453_v42, %v1468_v17 }
 0x4cc   : > { %v1496_v20 = vmul.f32 1.442695, %v1486_v19 }
 0x4cd   : > { %v1471_v21 = vpop.xlane.xlu0 %1470 }
 0x4ce   : > { %3127 = vpow2.f32 %v1496_v20  ;;  %v1487_v22 = vsub.f32 %v1454_v46, %v1471_v21 }
 0x4d0   : > { %v1498_v23 = vmul.f32 1.442695, %v1487_v22 }
 0x4d1   : > { %v1474_v24 = vpop.xlane.xlu0 %1473 }
 0x4d2   : > { %3129 = vpow2.f32 %v1498_v23  ;;  %v1488_v25 = vsub.f32 %v1455_v50, %v1474_v24 }
 0x4d4   : > { %v1500_v26 = vmul.f32 1.442695, %v1488_v25 }
 0x4d5   : > { %v1477_v27 = vpop.xlane.xlu1 %1476 }
 0x4d6   : > { %3131 = vpow2.f32 %v1500_v26  ;;  %v1489_v28 = vsub.f32 %v1456_v54, %v1477_v27 }
 0x4d8   : > { %v1502_v29 = vmul.f32 1.442695, %v1489_v28  ;;  %v3071_v28 = vld [vmem:[%s3929_s17 + $0x38] sm:$0xff]  }
 0x4d9   : > { %v1480_v31 = vpop.xlane.xlu0 %1479 }
 0x4da   : > { %3133 = vpow2.f32 %v1502_v29  ;;  %v1490_v32 = vsub.f32 %v1457_v60, %v1480_v31 }
 0x4db   : > { %v3128_v33 = vpop.eup %3127 }
 0x4dc   : > { %v1504_v34 = vmul.f32 1.442695, %v1490_v32  ;;  %v1514_v35 = vsel %vm1459_vm2, %v3128_v33, 0.0  ;;  %v3072_v32 = vld [vmem:[%s3929_s17 + $0x30] sm:$0xff]  }
 0x4dd   : > { %1515 = vadd.xlane.f32.xlu0 %v1514_v35  ;;  %v1483_v44 = vpop.xlane.xlu1 %1482  ;;  %v3073_v35 = vld [vmem:[%s3929_s17 + $0x28] sm:$0xff]  }
 0x4de   : > { %3135 = vpow2.f32 %v1504_v34  ;;  %v1491_v49 = vsub.f32 %v4095_v1, %v1483_v44 }
 0x4df   : > { %v3130_v36 = vpop.eup %3129 }
 0x4e0   : > { %v1517_v37 = vsel %vm1459_vm2, %v3130_v36, 0.0  ;;  %v1506_v53 = vmul.f32 1.442695, %v1491_v49 }
 0x4e1   : > { %1518 = vadd.xlane.f32.xlu1 %v1517_v37 }
 0x4e3   : > { %v3132_v38 = vpop.eup %3131 }
 0x4e4   : > { %v1520_v39 = vsel %vm1459_vm2, %v3132_v38, 0.0 }
 0x4e5   : > { %1521 = vadd.xlane.f32.xlu0 %v1520_v39  ;;  %v3074_v39 = vld [vmem:[%s3929_s17 + $0x20] sm:$0xff]  }
 0x4e7   : > { %v3134_v40 = vpop.eup %3133 }
 0x4e8   : > { %v1523_v41 = vsel %vm1459_vm2, %v3134_v40, 0.0 }
 0x4e9   : > { %1524 = vadd.xlane.f32.xlu1 %v1523_v41  ;;  %v3076_v41 = vld [vmem:[%s3929_s17 + $0x10] sm:$0xff]  }
 0x4eb   : > { %v3136_v42 = vpop.eup %3135 }
 0x4ec   : > { %v1526_v43 = vsel %vm1459_vm2, %v3136_v42, 0.0 }
 0x4ed   : > { %1527 = vadd.xlane.f32.xlu0 %v1526_v43  ;;  %v3078_v43 = vld [vmem:[%s3929_s17] sm:$0xff]  }
 0x4f3   : > { %v1510_v45 = vpop.xlane.xlu0 %1509 }
 0x4f4   : > { %3137 = vrcp.f32 %v1510_v45 }
 0x4f7   : > { %v1513_v46 = vpop.xlane.xlu1 %1512 }
 0x4f8   : > { %3139 = vrcp.f32 %v1513_v46 }
 0x4f9   : > { %3141 = vpow2.f32 %v1506_v53 }
 0x4fa   : > { %1250 = vrot.lane.b32.xlu1 %v4056_v18, %s3547_s29 }
 0x501   : > { %v3138_v47 = vpop.eup %3137 }
 0x502   : > { %v1540_v50 = vmul.f32 %v3138_v47, %v3124_v13 }
 0x503   : > { %1247 = vrot.lane.b32.xlu0 %v4056_v18, %s3546_s4 }
 0x505   : > { %v3140_v48 = vpop.eup %3139 }
 0x506   : > { %v1541_v51 = vmul.f32 %v3140_v48, %v3126_v15  ;;  %v3142_v54 = vpop.eup %3141 }
 0x507   : > { %v1529_v55 = vsel %vm1459_vm2, %v3142_v54, 0.0 }
 0x508   : > { %v1548_v52 = vpack.c.bf16 %v1541_v51, %v1540_v50 }
 0x50a   : > { %2829 = vmatmul.mubr.msk.bf16.vlgmr.msra.gmra.mxu0 %vm1459_vm2, %v1548_v52 }
 0x50b   : > { %2840 = vmatprep.mubr.msk.bf16.mxu0 %vm3545_vm0, %v3543_v7 }
 0x51e   : > { %1530 = vadd.xlane.f32.xlu1 %v1529_v55 }
 0x52f   : > { %1253 = vrot.lane.b32.xlu1 %v4056_v18, %s3548_s30 }
 0x566   : > { %v1516_v56 = vpop.xlane.xlu0 %1515 }
 0x567   : > { %3143 = vrcp.f32 %v1516_v56 }
 0x56a   : > { %v1519_v59 = vpop.xlane.xlu1 %1518 }
 0x56b   : > { %3145 = vrcp.f32 %v1519_v59 }
 0x56e   : > { %v1522_v60 = vpop.xlane.xlu0 %1521 }
 0x56f   : > { %3147 = vrcp.f32 %v1522_v60 }
 0x572   : > { %v1525_v62 = vpop.xlane.xlu1 %1524 }
 0x573   : > { %3149 = vrcp.f32 %v1525_v62 }
 0x574   : > { %v3144_v63 = vpop.eup %3143 }
 0x575   : > { %v1542_v5 = vmul.f32 %v3144_v63, %v3128_v33 }
 0x576   : > { %v1528_v0 = vpop.xlane.xlu0 %1527  ;;  %v1251_v1 = vpop.permute.xlu1 %1250 }
 0x577   : > { %2839 = vmatpush3.bf16.msra.mxu0 %v1251_v1  ;;  %3151 = vrcp.f32 %v1528_v0 }
 0x578   : > { %v3146_v2 = vpop.eup %3145  ;;  %2850 = vmatprep.subr.bf16.mxu0 %v3543_v7 }
 0x579   : > { %v1543_v6 = vmul.f32 %v3146_v2, %v3130_v36 }
 0x57a   : > { %v1248_v8 = vpop.permute.xlu0 %1247 }
 0x57b   : > { %2833 = vmatpush3.bf16.msra.mxu1 %v1248_v8  ;;  %v1549_v18 = vpack.c.bf16 %v1543_v6, %v1542_v5  ;;  %v2656_v5 = vld [vmem:[%s881_s6] ss:$0 sm:$0xff]  ;;  %s4434_s6 = sld [smem:[#allocation30_spill]] }
 0x57c   : > { %2844 = vmatprep.subr.bf16.mxu1 %v3543_v7  ;;  %v3148_v9 = vpop.eup %3147 }
 0x57d   : > { %v1544_v11 = vmul.f32 %v3148_v9, %v3132_v38 }
 0x57e   : > { %2835 = vmatmul.mubr.msk.bf16.vlgmr.msra.gmra.mxu1 %vm1459_vm2, %v1549_v18 }
 0x57f   : > { %2846 = vmatprep.mubr.msk.bf16.mxu1 %vm3545_vm0, %v3543_v7 }
 0x580   : > { %v3150_v10 = vpop.eup %3149 }
 0x581   : > { %v1545_v12 = vmul.f32 %v3150_v10, %v3134_v40  ;;  %v3075_v40 = vld [vmem:[%s3929_s17 + $0x18] sm:$0xff]   ;;  %p2700_p10 = scmp.ne.s32.totalorder %s4434_s6, 1 }
 0x582   : > { %s4435_s1 = sld [smem:[#allocation58_spill]] (!%p2700_p10) }
 0x583   : > { %v1550_v13 = vpack.c.bf16 %v1545_v12, %v1544_v11  ;;  %s4436_s27 = sld [smem:[#allocation59_spill]] (!%p2700_p10) }
 0x584   : > { %v3152_v16 = vpop.eup %3151 }
 0x585   : > { %2841 = vmatmul.mubr.msk.bf16.vlgmr.msra.gmra.mxu0 %vm1459_vm2, %v1550_v13  ;;  %v1546_v19 = vmul.f32 %v3152_v16, %v3136_v42  ;;  %v3077_v42 = vld [vmem:[%s3929_s17 + $0x8] sm:$0xff]  }
 0x586   : > { %2866 = vmatprep.mubr.msk.bf16.mxu0 %vm3545_vm0, %v3543_v7  ;;  %2851 = vmatpush3.bf16.msra.mxu0 %v3071_v28  ;;  %v3090_v28 = vld [vmem:[%s3936_s5 + $0x44] ss:$8 sps:$4 sm:$0xff]  }
 0x587   : > { %2852 = vmatprep.subr.bf16.mxu0 %v3543_v7 }
 0x58a   : > { %2853 = vmatpush3.bf16.msra.mxu0 %v3072_v32  ;;  %v3096_v32 = vld [vmem:[%s3936_s5 + $0x24] ss:$8 sps:$4 sm:$0xff]  }
 0x58b   : > { %2854 = vmatprep.subr.bf16.mxu0 %v3543_v7 }
 0x58e   : > { %2855 = vmatpush3.bf16.msra.mxu0 %v3073_v35  ;;  %v3102_v35 = vld [vmem:[%s3936_s5 + $0x4] ss:$8 sps:$4 sm:$0xff]  }
 0x58f   : > { %2856 = vmatprep.subr.bf16.mxu0 %v3543_v7 }
 0x592   : > { %2857 = vmatpush3.bf16.msra.mxu0 %v3074_v39  ;;  %v3105_v39 = vld [vmem:[%s3939_s13 + $0x70] sm:$0xff]  }
 0x593   : > { %2858 = vmatprep.subr.bf16.mxu0 %v3543_v7 }
 0x596   : > { %2859 = vmatpush3.bf16.msra.mxu0 %v3075_v40  ;;  %v3106_v40 = vld [vmem:[%s3939_s13 + $0x30] sm:$0xff]  }
 0x597   : > { %2860 = vmatprep.subr.bf16.mxu0 %v3543_v7 }
 0x59a   : > { %2861 = vmatpush3.bf16.msra.mxu0 %v3076_v41  ;;  %v3107_v41 = vld [vmem:[%s3939_s13 + $0x68] sm:$0xff]  }
 0x59b   : > { %2862 = vmatprep.subr.bf16.mxu0 %v3543_v7 }
 0x59e   : > { %2863 = vmatpush3.bf16.msra.mxu0 %v3077_v42  ;;  %v3108_v42 = vld [vmem:[%s3939_s13 + $0x28] sm:$0xff]  }
 0x59f   : > { %2864 = vmatprep.subr.bf16.mxu0 %v3543_v7 }
 0x5a2   : > { %2865 = vmatpush3.bf16.msra.mxu0 %v3078_v43  ;;  %v3109_v43 = vld [vmem:[%s3939_s13 + $0x60] sm:$0xff]  }
 0x5a7   : > { %v1531_v14 = vpop.xlane.xlu1 %1530 }
 0x5a8   : > { %3153 = vrcp.f32 %v1531_v14  ;;  %v3079_v14 = vld [vmem:[%s3936_s5 + $0x70] ss:$8 sps:$4 sm:$0xff]  }
 0x5ab   : > { %v1254_v15 = vpop.permute.xlu1 %1253 }
 0x5ac   : > { %2845 = vmatpush3.bf16.msra.mxu1 %v1254_v15  ;;  %v3081_v15 = vld [vmem:[%s3936_s5 + $0x74] ss:$8 sps:$4 sm:$0xff]  }
 0x5ad   : > { %2007 = vmatprep.subr.bf16.mxu1 %v3081_v15 }
 0x5b5   : > { %v3154_v17 = vpop.eup %3153 }
 0x5b6   : > { %v1547_v20 = vmul.f32 %v3154_v17, %v3142_v54 }
 0x5b8   : > { %v1551_v21 = vpack.c.bf16 %v1547_v20, %v1546_v19 }
 0x5ba   : > { %2847 = vmatmul.mubr.msk.bf16.vlgmr.msra.gmra.mxu1 %vm1459_vm2, %v1551_v21 }
 0x5bb   : > { %2039 = vmatprep.mubr.bf16.mxu1 %v3544_v30  ;;  %2008 = vmatpush1.bf16.msra.mxu1 %v3079_v14 }
 0x5ca   : > { %v1589_v22 = vpop.f32.mrf.mxu0 }
 0x5cc   : > { %v2830_v23 = vpop.f32.mrf.mxu0 }
 0x5cd   : > { %v3084_v23 = vld [vmem:[%s3936_s5 + $0x64] ss:$8 sps:$4 sm:$0xff]  }
 0x5ce   : > { %v1592_v24 = vpop.f32.mrf.mxu0  ;;  %2009 = vmatprep.subr.bf16.mxu1 %v3084_v23 }
 0x5d0   : > { %v2831_v25 = vpop.f32.mrf.mxu0 }
 0x5d1   : > { %v3087_v25 = vld [vmem:[%s3936_s5 + $0x54] ss:$8 sps:$4 sm:$0xff]  }
 0x63e   : > { %v1633_v26 = vpop.f32.mrf.mxu1 }
 0x640   : > { %v2836_v27 = vpop.f32.mrf.mxu1 }
 0x641   : > { %v3088_v27 = vld [vmem:[%s3936_s5 + $0x40] ss:$8 sps:$4 sm:$0xff]  }
 0x642   : > { %v1636_v29 = vpop.f32.mrf.mxu1 }
 0x643   : > { %v3024_v31 = vpack.i.bf16 %v1636_v29, %v1633_v26  ;;  %v3085_v26 = vld [vmem:[%s3936_s5 + $0x50] ss:$8 sps:$4 sm:$0xff]   ;;  %v3093_v29 = vld [vmem:[%s3936_s5 + $0x34] ss:$8 sps:$4 sm:$0xff]  }
 0x644   : > { %v2837_v33 = vpop.f32.mrf.mxu1 }
 0x645   : > { %v1677_v34 = vpop.f32.mrf.mxu0  ;;  %3025 = vrot.lane.b32.xlu1 %v3024_v31, %s3548_s30  ;;  %v3091_v31 = vld [vmem:[%s3936_s5 + $0x30] ss:$8 sps:$4 sm:$0xff]   ;;  %v3094_v33 = vld [vmem:[%s3936_s5 + $0x20] ss:$8 sps:$4 sm:$0xff]  }
 0x647   : > { %v2842_v30 = vpop.f32.mrf.mxu0 }
 0x648   : > { %v3097_v30 = vld [vmem:[%s3936_s5 + $0x10] ss:$8 sps:$4 sm:$0xff]  }
 0x649   : > { %v1680_v36 = vpop.f32.mrf.mxu0 }
 0x64a   : > { %v3029_v37 = vpack.i.bf16 %v1680_v36, %v1677_v34  ;;  %v3099_v34 = vld [vmem:[%s3936_s5 + $0x14] ss:$8 sps:$4 sm:$0xff]   ;;  %v3100_v36 = vld [vmem:[%s3936_s5] ss:$8 sps:$4 sm:$0xff]  }
 0x64b   : > { %v2843_v38 = vpop.f32.mrf.mxu0 }
 0x64c   : > { %3030 = vrot.lane.b32.xlu0 %v3029_v37, %s3547_s29  ;;  %v3103_v37 = vld [vmem:[%s3939_s13 + $0x78] sm:$0xff]  }
 0x64d   : > { %v3104_v38 = vld [vmem:[%s3939_s13 + $0x38] sm:$0xff]   ;;  %2760 = vmatprep.subr.bf16.mxu0 %v3103_v37 }
 0x67a   : > { %v1721_v44 = vpop.f32.mrf.mxu1 }
 0x67c   : > { %v2848_v45 = vpop.f32.mrf.mxu1 }
 0x67d   : > { %v3111_v45 = vld [vmem:[%s3939_s13 + $0x58] sm:$0xff]  }
 0x67e   : > { %v1724_v46 = vpop.f32.mrf.mxu1 }
 0x67f   : > { %v3034_v47 = vpack.i.bf16 %v1724_v46, %v1721_v44  ;;  %v3110_v44 = vld [vmem:[%s3939_s13 + $0x20] sm:$0xff]   ;;  %v3112_v46 = vld [vmem:[%s3939_s13 + $0x18] sm:$0xff]  }
 0x680   : > { %v2849_v48 = vpop.f32.mrf.mxu1 }
 0x681   : > { %3035 = vrot.lane.b32.xlu1 %v3034_v47, %s3546_s4 }
 0x6b7   : > { %v3026_v49 = vpop.permute.xlu1 %3025 }
 0x6b8   : > { %v3028_v51 = vunpack.i.h.bf16 %v3026_v49  ;;  %v3027_v52 = vunpack.i.l.bf16 %v3026_v49 }
 0x6ba   : > { %v1753_v7 = vsel %vm1256_vm1, %v1592_v24, %v3028_v51  ;;  %v1752_v56 = vsel %vm1256_vm1, %v1589_v22, %v3027_v52  ;;  %v3082_v24 = vld [vmem:[%s3936_s5 + $0x60] ss:$8 sps:$4 sm:$0xff]  }
 0x6bb   : > { %2010 = vmatpush1.bf16.msra.mxu1 %v3082_v24 }
 0x6bc   : > { %2011 = vmatprep.subr.bf16.mxu1 %v3087_v25 }
 0x6be   : > { %v3031_v50 = vpop.permute.xlu0 %3030 }
 0x6bf   : > { %v3033_v53 = vunpack.i.h.bf16 %v3031_v50  ;;  %v3032_v54 = vunpack.i.l.bf16 %v3031_v50  ;;  %2012 = vmatpush1.bf16.msra.mxu1 %v3085_v26 }
 0x6c0   : > { %2013 = vmatprep.subr.bf16.mxu1 %v3090_v28 }
 0x6c1   : > { %v1755_v62 = vsel %vm1754_vm3, %v1752_v56, %v3032_v54  ;;  %v1756_v63 = vsel %vm1754_vm3, %v1753_v7, %v3033_v53 }
 0x6c3   : > { %2014 = vmatpush1.bf16.msra.mxu1 %v3088_v27 }
 0x6c4   : > { %2015 = vmatprep.subr.bf16.mxu1 %v3093_v29 }
 0x6c7   : > { %2016 = vmatpush1.bf16.msra.mxu1 %v3091_v31 }
 0x6c8   : > { %2017 = vmatprep.subr.bf16.mxu1 %v3096_v32 }
 0x6cb   : > { %2018 = vmatpush1.bf16.msra.mxu1 %v3094_v33 }
 0x6cc   : > { %2019 = vmatprep.subr.bf16.mxu1 %v3099_v34 }
 0x6cf   : > { %2020 = vmatpush1.bf16.msra.mxu1 %v3097_v30 }
 0x6d0   : > { %2021 = vmatprep.subr.bf16.mxu1 %v3102_v35 }
 0x6d3   : > { %2022 = vmatpush1.bf16.msra.mxu1 %v3100_v36 }
 0x6f3   : > { %v3036_v55 = vpop.permute.xlu1 %3035 }
 0x6f4   : > { %v3038_v59 = vunpack.i.h.bf16 %v3036_v55  ;;  %v3037_v60 = vunpack.i.l.bf16 %v3036_v55  ;;  %v2665_v55 = vld [vmem:[%s884_s7] ss:$0 sm:$0xff] }
 0x6f6   : > { %v1759_v0 = vsel %vm1757_vm4, %v1756_v63, %v3038_v59  ;;  %v1758_v1 = vsel %vm1757_vm4, %v1755_v62, %v3037_v60  ;;  %v2666_v60 = vld [vmem:[%s887_s2] ss:$0 sm:$0xff] }
 0x6f7   : > { %v1760_v2 = vpack.c.bf16 %v1759_v0, %v1758_v1 }
 0x6f9   : > { %2867 = vmatmul.mubr.bf16.vlgmr.msra.gmra.mxu0 %v1760_v2  ;;  %v3113_v2 = vld [vmem:[%s3939_s13 + $0x50] sm:$0xff]  }
 0x6fa   : > { %2761 = vmatpush3.bf16.msra.mxu0 %v3104_v38 }
 0x6fb   : > { %2762 = vmatprep.subr.bf16.mxu0 %v3105_v39 }
 0x6fe   : > { %2763 = vmatpush3.bf16.msra.mxu0 %v3106_v40 }
 0x6ff   : > { %2764 = vmatprep.subr.bf16.mxu0 %v3107_v41 }
 0x702   : > { %2765 = vmatpush3.bf16.msra.mxu0 %v3108_v42 }
 0x703   : > { %2766 = vmatprep.subr.bf16.mxu0 %v3109_v43 }
 0x706   : > { %2767 = vmatpush3.bf16.msra.mxu0 %v3110_v44 }
 0x707   : > { %2768 = vmatprep.subr.bf16.mxu0 %v3111_v45 }
 0x70a   : > { %2769 = vmatpush3.bf16.msra.mxu0 %v3112_v46 }
 0x70b   : > { %2770 = vmatprep.subr.bf16.mxu0 %v3113_v2 }
 0x7b9   : > { %v1849_v6 = vpop.f32.mrf.mxu0 }
 0x7ba   : > { %v1850_v8 = vadd.f32 %v2656_v5, %v1849_v6  ;;  %v3115_v6 = vld [vmem:[%s3939_s13 + $0x48] sm:$0xff]  }
 0x7bb   : > { %v2868_v18 = vpop.f32.mrf.mxu0 }
 0x7bc   : > { %v4153_v9 = vadd.f32 %v1850_v8, %v3983_v3  ;;  %v3116_v8 = vld [vmem:[%s3939_s13 + $0x8] sm:$0xff]   ;;  %v3117_v18 = vld [vmem:[%s3939_s13 + $0x40] sm:$0xff]  }
 0x7bd   : > { %v1852_v10 = vpop.f32.mrf.mxu0 }
 0x7be   : > { %v1853_v11 = vadd.f32 %v2656_v5, %v1852_v10  ;;  %1860 = vadd.xlane.f32.xlu0 %v4153_v9  ;;  %v3114_v5 = vld [vmem:[%s3939_s13 + $0x10] sm:$0xff]   ;;  %v3118_v10 = vld [vmem:[%s3939_s13] sm:$0xff]  }
 0x7bf   : > { %v2869_v12 = vpop.f32.mrf.mxu0  ;;  %2771 = vmatpush3.bf16.msra.mxu0 %v3114_v5 }
 0x7c0   : > { %v4157_v13 = vadd.f32 %v1853_v11, %v3985_v4  ;;  %2772 = vmatprep.subr.bf16.mxu0 %v3115_v6  ;;  %v1915_v11 = vld [vmem:[%s3971_s25] sm:$0x3] }
 0x7c1   : > { %v1924_v14 = vrot.slane %v1915_v11, %v990_v61  ;;  %v1920_v15 = vrot.slane %v1915_v11, %v986_v58  ;;  %v2699_v58 = vld [vmem:[%s894_s0] ss:$0 sm:$0xff] }
 0x7c2   : > { %1862 = vadd.xlane.f32.xlu1 %v4157_v13 }
 0x7c3   : > { %2773 = vmatpush3.bf16.msra.mxu0 %v3116_v8 }
 0x7c4   : > { %2774 = vmatprep.subr.bf16.mxu0 %v3117_v18 }
 0x7c7   : > { %2775 = vmatpush3.bf16.msra.mxu0 %v3118_v10 }
 0x847   : > { %v1861_v3 = vpop.xlane.xlu0 %1860 }
 0x848   : > { %v1864_v16 = vmul.f32 0.0078125, %v1861_v3 }
 0x84a   : > { %v4163_v17 = vsub.f32 %v4153_v9, %v1864_v16 }
 0x84b   : > { %v1863_v19 = vpop.xlane.xlu1 %1862 }
 0x84c   : > { %v1865_v4 = vmul.f32 0.0078125, %v1863_v19  ;;  %v1868_v20 = vmul.f32 %v4163_v17, %v4163_v17 }
 0x84e   : > { %v4168_v21 = vsub.f32 %v4157_v13, %v1865_v4  ;;  %1870 = vadd.xlane.f32.xlu0 %v1868_v20 }
 0x850   : > { %v1869_v22 = vmul.f32 %v4168_v21, %v4168_v21 }
 0x852   : > { %1872 = vadd.xlane.f32.xlu0 %v1869_v22 }
 0x8d7   : > { %v1871_v47 = vpop.xlane.xlu0 %1870 }
 0x8d8   : > { %v1874_v48 = vmul.f32 0.0078125, %v1871_v47 }
 0x8da   : > { %v1876_v49 = vadd.f32 1e-05, %v1874_v48 }
 0x8db   : > { %v1873_v50 = vpop.xlane.xlu0 %1872 }
 0x8dc   : > { %3155 = vrsqrt.f32 %v1876_v49  ;;  %v1875_v51 = vmul.f32 0.0078125, %v1873_v50 }
 0x8de   : > { %v1877_v52 = vadd.f32 1e-05, %v1875_v51 }
 0x8e0   : > { %3157 = vrsqrt.f32 %v1877_v52 }
 0x8e9   : > { %v3156_v53 = vpop.eup %3155 }
 0x8ea   : > { %v1880_v54 = vmul.f32 %v3156_v53, %v4163_v17 }
 0x8ec   : > { %v1888_v59 = vmul.f32 %v2665_v55, %v1880_v54 }
 0x8ed   : > { %v3158_v7 = vpop.eup %3157 }
 0x8ee   : > { %v1881_v56 = vmul.f32 %v3158_v7, %v4168_v21  ;;  %v1896_v63 = vadd.f32 %v2666_v60, %v1888_v59 }
 0x8f0   : > { %v1889_v62 = vmul.f32 %v2665_v55, %v1881_v56 }
 0x8f2   : > { %v1897_v0 = vadd.f32 %v2666_v60, %v1889_v62 }
 0x8f4   : > { %v1898_v1 = vpack.c.bf16 %v1897_v0, %v1896_v63 }
 0x8f6   : > { %2040 = vmatmul.mubr.bf16.vlgmr.msra.gmra.mxu1 %v1898_v1 }
 0x9b6   : > { %v2041_v12 = vpop.f32.mrf.mxu1 }
 0x9b7   : > { %v2042_v4 = vadd.f32 %v2041_v12, %v1920_v15 }
 0x9b8   : > { %v2043_v3 = vpop.f32.mrf.mxu1 }
 0x9b9   : > { %v2044_v17 = vadd.f32 %v2043_v3, %v1924_v14  ;;  %v2050_v25 = vmax.f32 %v2042_v4, 0.0 }
 0x9ba   : > { %v2045_v16 = vpop.f32.mrf.mxu1 }
 0x9bb   : > { %v2046_v19 = vadd.f32 %v2045_v16, %v1920_v15  ;;  %v2051_v23 = vmax.f32 %v2044_v17, 0.0 }
 0x9bc   : > { %v2047_v20 = vpop.f32.mrf.mxu1 }
 0x9bd   : > { %v2048_v21 = vadd.f32 %v2047_v20, %v1924_v14  ;;  %v2052_v22 = vmax.f32 %v2046_v19, 0.0 }
 0x9bf   : > { %v2053_v24 = vmax.f32 %v2048_v21, 0.0  ;;  %v2054_v27 = vpack.c.bf16 %v2052_v22, %v2050_v25 }
 0x9c1   : > { %v2055_v26 = vpack.c.bf16 %v2053_v24, %v2051_v23 }
 0x9c3   : > { %2216 = vmatprep.mubr.bf16.mxu0 %v2055_v26 }
 0x9c4   : > { %2217 = vmatmul.mubr.bf16.vlgmr.msra.gmra.mxu0 %v2054_v27 }
 0xa84   : > { %v2776_v61 = vpop.f32.mrf.mxu0 }
 0xa86   : > { %v2777_v28 = vpop.f32.mrf.mxu0 }
 0xa87   : > { %v2778_v57 = vadd.f32 %v2777_v28, %v2776_v61 }
 0xa88   : > { %v2779_v29 = vpop.f32.mrf.mxu0 }
 0xa89   : > { %v2225_v31 = vadd.f32 %v2778_v57, %v4153_v9 }
 0xa8a   : > { %v2780_v32 = vpop.f32.mrf.mxu0 }
 0xa8b   : > { %v2234_v33 = vadd.f32 %v2699_v58, %v2225_v31  ;;  %v2781_v34 = vadd.f32 %v2780_v32, %v2779_v29 }
 0xa8d   : > { %2236 = vst [vmem:[#allocation2] sm:$0xff] %v2234_v33  ;;  %v2226_v30 = vadd.f32 %v2781_v34, %v4157_v13  ;;  %2241 = sbr.rel (%p2700_p10) target bundleno = 3019 (0xbcb), region = 124 }
 0xa8f   : > { %v2235_v35 = vadd.f32 %v2699_v58, %v2226_v30 }
 0xa91   : > { %2237 = vst [vmem:[#allocation2 + $0x8] sm:$0xff] %v2235_v35 }
 0xa92   : > { %2244 = vadd.xlane.f32.xlu0 %v2234_v33  ;;  %v2701_v50 = vld [vmem:[%s4435_s1] ss:$0 sm:$0xff] }
 0xa93   : > { %v2702_v54 = vld [vmem:[%s4436_s27] ss:$0 sm:$0xff] }
 0xa96   : > { %2246 = vadd.xlane.f32.xlu0 %v2235_v35 }
 0xb1b   : > { %v2245_v36 = vpop.xlane.xlu0 %2244 }
 0xb1c   : > { %v2248_v37 = vmul.f32 0.0078125, %v2245_v36 }
 0xb1e   : > { %v2250_v38 = vsub.f32 %v2234_v33, %v2248_v37 }
 0xb1f   : > { %v2247_v39 = vpop.xlane.xlu0 %2246 }
 0xb20   : > { %v2249_v40 = vmul.f32 0.0078125, %v2247_v39  ;;  %v2252_v41 = vmul.f32 %v2250_v38, %v2250_v38 }
 0xb22   : > { %v2251_v9 = vsub.f32 %v2235_v35, %v2249_v40  ;;  %2254 = vadd.xlane.f32.xlu1 %v2252_v41 }
 0xb24   : > { %v2253_v42 = vmul.f32 %v2251_v9, %v2251_v9 }
 0xb26   : > { %2256 = vadd.xlane.f32.xlu1 %v2253_v42 }
 0xbab   : > { %v2255_v43 = vpop.xlane.xlu1 %2254 }
 0xbac   : > { %v2258_v44 = vmul.f32 0.0078125, %v2255_v43 }
 0xbae   : > { %v2260_v13 = vadd.f32 1e-05, %v2258_v44 }
 0xbaf   : > { %v2257_v45 = vpop.xlane.xlu1 %2256 }
 0xbb0   : > { %3159 = vrsqrt.f32 %v2260_v13  ;;  %v2259_v46 = vmul.f32 0.0078125, %v2257_v45 }
 0xbb2   : > { %v2261_v47 = vadd.f32 1e-05, %v2259_v46 }
 0xbb4   : > { %3161 = vrsqrt.f32 %v2261_v47 }
 0xbbd   : > { %v3160_v48 = vpop.eup %3159 }
 0xbbe   : > { %v2264_v49 = vmul.f32 %v3160_v48, %v2250_v38 }
 0xbc0   : > { %v2272_v52 = vmul.f32 %v2701_v50, %v2264_v49 }
 0xbc1   : > { %v3162_v51 = vpop.eup %3161 }
 0xbc2   : > { %v2265_v53 = vmul.f32 %v3162_v51, %v2251_v9  ;;  %v2280_v7 = vadd.f32 %v2702_v54, %v2272_v52 }
 0xbc4   : > { %v2273_v55 = vmul.f32 %v2701_v50, %v2265_v53 }
 0xbc6   : > { %v2281_v56 = vadd.f32 %v2702_v54, %v2273_v55 }
 0xbc8   : > { %v2724_v59 = vpack.c.bf16 %v2281_v56, %v2280_v7 }
 0xbca   : > { %2725 = vst [vmem:[%s3979_s11] sm:$0xff] %v2724_v59  }
 0xbcb PF: > { %s4437_s20 = sld [smem:[#allocation31_spill]]  ;;  %s2306_s30 = sshll.u32 %s3979_s11, 4  ;;  %s4241_s30 = int_to_ptr.vmem [resolvable:$true] %s2306_s30 }
 0xbcc   : > { %s4438_s3 = sld [smem:[#allocation37_spill]]  ;;  %s2293_s8 = scalar_lea.sflag [#allocation5], %s3894_s16 }
 0xbcd   : > { %s4439_s12 = sld [smem:[#allocation60_spill]]  ;;  %s3387_s14 = scalar_lea.vmem %s4241_s30, 128 }
 0xbce   : > { %p3388_p2 = scmp.ne.s32.totalorder %s4241_s30, %s3387_s14  ;;  %s3549_s23 = smov [#allocation17]  }
 0xbcf   : > { %s3391_s26 = sshll.u32 %s3549_s23, 4  ;;  %s3392_s26 = int_to_ptr.vmem [resolvable:$false] %s3391_s26 }
 0xbd0   : > { %s3393_s28 = scalar_lea.vmem %s3392_s26, 256  ;;  %p3394_p8 = scmp.lt.s32.totalorder %s4241_s30, %s3392_s26 }
 0xbd1   : > { %s2716_s0 = sshll.u32 %s4437_s20, 7  ;;  %p3395_p7 = scmp.lt.s32.totalorder %s3393_s28, %s3387_s14 }
 0xbd2   : > { %p4440_p4 = scmp.ne.s32.totalorder %s4438_s3, 0 }
 0xbd3   : > { %s4238_s4 = scalar_lea.hbm %s4439_s12, %s2716_s0  ;;  %p3396_p3 = por %p3395_p7, %p3394_p8 }
 0xbd4   : > { %p3389_p9 = pnand %p3388_p2, %p4440_p4 }
 0xbd6   : > { %p3390_p5 = pneg %p3389_p9 }
 0xbd8   : > { %p3397_p1 = pnand %p3396_p3, %p3390_p5 }
 0xbda   : > { %3400 = shalt.err (!%p3397_p1)
}
 0xbdb   : > { %s3401_s11 = scalar_lea.hbm %s4238_s4, 128  ;;  %s3405_s5 = scalar_lea.hbm %s4439_s12, 256 }
 0xbdc   : > { %p3402_p11 = scmp.ne.s32.totalorder %s4238_s4, %s3401_s11  ;;  %p3406_p6 = scmp.lt.s32.totalorder %s4238_s4, %s4439_s12 }
 0xbdd   : > { %p3407_p13 = scmp.lt.s32.totalorder %s3405_s5, %s3401_s11 }
 0xbde   : > { %p3403_p0 = pnand %p3402_p11, %p4440_p4 }
 0xbdf   : > { %p3408_p10 = por %p3407_p13, %p3406_p6 }
 0xbe0   : > { %p3404_p12 = pneg %p3403_p0 }
 0xbe2   : > { %p3409_p2 = pnand %p3408_p10, %p3404_p12 }
 0xbe4   : > { %3412 = shalt.err (!%p3409_p2)
}
 0xbe5   : > { %s3550_s25 = smov 4  }
 0xbe6   : > { %2890 = dma.vmem_to_hbm [thread:$0]  (%p4440_p4), %s4241_s30, 128, %s4238_s4, %s2293_s8, %s3547_s29, %s3547_s29, %s3550_s25  }
 0xbe7 PF: > { %s4441_s2 = sld [smem:[#allocation34_spill]] }
 0xbe8   : > { %s4442_s13 = sld [smem:[#allocation27_spill]] }
 0xbe9   : > { %s4443_s6 = sld [smem:[#allocation38_spill]] }
 0xbed   : > { %p2922_p9 = scmp.ge.s32.totalorder %s4441_s2, 2 }
 0xbee   : > { %s2321_s24 = sand.u32 1, %s4442_s13  }
 0xbef   : > { %p4444_p5 = scmp.ne.s32.totalorder %s4443_s6, 0  ;;  %s2322_s7 = scalar_lea.sflag [#allocation5], %s2321_s24 }
 0xbf1   : > { %p2918_p8 = pnand %p2922_p9, %p4444_p5 }
 0xbf3   : > { %p2919_p7 = pneg %p2918_p8 }
 0xbf5   : > { %3482 = dma.done.wait (%p2919_p7), %s2322_s7, 128  }
 0xbf6   : > { %3484 = vsyncadd (%p2919_p7), %s2322_s7, 4294967168  ;;  %s44_s0 = sadd.s32 1, %s4441_s2   ;;  %s4445_s21 = sld [smem:[#allocation25_spill]] }
 0xbf7   : > { %p41_p3 = scmp.ge.s32.totalorder %s44_s0, 6   ;;  %s4446_s22 = sld [smem:[#allocation26_spill]] }
 0xbf8   : > { %s4447_s23 = sld [smem:[#allocation42_spill]] }
 0xbf9   : > { %s4448_s24 = sld [smem:[#allocation28_spill]] }
 0xbfa   : > { %s4449_s25 = sld [smem:[#allocation29_spill]] }
 0xbfb   : > { %s4450_s26 = sld [smem:[#allocation43_spill]]  ;;  %43 = sbr.rel (!%p41_p3) target bundleno = 35 (0x23), region = 240 }
 0xbfc   : > { %s4451_s27 = sld [smem:[#allocation32_spill]] }
 0xbfd   : > { %s4452_s28 = sld [smem:[#allocation33_spill]] }
 0xbfe   : > { %s4453_s29 = sld [smem:[#allocation39_spill]] }
 0xbff   : > { %s4454_s30 = sld [smem:[#allocation41_spill]] }
 0xc00   :  { %2327 = vsyncpa [#allocation4], 1 }
 0xc01   :  { %2329 = vsyncpa [#allocation4 + $0x1], 1 }
 0xc02   :  { %2330 = vsyncpa [#allocation7], 1 }
 0xc03   :  { %2332 = vsyncpa [#allocation7 + $0x1], 1 }
 0xc04   :  { %2333 = vsyncpa [#allocation10], 1 }
 0xc05   :  { %2335 = vsyncpa [#allocation10 + $0x1], 1 }
 0xc06   :  { %2336 = vsyncpa [#allocation13], 1 }
 0xc07   :  { %2338 = vsyncpa [#allocation13 + $0x1], 1 }
 0xc08   :  { %2339 = vsyncpa [#allocation16], 1 }
 0xc09   :  { %2341 = vsyncpa [#allocation16 + $0x1], 1 }
 0xc0a   :  { %2342 = vsyncpa [#allocation5], 1 }
 0xc0b   :  { %2344 = vsyncpa [#allocation5 + $0x1], 1 }

</bundles_post_ra>
